<compile_context>
chip_gen: v7x
topology: tpu7x:2x2x1
jax: 0.10.0
libtpu: 0.0.40
codegen_flags: <defaults>
</compile_context>

<pallas_src>
import jax
import jax.numpy as jnp
from jax import lax
from jax.experimental import pallas as pl
from jax.experimental.pallas import tpu as pltpu


# --------------------------------------------------------------------------
# Kernel 1: per-waveform masked layer norm (F.layer_norm(wav, wav.shape)),
# tiled over batch, lengths scalar-prefetched into SMEM.
# --------------------------------------------------------------------------
def wav_layernorm_kernel(len_ref, x_ref, o_ref):
    bb, _ = x_ref.shape
    B = len_ref.shape[0]
    base = pl.program_id(0) * bb
    x = x_ref[...]                                          # [bb, T] f32

    # gather the bb per-row lengths from SMEM into a [bb, 1] column
    row_iota = lax.broadcasted_iota(jnp.int32, (bb, 1), 0)
    lens = jnp.zeros((bb, 1), jnp.int32)
    for r in range(bb):                                     # static, bb <= 8
        lr = len_ref[jnp.minimum(base + r, B - 1)]          # clamp edge tiles
        lens = jnp.where(row_iota == r, lr, lens)

    n_f = jnp.maximum(lens, 1).astype(jnp.float32)          # guard len == 0
    col_iota = lax.broadcasted_iota(jnp.int32, x.shape, 1)
    valid = col_iota < lens                                 # real samples only
    xm = jnp.where(valid, x, 0.0)
    mean = jnp.sum(xm, axis=-1, keepdims=True) / n_f
    d = jnp.where(valid, x - mean, 0.0)
    var = jnp.sum(d * d, axis=-1, keepdims=True) / n_f
    inv = lax.rsqrt(var + 1e-5)
    # pad_sequence pads with zeros -> zero out the padded tail here.
    o_ref[...] = jnp.where(valid, (x - mean) * inv, 0.0)


def wav_layernorm(x, lengths):
    # TODO(synk): for extreme T_wav (minutes of audio) switch to a two-pass
    # reduction tiled over T instead of one full-row block per batch tile.
    B, T = x.shape
    bb = B if B < 8 else 8                                  # 8 | full-batch rows
    grid = (pl.cdiv(B, bb),)
    return pl.pallas_call(
        wav_layernorm_kernel,
        out_shape=jax.ShapeDtypeStruct((B, T), jnp.float32),
        grid_spec=pltpu.PrefetchScalarGridSpec(
            num_scalar_prefetch=1,
            grid=grid,
            in_specs=[pl.BlockSpec((bb, T), lambda i, lens: (i, 0))],
            out_specs=pl.BlockSpec((bb, T), lambda i, lens: (i, 0)),
        ),
        compiler_params=pltpu.CompilerParams(
            dimension_semantics=("parallel",)),
    )(lengths.astype(jnp.int32), x.astype(jnp.float32))


# --------------------------------------------------------------------------
# Kernel 2 (fused): conv feature extractor + L encoder layers + mean of the
# (L+1) hooked hidden states.  Grid = (row_tiles, L); weights stream one
# layer per 'arbitrary' step; x / accumulator carried in VMEM scratch.
# --------------------------------------------------------------------------
def fused_conv_encoder_kernel(p_ref, cw_ref, cb_ref, w_ref, b_ref, o_ref,
                              x_sc, acc_sc):
    l = pl.program_id(1)
    n_layers = pl.num_programs(1)

    @pl.when(l == 0)
    def _():
        # conv feature extractor: non-overlapping im2col matmul + bias + GELU
        h = jnp.dot(p_ref[...], cw_ref[...],
                    preferred_element_type=jnp.float32) + cb_ref[...]
        x0 = jax.nn.gelu(h, approximate=True)
        x_sc[...] = x0
        acc_sc[...] = x0                    # hook: input of encoder layer 0

    # encoder layer l (placeholder, see TODO): y = GELU(x @ W_l + b_l)
    # bf16 MXU operands, f32 accumulate; GELU/elementwise stays in f32.
    y = jax.nn.gelu(
        jnp.dot(x_sc[...].astype(jnp.bfloat16), w_ref[0],
                preferred_element_type=jnp.float32) + b_ref[0],
        approximate=True)
    x_sc[...] = y
    acc_sc[...] += y                        # hook: layer-(l+1) input / enc out

    @pl.when(l == n_layers - 1)
    def _():
        o_ref[...] = (acc_sc[...] * (1.0 / (n_layers + 1))).astype(o_ref.dtype)


def conv_encoder_mean(patches, conv_w, conv_b, layer_w, layer_b, *, tm=256):
    M, K = patches.shape
    D = conv_w.shape[1]
    L = layer_w.shape[0]

    # row tile: multiple of 8, capped by M; pad rows so the grid divides evenly
    tm = max(8, min(tm, M))
    tm = (tm // 8) * 8
    M_pad = pl.cdiv(M, tm) * tm
    if M_pad != M:
        patches = jnp.pad(patches, ((0, M_pad - M), (0, 0)))

    out = pl.pallas_call(
        fused_conv_encoder_kernel,
        out_shape=jax.ShapeDtypeStruct((M_pad, D), jnp.float32),
        grid_spec=pltpu.PrefetchScalarGridSpec(
            num_scalar_prefetch=0,
            grid=(M_pad // tm, L),
            in_specs=[
                pl.BlockSpec((tm, K), lambda i, l: (i, 0)),      # patches
                pl.BlockSpec((K, D), lambda i, l: (0, 0)),       # conv_w (bf16)
                pl.BlockSpec((1, D), lambda i, l: (0, 0)),       # conv_b (f32)
                pl.BlockSpec((1, D, D), lambda i, l: (l, 0, 0)), # layer_w[l]
                pl.BlockSpec((1, 1, D), lambda i, l: (l, 0, 0)), # layer_b[l]
            ],
            out_specs=pl.BlockSpec((tm, D), lambda i, l: (i, 0)),
            scratch_shapes=[
                pltpu.VMEM((tm, D), jnp.float32),   # x carry across layers
                pltpu.VMEM((tm, D), jnp.float32),   # hidden-state accumulator
            ],
        ),
        compiler_params=pltpu.CompilerParams(
            dimension_semantics=("parallel", "arbitrary"),
            vmem_limit_bytes=48 * 1024 * 1024),
    )(patches, conv_w, conv_b, layer_w, layer_b)
    return out[:M]


# --------------------------------------------------------------------------
# SSLFrontend.forward
# --------------------------------------------------------------------------
def ssl_frontend_forward(input_tensor, input_lengths, params,
                         wav_normalize=True):
    B, T_wav = input_tensor.shape
    K, D = params["conv_w"].shape          # conv kernel == stride == K

    # 1. per-wav layer norm over valid samples (+ zero padding)
    if wav_normalize:
        wav = wav_layernorm(input_tensor, input_lengths)
    else:
        iota = lax.broadcasted_iota(jnp.int32, (B, T_wav), 1)
        wav = jnp.where(iota < input_lengths[:, None],
                        input_tensor.astype(jnp.float32), 0.0)

    # 2+3. fused conv feature extractor + encoder stack + hidden-state mean
    T_f = T_wav // K
    patches = wav[:, :T_f * K].reshape(B * T_f, K).astype(jnp.bfloat16)
    hidden = conv_encoder_mean(
        patches,
        params["conv_w"].astype(jnp.bfloat16),
        params["conv_b"].astype(jnp.float32),
        params["layer_w"].astype(jnp.bfloat16),
        params["layer_b"].astype(jnp.float32),
    )
    hidden = hidden.reshape(B, T_f, D)

    # 4. frame-level padding mask (fairseq conv-length formula); return ~mask
    frame_len = jnp.where(input_lengths >= K,
                          (input_lengths - K) // K + 1,
                          0).astype(jnp.int32)
    valid = lax.broadcasted_iota(jnp.int32, (B, T_f), 1) < frame_len[:, None]
    return hidden, valid


if __name__ == "__main__":
    B, T_wav, K, D, L = 2, 16384, 128, 128, 4
    T_f = T_wav // K
    key = jax.random.PRNGKey(0)
    k1, k2, k3, k4 = jax.random.split(key, 4)

    input_tensor = jax.random.normal(k1, (B, T_wav), jnp.float32)
    input_lengths = jnp.array([T_wav, (3 * T_wav) // 4], dtype=jnp.int32)

    params = dict(
        conv_w=0.1 * jax.random.normal(k2, (K, D), jnp.float32),
        conv_b=jnp.zeros((1, D), jnp.float32),
        layer_w=0.1 * jax.random.normal(k3, (L, D, D), jnp.float32),
        layer_b=0.01 * jax.random.normal(k4, (L, 1, D), jnp.float32),
    )

    hidden_states, out_mask = ssl_frontend_forward(
        input_tensor, input_lengths, params)
    jax.block_until_ready((hidden_states, out_mask))

    # shape / dtype checks
    assert hidden_states.shape == (B, T_f, D)
    assert out_mask.shape == (B, T_f) and out_mask.dtype == jnp.bool_
    assert bool(jnp.all(jnp.isfinite(hidden_states)))

    # pure-JAX reference (same semantics, same bf16 matmul operands)
    def ref_forward(wav, lens, prm):
        iota = jnp.arange(T_wav)[None, :]
        valid = iota < lens[:, None]
        n = jnp.maximum(lens, 1).astype(jnp.float32)[:, None]
        xm = jnp.where(valid, wav, 0.0)
        mean = jnp.sum(xm, -1, keepdims=True) / n
        d = jnp.where(valid, wav - mean, 0.0)
        var = jnp.sum(d * d, -1, keepdims=True) / n
        w = jnp.where(valid, (wav - mean) * lax.rsqrt(var + 1e-5), 0.0)
        p = w[:, :T_f * K].reshape(B * T_f, K).astype(jnp.bfloat16)
        x = jax.nn.gelu(
            jnp.dot(p, prm["conv_w"].astype(jnp.bfloat16),
                    preferred_element_type=jnp.float32) + prm["conv_b"],
            approximate=True)
        acc = x
        for l in range(L):
            x = jax.nn.gelu(
                jnp.dot(x.astype(jnp.bfloat16),
                        prm["layer_w"][l].astype(jnp.bfloat16),
                        preferred_element_type=jnp.float32) + prm["layer_b"][l],
                approximate=True)
            acc = acc + x
        return (acc / (L + 1)).reshape(B, T_f, D)

    ref = ref_forward(input_tensor, input_lengths, params)
    assert bool(jnp.allclose(hidden_states, ref, atol=2e-2, rtol=2e-2))
    expected_frames = jnp.where(input_lengths >= K,
                                (input_lengths - K) // K + 1, 0)
    assert bool(jnp.all(jnp.sum(out_mask, axis=1) == expected_frames))

    print("KERNEL_OK")
</pallas_src>

<mosaic_0001>
module attributes {stable_mosaic.version = 11 : i64} {
  func.func @wav_layernorm_kernel(%arg0: i32, %arg1: memref<2xi32, #tpu.memory_space<smem>>, %arg2: memref<2x16384xf32, #tpu.memory_space<vmem>>, %arg3: memref<2x16384xf32, #tpu.memory_space<vmem>>) attributes {dimension_semantics = [#tpu.dimension_semantics<parallel>], iteration_bounds = array<i64: 1>, scalar_prefetch = 1 : i64, scratch_operands = 0 : i64, tpu.core_type = #tpu.core_type<tc>, window_params = [{transform_indices = @transform_0, window_bounds = array<i64: 2, 16384>}, {transform_indices = @transform_1, window_bounds = array<i64: 2, 16384>}]} {
    %c2_i32 = arith.constant 2 : i32
    %0 = arith.muli %arg0, %c2_i32 : i32
    %c0 = arith.constant 0 : index
    %c0_0 = arith.constant 0 : index
    %1 = vector.load %arg2[%c0, %c0_0] : memref<2x16384xf32, #tpu.memory_space<vmem>>, vector<2x16384xf32>
    %2 = tpu.iota {dimensions = array<i32: 0>} : vector<2x1xi32>
    %c0_i32 = arith.constant 0 : i32
    %3 = vector.broadcast %c0_i32 : i32 to vector<2x1xi32>
    %c0_i32_1 = arith.constant 0 : i32
    %4 = arith.addi %0, %c0_i32_1 : i32
    %c1_i32 = arith.constant 1 : i32
    %5 = arith.minsi %4, %c1_i32 : i32
    %6 = arith.index_cast %5 : i32 to index
    %7 = memref.load %arg1[%6] : memref<2xi32, #tpu.memory_space<smem>>
    %c0_i32_2 = arith.constant 0 : i32
    %8 = vector.broadcast %c0_i32_2 : i32 to vector<2x1xi32>
    %9 = arith.cmpi eq, %2, %8 : vector<2x1xi32>
    %10 = vector.broadcast %7 : i32 to vector<2x1xi32>
    %11 = arith.select %9, %10, %3 : vector<2x1xi1>, vector<2x1xi32>
    %c1_i32_3 = arith.constant 1 : i32
    %12 = arith.addi %0, %c1_i32_3 : i32
    %c1_i32_4 = arith.constant 1 : i32
    %13 = arith.minsi %12, %c1_i32_4 : i32
    %14 = arith.index_cast %13 : i32 to index
    %15 = memref.load %arg1[%14] : memref<2xi32, #tpu.memory_space<smem>>
    %c1_i32_5 = arith.constant 1 : i32
    %16 = vector.broadcast %c1_i32_5 : i32 to vector<2x1xi32>
    %17 = arith.cmpi eq, %2, %16 : vector<2x1xi32>
    %18 = vector.broadcast %15 : i32 to vector<2x1xi32>
    %19 = arith.select %17, %18, %11 : vector<2x1xi1>, vector<2x1xi32>
    %c1_i32_6 = arith.constant 1 : i32
    %20 = vector.broadcast %c1_i32_6 : i32 to vector<2x1xi32>
    %21 = arith.maxsi %19, %20 : vector<2x1xi32>
    %22 = arith.sitofp %21 : vector<2x1xi32> to vector<2x1xf32>
    %23 = tpu.iota {dimensions = array<i32: 1>} : vector<2x16384xi32>
    %24 = vector.broadcast %19 : vector<2x1xi32> to vector<2x16384xi32>
    %25 = arith.cmpi slt, %23, %24 : vector<2x16384xi32>
    %cst = arith.constant 0.000000e+00 : f32
    %26 = vector.broadcast %cst : f32 to vector<2x16384xf32>
    %27 = arith.select %25, %1, %26 : vector<2x16384xi1>, vector<2x16384xf32>
    %cst_7 = arith.constant dense<0.000000e+00> : vector<2xf32>
    %28 = vector.multi_reduction <add>, %27, %cst_7 [1] : vector<2x16384xf32> to vector<2xf32>
    %29 = vector.shape_cast %28 : vector<2xf32> to vector<2x1xf32>
    %30 = arith.divf %29, %22 : vector<2x1xf32>
    %31 = vector.broadcast %30 : vector<2x1xf32> to vector<2x16384xf32>
    %32 = arith.subf %1, %31 : vector<2x16384xf32>
    %cst_8 = arith.constant 0.000000e+00 : f32
    %33 = vector.broadcast %cst_8 : f32 to vector<2x16384xf32>
    %34 = arith.select %25, %32, %33 : vector<2x16384xi1>, vector<2x16384xf32>
    %35 = arith.mulf %34, %34 : vector<2x16384xf32>
    %cst_9 = arith.constant dense<0.000000e+00> : vector<2xf32>
    %36 = vector.multi_reduction <add>, %35, %cst_9 [1] : vector<2x16384xf32> to vector<2xf32>
    %37 = vector.shape_cast %36 : vector<2xf32> to vector<2x1xf32>
    %38 = arith.divf %37, %22 : vector<2x1xf32>
    %cst_10 = arith.constant 9.99999974E-6 : f32
    %39 = vector.broadcast %cst_10 : f32 to vector<2x1xf32>
    %40 = arith.addf %38, %39 : vector<2x1xf32>
    %41 = math.rsqrt %40 : vector<2x1xf32>
    %42 = vector.broadcast %30 : vector<2x1xf32> to vector<2x16384xf32>
    %43 = arith.subf %1, %42 : vector<2x16384xf32>
    %44 = vector.broadcast %41 : vector<2x1xf32> to vector<2x16384xf32>
    %45 = arith.mulf %43, %44 : vector<2x16384xf32>
    %cst_11 = arith.constant 0.000000e+00 : f32
    %46 = vector.broadcast %cst_11 : f32 to vector<2x16384xf32>
    %47 = arith.select %25, %45, %46 : vector<2x16384xi1>, vector<2x16384xf32>
    %c0_12 = arith.constant 0 : index
    %c0_13 = arith.constant 0 : index
    %48 = vector.load %arg3[%c0_12, %c0_13] : memref<2x16384xf32, #tpu.memory_space<vmem>>, vector<2x16384xf32>
    tpu.vector_store %arg3[%c0_12, %c0_13], %47 {strides = array<i32>} : memref<2x16384xf32, #tpu.memory_space<vmem>>, vector<2x16384xf32>,
    return
  }
  func.func @transform_0(%arg0: i32, %arg1: memref<2xi32, #tpu.memory_space<smem>>) -> (i32, i32) {
    %c0_i32 = arith.constant 0 : i32
    %c0_i32_0 = arith.constant 0 : i32
    return %arg0, %c0_i32 : i32, i32
  }
  func.func @transform_1(%arg0: i32, %arg1: memref<2xi32, #tpu.memory_space<smem>>) -> (i32, i32) {
    %c0_i32 = arith.constant 0 : i32
    %c0_i32_0 = arith.constant 0 : i32
    return %arg0, %c0_i32 : i32, i32
  }
}

</mosaic_0001>

<bundles_post_ra>
// kernel: tpu_custom_call.1
= control target key start
LH: loop header
LB: loop body
LE: loop exit
PB: predicated region body
PF: predicated region fallthrough
CT: control target
= control target key end

     0   :  { %s8071_s0 = inlined_call_operand.hbm [shape: s32[2], index: 0, kind: input, shape index: {}]   ;;  %s8072_s1 = inlined_call_operand.hbm [shape: f32[2,16384], index: 1, kind: input, shape index: {}]   ;;  %s8073_s2 = inlined_call_operand.hbm [shape: f32[2,16384], index: 2, kind: output, shape index: {}]  }
   0x1   :  { %s4385_s11 = scalar_lea.hbm %s8071_s0, 16 }
   0x2   :  { %p4386_p0 = scmp.ne.s32.totalorder %s8071_s0, %s4385_s11  ;;  %p4389_p1 = scmp.lt.u32.totalorder %s4385_s11, %s8071_s0 }
   0x4   :  { %p4391_p2 = pnand %p4389_p1, %p4386_p0 }
   0x6   :  { %4394 = shalt.err (!%p4391_p2)  }
   0x7   :  { %s4445_s16 = smov [#allocation3]  }
   0x8   :  { %8 = dma.hbm_to_smem %s8071_s0, 16, %s4445_s16, [#allocation2] }
   0x9   :  { %4439 = dma.done.wait [#allocation2], 16 }
   0xa   :  { %4440 = vsyncadd [#allocation2], 4294967280 }
   0xb   :  { %10 = sfence }
   0xc   :  { %11 = vsyncpa [#allocation5], 0 }
   0xd   :  { %12 = vsyncpa [#allocation6], 0  ;;  %s4446_s19 = smov [#allocation4]   ;;  %s4395_s23 = scalar_lea.hbm %s8072_s1, 4096 }
   0xe   :  { %s19_s20 = sshll.u32 %s4446_s19, 4  ;;  %p4396_p3 = scmp.ne.s32.totalorder %s8072_s1, %s4395_s23  ;;  %s20_s20 = int_to_ptr.vmem [resolvable:$true] %s19_s20 }
   0xf   :  { %p4399_p4 = scmp.lt.u32.totalorder %s4395_s23, %s8072_s1 }
  0x11   :  { %p4401_p5 = pnand %p4399_p4, %p4396_p3 }
  0x13   :  { %4404 = shalt.err (!%p4401_p5)
}
  0x14   :  { %s4405_s0 = scalar_lea.vmem %s20_s20, 4096  ;;  %p4410_p7 = scmp.lt.s32.totalorder %s20_s20, %s20_s20 }
  0x15   :  { %p4406_p6 = scmp.ne.s32.totalorder %s20_s20, %s4405_s0  ;;  %p4411_p8 = scmp.lt.s32.totalorder %s4405_s0, %s4405_s0 }
  0x17   :  { %p4412_p9 = por %p4411_p8, %p4410_p7 }
  0x19   :  { %p4413_p10 = pnand %p4412_p9, %p4406_p6 }
  0x1b   :  { %4416 = shalt.err (!%p4413_p10)
}
  0x1c   :  { %22 = dma.hbm_to_vmem [thread:$0]  %s8072_s1, 4096, %s20_s20, [#allocation5]  }
  0x1d   :  { %4441 = dma.done.wait [#allocation5], 4096  }
  0x1e   :  { %4442 = vsyncadd [#allocation5], 4294963200  ;;  %v59_v0 = vlaneseq  ;;  %s63_s30 = sld [smem:[#allocation3]]  ;;  %v4447_v1 = vmov 1983009808   ;;  %s4311_s3 = sld [smem:[#allocation3 + $0x1]] }
  0x1f   :  { %v368_v2 = vunpack.c.l.s4 %v4447_v1  ;;  %v27_v7 = vld [vmem:[#allocation4] sm:$0xff]  ;;  %v28_v17 = vld [vmem:[#allocation4 + $0x8] sm:$0xff]  ;;  %vm1166_vm6 = vcmask 1041408   ;;  %v29_v32 = vld [vmem:[#allocation4 + $0x10] sm:$0xff]  ;;  %s4449_s1 = smov [#allocation7]  }
  0x20   :  { %v4489_v3 = vshrl.u32 %v59_v0, 7  ;;  %v4495_v8 = vand.u32 127, %v59_v0  ;;  %v366_v9 = vcombine.high %v27_v7, %v27_v7  ;;  %v383_v22 = vcombine.high %v28_v17, %v28_v17  ;;  %v30_v56 = vld [vmem:[#allocation4 + $0x18] sm:$0xff]  ;;  %s4302_s4 = sshll.u32 %s4449_s1, 4  ;;  %s4303_s4 = int_to_ptr.vmem [resolvable:$true] %s4302_s4 }
  0x21   :  { %v369_v4 = vunpack.c.0.s8 %v368_v2  ;;  %v400_v40 = vcombine.high %v29_v32, %v29_v32  ;;  %v417_v62 = vcombine.high %v30_v56, %v30_v56  ;;  %s4417_s5 = scalar_lea.vmem %s4303_s4, 4096  ;;  %p4422_p12 = scmp.lt.s32.totalorder %s4303_s4, %s4303_s4 }
  0x22   :  { %vm64_vm0 = vcmp.eq.s32.totalorder %v4489_v3, 0  ;;  %8434 = vst [vmem:[#allocation12_spill] sm:$0xff] %v4495_v8  ;;  %vm71_vm1 = vcmp.eq.s32.totalorder %v4489_v3, 1  ;;  %v4500_v13 = vadd.s32 128, %v4495_v8  ;;  %v4505_v15 = vadd.s32 256, %v4495_v8  ;;  %p4418_p11 = scmp.ne.s32.totalorder %s4303_s4, %s4417_s5  ;;  %p4423_p13 = scmp.lt.s32.totalorder %s4417_s5, %s4417_s5 }
  0x23   :  { %v4493_v6 = vsub.s32 %v369_v4, %v4489_v3  ;;  %v4509_v18 = vadd.s32 384, %v4495_v8  ;;  %v4512_v20 = vadd.s32 512, %v4495_v8  ;;  %v4522_v24 = vadd.s32 640, %v4495_v8 }
  0x24   :  { %v65_v5 = vstv %s63_s30  ;;  %v72_v11 = vstv %s4311_s3  ;;  %8435 = vst [vmem:[#allocation13_spill] sm:$0xff] %v4500_v13  ;;  %8436 = vst [vmem:[#allocation14_spill] sm:$0xff] %v4505_v15  ;;  %v4533_v27 = vadd.s32 768, %v4495_v8  ;;  %v4545_v33 = vadd.s32 896, %v4495_v8  ;;  %p4424_p0 = por %p4423_p13, %p4422_p12 }
  0x25   :  { %8433 = vst [vmem:[#allocation11_spill] sm:$0xff] %v4493_v6  ;;  %v66_v10 = vsel %vm64_vm0, %v65_v5, 0  ;;  %v373_v12 = vrot.slane %v27_v7, %v4493_v6  ;;  %v380_v16 = vrot.slane %v366_v9, %v4493_v6  ;;  %8437 = vst [vmem:[#allocation15_spill] sm:$0xff] %v4509_v18  ;;  %v390_v23 = vrot.slane %v28_v17, %v4493_v6 }
  0x26   :  { %v4502_v14 = vsel %vm71_vm1, %v72_v11, %v66_v10  ;;  %8438 = vst [vmem:[#allocation16_spill] sm:$0xff] %v4512_v20  ;;  %8439 = vst [vmem:[#allocation17_spill] sm:$0xff] %v4522_v24  ;;  %v397_v29 = vrot.slane %v383_v22, %v4493_v6  ;;  %v4556_v39 = vadd.s32 1024, %v4495_v8  ;;  %v407_v43 = vrot.slane %v29_v32, %v4493_v6  ;;  %v31_v22 = vld [vmem:[#allocation4 + $0x20] sm:$0xff]  ;;  %p4425_p1 = pnand %p4424_p0, %p4418_p11 }
  0x27   :  { %v381_v19 = vcombine.high %v373_v12, %v373_v12  ;;  %vm206_vm2 = vcmp.lt.s32.totalorder %v4495_v8, %v4502_v14  ;;  %vm207_vm3 = vcmp.lt.s32.totalorder %v4500_v13, %v4502_v14  ;;  %vm208_vm4 = vcmp.lt.s32.totalorder %v4505_v15, %v4502_v14 }
  0x28   :  { %v382_v21 = vcombine.high %v380_v16, %v380_v16  ;;  %vm209_vm5 = vcmp.lt.s32.totalorder %v4509_v18, %v4502_v14  ;;  %v1038_v25 = vsel %vm206_vm2, %v373_v12, 0.0  ;;  %vm210_vm7 = vcmp.lt.s32.totalorder %v4512_v20, %v4502_v14 }
  0x29   :  { %v1039_v26 = vsel %vm207_vm3, %v381_v19, 0.0  ;;  %v1040_v28 = vsel %vm208_vm4, %v380_v16, 0.0  ;;  %v398_v30 = vcombine.high %v390_v23, %v390_v23  ;;  %vm211_vm8 = vcmp.lt.s32.totalorder %v4522_v24, %v4502_v14 }
  0x2a   :  { %v1041_v31 = vsel %vm209_vm5, %v382_v21, 0.0  ;;  %v1167_v34 = vsel %vm1166_vm6, %v1038_v25, 0.0  ;;  %v1168_v35 = vsel %vm1166_vm6, %v1039_v26, 0.0  ;;  %v1042_v36 = vsel %vm210_vm7, %v390_v23, 0.0 }
  0x2b   :  { %v1169_v37 = vadd.f32 %v1168_v35, %v1167_v34  ;;  %v1170_v38 = vsel %vm1166_vm6, %v1040_v28, 0.0  ;;  %vm212_vm9 = vcmp.lt.s32.totalorder %v4533_v27, %v4502_v14  ;;  %v1172_v41 = vsel %vm1166_vm6, %v1041_v31, 0.0 }
  0x2c   :  { %v399_v42 = vcombine.high %v397_v29, %v397_v29  ;;  %v1043_v44 = vsel %vm211_vm8, %v398_v30, 0.0  ;;  %v4566_v46 = vadd.s32 1152, %v4495_v8  ;;  %vm213_vm10 = vcmp.lt.s32.totalorder %v4545_v33, %v4502_v14 }
  0x2d   :  { %v1171_v45 = vadd.f32 %v1170_v38, %v1169_v37  ;;  %v1174_v47 = vsel %vm1166_vm6, %v1042_v36, 0.0  ;;  %v1044_v48 = vsel %vm212_vm9, %v397_v29, 0.0  ;;  %v4575_v50 = vadd.s32 1280, %v4495_v8 }
  0x2e   :  { %8440 = vst [vmem:[#allocation18_spill] sm:$0xff] %v4566_v46  ;;  %vm214_vm11 = vcmp.lt.s32.totalorder %v4556_v39, %v4502_v14  ;;  %v1176_v51 = vsel %vm1166_vm6, %v1043_v44, 0.0  ;;  %v414_v52 = vrot.slane %v400_v40, %v4493_v6  ;;  %v415_v53 = vcombine.high %v407_v43, %v407_v43 }
  0x2f   :  { %v1173_v49 = vadd.f32 %v1172_v41, %v1171_v45  ;;  %v1045_v54 = vsel %vm213_vm10, %v399_v42, 0.0  ;;  %v4585_v57 = vadd.s32 1408, %v4495_v8  ;;  %vm8398_vm12 = vcmp.lt.s32.totalorder %v4566_v46, %v4502_v14 }
  0x30   :  { %v1178_v58 = vsel %vm1166_vm6, %v1044_v48, 0.0  ;;  %v1046_v59 = vsel %vm214_vm11, %v407_v43, 0.0  ;;  %v4594_v61 = vadd.s32 1536, %v4495_v8  ;;  %vm8368_vm13 = vcmp.lt.s32.totalorder %v4575_v50, %v4502_v14 }
  0x31   :  { %v1175_v55 = vadd.f32 %v1174_v47, %v1173_v49  ;;  %v1180_v63 = vsel %vm1166_vm6, %v1045_v54, 0.0  ;;  %v416_v0 = vcombine.high %v414_v52, %v414_v52  ;;  %v424_v1 = vrot.slane %v30_v56, %v4493_v6  ;;  %v32_v49 = vld [vmem:[#allocation4 + $0x28] sm:$0xff] }
  0x32   :  { %8441 = vst [vmem:[#allocation19_spill] sm:$0xff] %v4594_v61  ;;  %v1047_v2 = vsel %vm8398_vm12, %v415_v53, 0.0  ;;  %v4604_v5 = vadd.s32 1664, %v4495_v8  ;;  %vm8349_vm14 = vcmp.lt.s32.totalorder %v4585_v57, %v4502_v14  ;;  %v1182_v7 = vsel %vm1166_vm6, %v1046_v59, 0.0 }
  0x33   :  { %v1177_v60 = vadd.f32 %v1176_v51, %v1175_v55  ;;  %v1048_v9 = vsel %vm8368_vm13, %v414_v52, 0.0  ;;  %v4613_v11 = vadd.s32 1792, %v4495_v8  ;;  %vm8074_vm15 = vcmp.lt.s32.totalorder %v4594_v61, %v4502_v14 }
  0x34   :  { %8442 = vst [vmem:[#allocation20_spill] sm:$0xff] %v4604_v5  ;;  %v1184_v12 = vsel %vm1166_vm6, %v1047_v2, 0.0  ;;  %v431_v16 = vrot.slane %v417_v62, %v4493_v6  ;;  %v432_v17 = vcombine.high %v424_v1, %v424_v1  ;;  %v1049_v19 = vsel %vm8349_vm14, %v416_v0, 0.0 }
  0x35   :  { %v1179_v4 = vadd.f32 %v1178_v58, %v1177_v60  ;;  %8443 = vst [vmem:[#allocation21_spill] sm:$0xff] %v4613_v11  ;;  %v4623_v23 = vadd.s32 1920, %v4495_v8  ;;  %vm8075_vm0 = vcmp.lt.s32.totalorder %v4604_v5, %v4502_v14  ;;  %v1186_v25 = vsel %vm1166_vm6, %v1048_v9, 0.0  ;;  %v8789_v27 = vld [vmem:[#allocation18_spill] sm:$0xff] }
  0x36   :  { %v1050_v26 = vsel %vm8074_vm15, %v424_v1, 0.0  ;;  %v4632_v29 = vadd.s32 2048, %v4495_v8  ;;  %vm8076_vm1 = vcmp.lt.s32.totalorder %v4613_v11, %v4502_v14  ;;  %v434_v30 = vcombine.high %v31_v22, %v31_v22 }
  0x37   :  { %v1181_v10 = vadd.f32 %v1180_v63, %v1179_v4  ;;  %8444 = vst [vmem:[#allocation22_spill] sm:$0xff] %v4623_v23  ;;  %v1188_v31 = vsel %vm1166_vm6, %v1049_v19, 0.0  ;;  %v433_v32 = vcombine.high %v431_v16, %v431_v16  ;;  %v441_v34 = vrot.slane %v31_v22, %v4493_v6  ;;  %v33_v19 = vld [vmem:[#allocation4 + $0x30] sm:$0xff] }
  0x38   :  { %8445 = vst [vmem:[#allocation23_spill] sm:$0xff] %v4632_v29  ;;  %v1051_v35 = vsel %vm8075_vm0, %v432_v17, 0.0  ;;  %v4642_v37 = vadd.s32 2176, %v4495_v8  ;;  %vm8077_vm15 = vcmp.lt.s32.totalorder %v4623_v23, %v4502_v14  ;;  %v1190_v38 = vsel %vm1166_vm6, %v1050_v26, 0.0 }
  0x39   :  { %v1183_v21 = vadd.f32 %v1182_v7, %v1181_v10  ;;  %v1052_v40 = vsel %vm8076_vm1, %v431_v16, 0.0  ;;  %v4651_v42 = vadd.s32 2304, %v4495_v8  ;;  %vm8078_vm0 = vcmp.lt.s32.totalorder %v4632_v29, %v4502_v14 }
  0x3a   :  { %8446 = vst [vmem:[#allocation24_spill] sm:$0xff] %v4642_v37  ;;  %v1192_v43 = vsel %vm1166_vm6, %v1051_v35, 0.0  ;;  %v448_v44 = vrot.slane %v434_v30, %v4493_v6  ;;  %v449_v45 = vcombine.high %v441_v34, %v441_v34  ;;  %v1053_v47 = vsel %vm8077_vm15, %v433_v32, 0.0 }
  0x3b   :  { %v1185_v28 = vadd.f32 %v1184_v12, %v1183_v21  ;;  %8447 = vst [vmem:[#allocation25_spill] sm:$0xff] %v4651_v42  ;;  %v4661_v51 = vadd.s32 2432, %v4495_v8  ;;  %vm8079_vm1 = vcmp.lt.s32.totalorder %v4642_v37, %v4502_v14  ;;  %v1194_v52 = vsel %vm1166_vm6, %v1052_v40, 0.0 }
  0x3c   :  { %v1054_v53 = vsel %vm8078_vm0, %v441_v34, 0.0  ;;  %v4670_v55 = vadd.s32 2560, %v4495_v8  ;;  %vm8080_vm15 = vcmp.lt.s32.totalorder %v4651_v42, %v4502_v14  ;;  %v451_v56 = vcombine.high %v32_v49, %v32_v49 }
  0x3d   :  { %v1187_v36 = vadd.f32 %v1186_v25, %v1185_v28  ;;  %8448 = vst [vmem:[#allocation26_spill] sm:$0xff] %v4661_v51  ;;  %v1196_v58 = vsel %vm1166_vm6, %v1053_v47, 0.0  ;;  %v450_v59 = vcombine.high %v448_v44, %v448_v44  ;;  %v458_v60 = vrot.slane %v32_v49, %v4493_v6 }
  0x3e   :  { %8449 = vst [vmem:[#allocation27_spill] sm:$0xff] %v4670_v55  ;;  %v1055_v62 = vsel %vm8079_vm1, %v449_v45, 0.0  ;;  %v4680_v0 = vadd.s32 2688, %v4495_v8  ;;  %vm8081_vm0 = vcmp.lt.s32.totalorder %v4661_v51, %v4502_v14  ;;  %v1198_v1 = vsel %vm1166_vm6, %v1054_v53, 0.0  ;;  %v34_v53 = vld [vmem:[#allocation4 + $0x38] sm:$0xff] }
  0x3f   :  { %v1189_v41 = vadd.f32 %v1188_v31, %v1187_v36  ;;  %v1056_v2 = vsel %vm8080_vm15, %v448_v44, 0.0  ;;  %v4689_v7 = vadd.s32 2816, %v4495_v8  ;;  %vm8082_vm1 = vcmp.lt.s32.totalorder %v4670_v55, %v4502_v14 }
  0x40   :  { %8450 = vst [vmem:[#allocation28_spill] sm:$0xff] %v4680_v0  ;;  %v1200_v9 = vsel %vm1166_vm6, %v1055_v62, 0.0  ;;  %v465_v10 = vrot.slane %v451_v56, %v4493_v6  ;;  %v466_v12 = vcombine.high %v458_v60, %v458_v60  ;;  %v1057_v16 = vsel %vm8081_vm0, %v450_v59, 0.0 }
  0x41   :  { %v1191_v48 = vadd.f32 %v1190_v38, %v1189_v41  ;;  %8451 = vst [vmem:[#allocation29_spill] sm:$0xff] %v4689_v7  ;;  %v4699_v21 = vadd.s32 2944, %v4495_v8  ;;  %vm8083_vm15 = vcmp.lt.s32.totalorder %v4680_v0, %v4502_v14  ;;  %v1202_v22 = vsel %vm1166_vm6, %v1056_v2, 0.0 }
  0x42   :  { %v1058_v25 = vsel %vm8082_vm1, %v458_v60, 0.0  ;;  %v4708_v28 = vadd.s32 3072, %v4495_v8  ;;  %vm8084_vm0 = vcmp.lt.s32.totalorder %v4689_v7, %v4502_v14  ;;  %v468_v30 = vcombine.high %v33_v19, %v33_v19 }
  0x43   :  { %v1193_v54 = vadd.f32 %v1192_v43, %v1191_v48  ;;  %8452 = vst [vmem:[#allocation30_spill] sm:$0xff] %v4699_v21  ;;  %v1204_v31 = vsel %vm1166_vm6, %v1057_v16, 0.0  ;;  %v467_v32 = vcombine.high %v465_v10, %v465_v10  ;;  %v475_v34 = vrot.slane %v33_v19, %v4493_v6 }
  0x44   :  { %8453 = vst [vmem:[#allocation31_spill] sm:$0xff] %v4708_v28  ;;  %v1059_v35 = vsel %vm8083_vm15, %v466_v12, 0.0  ;;  %v4718_v38 = vadd.s32 3200, %v4495_v8  ;;  %vm8085_vm1 = vcmp.lt.s32.totalorder %v4699_v21, %v4502_v14  ;;  %v1206_v40 = vsel %vm1166_vm6, %v1058_v25, 0.0 }
  0x45   :  { %v1195_v63 = vadd.f32 %v1194_v52, %v1193_v54  ;;  %v1060_v41 = vsel %vm8084_vm0, %v465_v10, 0.0  ;;  %v4727_v44 = vadd.s32 3328, %v4495_v8  ;;  %vm8086_vm15 = vcmp.lt.s32.totalorder %v4708_v28, %v4502_v14 }
  0x46   :  { %8454 = vst [vmem:[#allocation32_spill] sm:$0xff] %v4718_v38  ;;  %v1208_v45 = vsel %vm1166_vm6, %v1059_v35, 0.0  ;;  %v482_v47 = vrot.slane %v468_v30, %v4493_v6  ;;  %v483_v48 = vcombine.high %v475_v34, %v475_v34  ;;  %v1061_v49 = vsel %vm8085_vm1, %v467_v32, 0.0  ;;  %v35_v32 = vld [vmem:[#allocation4 + $0x40] sm:$0xff] }
  0x47   :  { %v1197_v4 = vadd.f32 %v1196_v58, %v1195_v63  ;;  %8455 = vst [vmem:[#allocation33_spill] sm:$0xff] %v4727_v44  ;;  %v4737_v54 = vadd.s32 3456, %v4495_v8  ;;  %vm8087_vm0 = vcmp.lt.s32.totalorder %v4718_v38, %v4502_v14  ;;  %v1210_v56 = vsel %vm1166_vm6, %v1060_v41, 0.0 }
  0x48   :  { %v1062_v58 = vsel %vm8086_vm15, %v475_v34, 0.0  ;;  %v4746_v60 = vadd.s32 3584, %v4495_v8  ;;  %vm8088_vm1 = vcmp.lt.s32.totalorder %v4727_v44, %v4502_v14  ;;  %v485_v62 = vcombine.high %v34_v53, %v34_v53 }
  0x49   :  { %v1199_v17 = vadd.f32 %v1198_v1, %v1197_v4  ;;  %8456 = vst [vmem:[#allocation34_spill] sm:$0xff] %v4737_v54  ;;  %v1212_v63 = vsel %vm1166_vm6, %v1061_v49, 0.0  ;;  %v484_v1 = vcombine.high %v482_v47, %v482_v47  ;;  %v492_v2 = vrot.slane %v34_v53, %v4493_v6 }
  0x4a   :  { %8457 = vst [vmem:[#allocation35_spill] sm:$0xff] %v4746_v60  ;;  %v1063_v4 = vsel %vm8087_vm0, %v483_v48, 0.0  ;;  %v4756_v10 = vadd.s32 3712, %v4495_v8  ;;  %vm8089_vm15 = vcmp.lt.s32.totalorder %v4737_v54, %v4502_v14  ;;  %v1214_v12 = vsel %vm1166_vm6, %v1062_v58, 0.0 }
  0x4b   :  { %v1201_v26 = vadd.f32 %v1200_v9, %v1199_v17  ;;  %v1064_v16 = vsel %vm8088_vm1, %v482_v47, 0.0  ;;  %v4765_v19 = vadd.s32 3840, %v4495_v8  ;;  %vm8090_vm0 = vcmp.lt.s32.totalorder %v4746_v60, %v4502_v14 }
  0x4c   :  { %8458 = vst [vmem:[#allocation36_spill] sm:$0xff] %v4756_v10  ;;  %v499_v25 = vrot.slane %v485_v62, %v4493_v6  ;;  %v1065_v30 = vsel %vm8089_vm15, %v484_v1, 0.0  ;;  %v4775_v34 = vadd.s32 3968, %v4495_v8  ;;  %vm8091_vm1 = vcmp.lt.s32.totalorder %v4756_v10, %v4502_v14 }
  0x4d   :  { %v1203_v36 = vadd.f32 %v1202_v22, %v1201_v26  ;;  %8459 = vst [vmem:[#allocation37_spill] sm:$0xff] %v4765_v19  ;;  %v1216_v22 = vsel %vm1166_vm6, %v1063_v4, 0.0  ;;  %v500_v26 = vcombine.high %v492_v2, %v492_v2  ;;  %v1218_v35 = vsel %vm1166_vm6, %v1064_v16, 0.0 }
  0x4e   :  { %8460 = vst [vmem:[#allocation38_spill] sm:$0xff] %v4775_v34  ;;  %v4784_v41 = vadd.s32 4096, %v4495_v8  ;;  %vm8092_vm15 = vcmp.lt.s32.totalorder %v4765_v19, %v4502_v14  ;;  %v501_v47 = vcombine.high %v499_v25, %v499_v25  ;;  %v509_v48 = vrot.slane %v35_v32, %v4493_v6 }
  0x4f   :  { %v1205_v43 = vadd.f32 %v1204_v31, %v1203_v36  ;;  %v1066_v36 = vsel %vm8090_vm0, %v492_v2, 0.0  ;;  %v1067_v49 = vsel %vm8091_vm1, %v500_v26, 0.0  ;;  %v4794_v53 = vadd.s32 4224, %v4495_v8 }
  0x50   :  { %8461 = vst [vmem:[#allocation39_spill] sm:$0xff] %v4784_v41  ;;  %vm8093_vm0 = vcmp.lt.s32.totalorder %v4775_v34, %v4502_v14  ;;  %v1068_v58 = vsel %vm8092_vm15, %v499_v25, 0.0  ;;  %v4803_v62 = vadd.s32 4352, %v4495_v8  ;;  %vm8094_vm1 = vcmp.lt.s32.totalorder %v4784_v41, %v4502_v14 }
  0x51   :  { %v1207_v52 = vadd.f32 %v1206_v40, %v1205_v43  ;;  %v502_v43 = vcombine.high %v35_v32, %v35_v32  ;;  %8462 = vst [vmem:[#allocation40_spill] sm:$0xff] %v4794_v53  ;;  %v517_v2 = vcombine.high %v509_v48, %v509_v48  ;;  %v1069_v4 = vsel %vm8093_vm0, %v501_v47, 0.0 }
  0x52   :  { %8463 = vst [vmem:[#allocation41_spill] sm:$0xff] %v4803_v62  ;;  %v4813_v16 = vadd.s32 4480, %v4495_v8  ;;  %vm8095_vm15 = vcmp.lt.s32.totalorder %v4794_v53, %v4502_v14  ;;  %v4822_v26 = vadd.s32 4608, %v4495_v8  ;;  %vm8096_vm0 = vcmp.lt.s32.totalorder %v4803_v62, %v4502_v14 }
  0x53   :  { %v1209_v59 = vadd.f32 %v1208_v45, %v1207_v52  ;;  %v1220_v45 = vsel %vm1166_vm6, %v1065_v30, 0.0  ;;  %v516_v1 = vrot.slane %v502_v43, %v4493_v6  ;;  %v4832_v43 = vadd.s32 4736, %v4495_v8 }
  0x54   :  { %8464 = vst [vmem:[#allocation42_spill] sm:$0xff] %v4813_v16  ;;  %8465 = vst [vmem:[#allocation43_spill] sm:$0xff] %v4822_v26 }
  0x55   :  { %v1211_v9 = vadd.f32 %v1210_v56, %v1209_v59  ;;  %v1222_v56 = vsel %vm1166_vm6, %v1066_v36, 0.0  ;;  %v518_v32 = vcombine.high %v516_v1, %v516_v1  ;;  %v1071_v36 = vsel %vm8095_vm15, %v517_v2, 0.0  ;;  %8466 = vst [vmem:[#allocation44_spill] sm:$0xff] %v4832_v43  ;;  %v37_v2 = vld [vmem:[#allocation4 + $0x50] sm:$0xff] }
  0x56   :  { %v1072_v47 = vsel %vm8096_vm0, %v516_v1, 0.0  ;;  %vm8098_vm15 = vcmp.lt.s32.totalorder %v4822_v26, %v4502_v14  ;;  %v4851_v1 = vadd.s32 4992, %v4495_v8  ;;  %vm8099_vm0 = vcmp.lt.s32.totalorder %v4832_v43, %v4502_v14 }
  0x57   :  { %v1213_v17 = vadd.f32 %v1212_v63, %v1211_v9  ;;  %v1224_v63 = vsel %vm1166_vm6, %v1067_v49, 0.0  ;;  %v4841_v49 = vadd.s32 4864, %v4495_v8 }
  0x58   :  { %8468 = vst [vmem:[#allocation46_spill] sm:$0xff] %v4851_v1 }
  0x59   :  { %v1215_v31 = vadd.f32 %v1214_v12, %v1213_v17  ;;  %v36_v12 = vld [vmem:[#allocation4 + $0x48] sm:$0xff]  ;;  %v1226_v17 = vsel %vm1166_vm6, %v1068_v58, 0.0  ;;  %8467 = vst [vmem:[#allocation45_spill] sm:$0xff] %v4841_v49 }
  0x5a   :  { %v519_v30 = vcombine.high %v36_v12, %v36_v12 }
  0x5b   :  { %v1217_v40 = vadd.f32 %v1216_v22, %v1215_v31  ;;  %v1070_v22 = vsel %vm8094_vm1, %v509_v48, 0.0  ;;  %v1228_v31 = vsel %vm1166_vm6, %v1069_v4, 0.0  ;;  %vm8097_vm1 = vcmp.lt.s32.totalorder %v4813_v16, %v4502_v14 }
  0x5c   :  { %v1234_v4 = vsel %vm1166_vm6, %v1072_v47, 0.0 }
  0x5d   :  { %v1219_v52 = vadd.f32 %v1218_v35, %v1217_v40  ;;  %v526_v35 = vrot.slane %v36_v12, %v4493_v6 }
  0x5f   :  { %v1221_v59 = vadd.f32 %v1220_v45, %v1219_v52  ;;  %v1230_v45 = vsel %vm1166_vm6, %v1070_v22, 0.0  ;;  %v1232_v52 = vsel %vm1166_vm6, %v1071_v36, 0.0  ;;  %v534_v58 = vcombine.high %v526_v35, %v526_v35 }
  0x60   :  { %v536_v22 = vcombine.high %v37_v2, %v37_v2 }
  0x61   :  { %v1223_v9 = vadd.f32 %v1222_v56, %v1221_v59  ;;  %v533_v56 = vrot.slane %v519_v30, %v4493_v6  ;;  %v1073_v59 = vsel %vm8097_vm1, %v518_v32, 0.0  ;;  %vm8100_vm1 = vcmp.lt.s32.totalorder %v4841_v49, %v4502_v14 }
  0x62   :  { %v1075_v32 = vsel %vm8099_vm0, %v534_v58, 0.0  ;;  %v550_v58 = vrot.slane %v536_v22, %v4493_v6 }
  0x63   :  { %v1225_v25 = vadd.f32 %v1224_v63, %v1223_v9  ;;  %v1074_v9 = vsel %vm8098_vm15, %v526_v35, 0.0  ;;  %v535_v30 = vcombine.high %v533_v56, %v533_v56  ;;  %v4870_v35 = vadd.s32 5248, %v4495_v8 }
  0x64   :  { %vm8101_vm15 = vcmp.lt.s32.totalorder %v4851_v1, %v4502_v14 }
  0x65   :  { %v1227_v40 = vadd.f32 %v1226_v17, %v1225_v25  ;;  %v4860_v17 = vadd.s32 5120, %v4495_v8  ;;  %v1236_v25 = vsel %vm1166_vm6, %v1073_v59, 0.0  ;;  %8470 = vst [vmem:[#allocation48_spill] sm:$0xff] %v4870_v35 }
  0x67   :  { %v1229_v48 = vadd.f32 %v1228_v31, %v1227_v40  ;;  %8469 = vst [vmem:[#allocation47_spill] sm:$0xff] %v4860_v17  ;;  %v543_v31 = vrot.slane %v37_v2, %v4493_v6  ;;  %v1238_v40 = vsel %vm1166_vm6, %v1074_v9, 0.0  ;;  %vm8102_vm0 = vcmp.lt.s32.totalorder %v4860_v17, %v4502_v14  ;;  %v39_v17 = vld [vmem:[#allocation4 + $0x60] sm:$0xff] }
  0x69   :  { %v1231_v63 = vadd.f32 %v1230_v45, %v1229_v48  ;;  %v1076_v45 = vsel %vm8100_vm1, %v533_v56, 0.0  ;;  %v4879_v48 = vadd.s32 5376, %v4495_v8  ;;  %v551_v59 = vcombine.high %v543_v31, %v543_v31 }
  0x6a   :  { %v4889_v56 = vadd.s32 5504, %v4495_v8  ;;  %vm8103_vm1 = vcmp.lt.s32.totalorder %v4870_v35, %v4502_v14  ;;  %v1242_v9 = vsel %vm1166_vm6, %v1076_v45, 0.0 }
  0x6b   :  { %v1233_v12 = vadd.f32 %v1232_v52, %v1231_v63  ;;  %8471 = vst [vmem:[#allocation49_spill] sm:$0xff] %v4879_v48  ;;  %v1240_v52 = vsel %vm1166_vm6, %v1075_v32, 0.0  ;;  %v1077_v63 = vsel %vm8101_vm15, %v535_v30, 0.0  ;;  %vm8108_vm15 = vcmp.lt.s32.totalorder %v4879_v48, %v4502_v14 }
  0x6c   :  { %8472 = vst [vmem:[#allocation50_spill] sm:$0xff] %v4889_v56  ;;  %v1244_v32 = vsel %vm1166_vm6, %v1077_v63, 0.0  ;;  %v1079_v45 = vsel %vm8103_vm1, %v551_v59, 0.0  ;;  %v1080_v63 = vsel %vm8108_vm15, %v550_v58, 0.0 }
  0x6d   :  { %v1235_v36 = vadd.f32 %v1234_v4, %v1233_v12  ;;  %v38_v4 = vld [vmem:[#allocation4 + $0x58] sm:$0xff]  ;;  %v1078_v12 = vsel %vm8102_vm0, %v543_v31, 0.0  ;;  %v4908_v31 = vadd.s32 5760, %v4495_v8  ;;  %vm8109_vm0 = vcmp.lt.s32.totalorder %v4889_v56, %v4502_v14 }
  0x6e   :  { %v553_v30 = vcombine.high %v38_v4, %v38_v4  ;;  %v1248_v59 = vsel %vm1166_vm6, %v1079_v45, 0.0  ;;  %v577_v56 = vrot.slane %v39_v17, %v4493_v6 }
  0x6f   :  { %v1237_v47 = vadd.f32 %v1236_v25, %v1235_v36  ;;  %v4898_v25 = vadd.s32 5632, %v4495_v8  ;;  %v552_v36 = vcombine.high %v550_v58, %v550_v58  ;;  %8474 = vst [vmem:[#allocation52_spill] sm:$0xff] %v4908_v31  ;;  %v4927_v58 = vadd.s32 6016, %v4495_v8 }
  0x70   :  { %vm8115_vm15 = vcmp.lt.s32.totalorder %v4908_v31, %v4502_v14 }
  0x71   :  { %v1239_v2 = vadd.f32 %v1238_v40, %v1237_v47  ;;  %8473 = vst [vmem:[#allocation51_spill] sm:$0xff] %v4898_v25  ;;  %v560_v40 = vrot.slane %v38_v4, %v4493_v6  ;;  %v4917_v4 = vadd.s32 5888, %v4495_v8  ;;  %vm8114_vm1 = vcmp.lt.s32.totalorder %v4898_v25, %v4502_v14  ;;  %8476 = vst [vmem:[#allocation54_spill] sm:$0xff] %v4927_v58  ;;  %v40_v25 = vld [vmem:[#allocation4 + $0x68] sm:$0xff] }
  0x73   :  { %v1241_v22 = vadd.f32 %v1240_v52, %v1239_v2  ;;  %v1246_v52 = vsel %vm1166_vm6, %v1078_v12, 0.0  ;;  %8475 = vst [vmem:[#allocation53_spill] sm:$0xff] %v4917_v4  ;;  %v1081_v12 = vsel %vm8109_vm0, %v552_v36, 0.0  ;;  %v1082_v45 = vsel %vm8114_vm1, %v560_v40, 0.0 }
  0x74   :  { %vm8120_vm0 = vcmp.lt.s32.totalorder %v4917_v4, %v4502_v14  ;;  %v570_v36 = vcombine.high %v39_v17, %v39_v17  ;;  %vm8121_vm1 = vcmp.lt.s32.totalorder %v4927_v58, %v4502_v14  ;;  %v4955_v17 = vadd.s32 6400, %v4495_v8 }
  0x75   :  { %v1243_v47 = vadd.f32 %v1242_v9, %v1241_v22  ;;  %v567_v9 = vrot.slane %v553_v30, %v4493_v6  ;;  %v568_v22 = vcombine.high %v560_v40, %v560_v40  ;;  %v4946_v40 = vadd.s32 6272, %v4495_v8 }
  0x76   :  { %8479 = vst [vmem:[#allocation57_spill] sm:$0xff] %v4955_v17  ;;  %v594_v58 = vrot.slane %v40_v25, %v4493_v6 }
  0x77   :  { %v1245_v2 = vadd.f32 %v1244_v32, %v1243_v47  ;;  %v1250_v32 = vsel %vm1166_vm6, %v1080_v63, 0.0  ;;  %v4936_v47 = vadd.s32 6144, %v4495_v8  ;;  %v1083_v63 = vsel %vm8115_vm15, %v568_v22, 0.0  ;;  %8478 = vst [vmem:[#allocation56_spill] sm:$0xff] %v4946_v40 }
  0x78   :  { %v1256_v22 = vsel %vm1166_vm6, %v1083_v63, 0.0  ;;  %v4974_v63 = vadd.s32 6656, %v4495_v8 }
  0x79   :  { %v1247_v35 = vadd.f32 %v1246_v52, %v1245_v2  ;;  %8477 = vst [vmem:[#allocation55_spill] sm:$0xff] %v4936_v47  ;;  %v1252_v52 = vsel %vm1166_vm6, %v1081_v12, 0.0  ;;  %v569_v2 = vcombine.high %v567_v9, %v567_v9  ;;  %vm8126_vm15 = vcmp.lt.s32.totalorder %v4936_v47, %v4502_v14  ;;  %v41_v47 = vld [vmem:[#allocation4 + $0x70] sm:$0xff] }
  0x7a   :  { %8481 = vst [vmem:[#allocation59_spill] sm:$0xff] %v4974_v63 }
  0x7b   :  { %v1249_v30 = vadd.f32 %v1248_v59, %v1247_v35  ;;  %v1254_v35 = vsel %vm1166_vm6, %v1082_v45, 0.0  ;;  %v1084_v59 = vsel %vm8120_vm0, %v567_v9, 0.0  ;;  %v1085_v45 = vsel %vm8121_vm1, %v569_v2, 0.0 }
  0x7c   :  { %v4965_v9 = vadd.s32 6528, %v4495_v8  ;;  %vm8127_vm0 = vcmp.lt.s32.totalorder %v4946_v40, %v4502_v14  ;;  %vm8132_vm1 = vcmp.lt.s32.totalorder %v4955_v17, %v4502_v14  ;;  %v587_v2 = vcombine.high %v40_v25, %v40_v25 }
  0x7d   :  { %v1251_v48 = vadd.f32 %v1250_v32, %v1249_v30  ;;  %v584_v32 = vrot.slane %v570_v36, %v4493_v6  ;;  %v585_v30 = vcombine.high %v577_v56, %v577_v56  ;;  %v4993_v25 = vadd.s32 6912, %v4495_v8 }
  0x7e   :  { %8480 = vst [vmem:[#allocation58_spill] sm:$0xff] %v4965_v9 }
  0x7f   :  { %v1253_v12 = vadd.f32 %v1252_v52, %v1251_v48  ;;  %v1258_v48 = vsel %vm1166_vm6, %v1084_v59, 0.0  ;;  %v1086_v52 = vsel %vm8126_vm15, %v577_v56, 0.0  ;;  %v1087_v59 = vsel %vm8127_vm0, %v585_v30, 0.0  ;;  %8483 = vst [vmem:[#allocation61_spill] sm:$0xff] %v4993_v25 }
  0x80   :  { %v4984_v56 = vadd.s32 6784, %v4495_v8  ;;  %vm8133_vm15 = vcmp.lt.s32.totalorder %v4965_v9, %v4502_v14  ;;  %vm8138_vm0 = vcmp.lt.s32.totalorder %v4974_v63, %v4502_v14  ;;  %v1264_v30 = vsel %vm1166_vm6, %v1087_v59, 0.0  ;;  %v42_v63 = vld [vmem:[#allocation4 + $0x78] sm:$0xff] }
  0x81   :  { %v1255_v31 = vadd.f32 %v1254_v35, %v1253_v12  ;;  %v1260_v35 = vsel %vm1166_vm6, %v1085_v45, 0.0  ;;  %v586_v12 = vcombine.high %v584_v32, %v584_v32  ;;  %v5012_v59 = vadd.s32 7168, %v4495_v8 }
  0x82   :  { %8482 = vst [vmem:[#allocation60_spill] sm:$0xff] %v4984_v56  ;;  %v611_v9 = vrot.slane %v41_v47, %v4493_v6 }
  0x83   :  { %v1257_v36 = vadd.f32 %v1256_v22, %v1255_v31  ;;  %v1262_v31 = vsel %vm1166_vm6, %v1086_v52, 0.0  ;;  %v1088_v22 = vsel %vm8132_vm1, %v584_v32, 0.0  ;;  %v1089_v52 = vsel %vm8133_vm15, %v586_v12, 0.0  ;;  %8485 = vst [vmem:[#allocation63_spill] sm:$0xff] %v5012_v59 }
  0x84   :  { %v5003_v32 = vadd.s32 7040, %v4495_v8  ;;  %vm8139_vm1 = vcmp.lt.s32.totalorder %v4984_v56, %v4502_v14  ;;  %vm8144_vm15 = vcmp.lt.s32.totalorder %v4993_v25, %v4502_v14  ;;  %v604_v12 = vcombine.high %v41_v47, %v41_v47 }
  0x85   :  { %v1259_v4 = vadd.f32 %v1258_v48, %v1257_v36  ;;  %v601_v48 = vrot.slane %v587_v2, %v4493_v6  ;;  %v602_v36 = vcombine.high %v594_v58, %v594_v58  ;;  %v5031_v47 = vadd.s32 7424, %v4495_v8 }
  0x86   :  { %8484 = vst [vmem:[#allocation62_spill] sm:$0xff] %v5003_v32 }
  0x87   :  { %v1261_v45 = vadd.f32 %v1260_v35, %v1259_v4  ;;  %v1266_v4 = vsel %vm1166_vm6, %v1088_v22, 0.0  ;;  %v1090_v35 = vsel %vm8138_vm0, %v594_v58, 0.0  ;;  %v1091_v22 = vsel %vm8139_vm1, %v602_v36, 0.0  ;;  %8487 = vst [vmem:[#allocation65_spill] sm:$0xff] %v5031_v47 }
  0x88   :  { %v5022_v58 = vadd.s32 7296, %v4495_v8  ;;  %vm8145_vm0 = vcmp.lt.s32.totalorder %v5003_v32, %v4502_v14  ;;  %vm8150_vm1 = vcmp.lt.s32.totalorder %v5012_v59, %v4502_v14  ;;  %v1272_v36 = vsel %vm1166_vm6, %v1091_v22, 0.0  ;;  %v43_v59 = vld [vmem:[#allocation4 + $0x80] sm:$0xff] }
  0x89   :  { %v1263_v40 = vadd.f32 %v1262_v31, %v1261_v45  ;;  %v1268_v31 = vsel %vm1166_vm6, %v1089_v52, 0.0  ;;  %v603_v45 = vcombine.high %v601_v48, %v601_v48  ;;  %v5050_v22 = vadd.s32 7680, %v4495_v8 }
  0x8a   :  { %8486 = vst [vmem:[#allocation64_spill] sm:$0xff] %v5022_v58  ;;  %v628_v32 = vrot.slane %v42_v63, %v4493_v6 }
  0x8b   :  { %v1265_v2 = vadd.f32 %v1264_v30, %v1263_v40  ;;  %v1270_v40 = vsel %vm1166_vm6, %v1090_v35, 0.0  ;;  %v1092_v30 = vsel %vm8144_vm15, %v601_v48, 0.0  ;;  %v1093_v35 = vsel %vm8145_vm0, %v603_v45, 0.0  ;;  %8489 = vst [vmem:[#allocation67_spill] sm:$0xff] %v5050_v22 }
  0x8c   :  { %v5041_v48 = vadd.s32 7552, %v4495_v8  ;;  %vm8151_vm15 = vcmp.lt.s32.totalorder %v5022_v58, %v4502_v14  ;;  %vm8156_vm0 = vcmp.lt.s32.totalorder %v5031_v47, %v4502_v14  ;;  %v621_v45 = vcombine.high %v42_v63, %v42_v63 }
  0x8d   :  { %v1267_v17 = vadd.f32 %v1266_v4, %v1265_v2  ;;  %v618_v4 = vrot.slane %v604_v12, %v4493_v6  ;;  %v619_v2 = vcombine.high %v611_v9, %v611_v9  ;;  %v5069_v63 = vadd.s32 7936, %v4495_v8 }
  0x8e   :  { %8488 = vst [vmem:[#allocation66_spill] sm:$0xff] %v5041_v48 }
  0x8f   :  { %v1269_v52 = vadd.f32 %v1268_v31, %v1267_v17  ;;  %v1274_v17 = vsel %vm1166_vm6, %v1092_v30, 0.0  ;;  %v1094_v31 = vsel %vm8150_vm1, %v611_v9, 0.0  ;;  %v1095_v30 = vsel %vm8151_vm15, %v619_v2, 0.0  ;;  %8491 = vst [vmem:[#allocation69_spill] sm:$0xff] %v5069_v63 }
  0x90   :  { %v5060_v9 = vadd.s32 7808, %v4495_v8  ;;  %vm8157_vm1 = vcmp.lt.s32.totalorder %v5041_v48, %v4502_v14  ;;  %vm8162_vm15 = vcmp.lt.s32.totalorder %v5050_v22, %v4502_v14  ;;  %v1280_v2 = vsel %vm1166_vm6, %v1095_v30, 0.0  ;;  %v44_v22 = vld [vmem:[#allocation4 + $0x88] sm:$0xff] }
  0x91   :  { %v1271_v56 = vadd.f32 %v1270_v40, %v1269_v52  ;;  %v1276_v40 = vsel %vm1166_vm6, %v1093_v35, 0.0  ;;  %v620_v52 = vcombine.high %v618_v4, %v618_v4  ;;  %v5088_v30 = vadd.s32 8192, %v4495_v8 }
  0x92   :  { %8490 = vst [vmem:[#allocation68_spill] sm:$0xff] %v5060_v9  ;;  %v645_v48 = vrot.slane %v43_v59, %v4493_v6 }
  0x93   :  { %v1273_v12 = vadd.f32 %v1272_v36, %v1271_v56  ;;  %v1278_v56 = vsel %vm1166_vm6, %v1094_v31, 0.0  ;;  %v1096_v36 = vsel %vm8156_vm0, %v618_v4, 0.0  ;;  %v1097_v31 = vsel %vm8157_vm1, %v620_v52, 0.0  ;;  %8493 = vst [vmem:[#allocation71_spill] sm:$0xff] %v5088_v30 }
  0x94   :  { %v5079_v4 = vadd.s32 8064, %v4495_v8  ;;  %vm8163_vm0 = vcmp.lt.s32.totalorder %v5060_v9, %v4502_v14  ;;  %vm8168_vm1 = vcmp.lt.s32.totalorder %v5069_v63, %v4502_v14  ;;  %v638_v52 = vcombine.high %v43_v59, %v43_v59 }
  0x95   :  { %v1275_v25 = vadd.f32 %v1274_v17, %v1273_v12  ;;  %v635_v17 = vrot.slane %v621_v45, %v4493_v6  ;;  %v636_v12 = vcombine.high %v628_v32, %v628_v32  ;;  %v5107_v59 = vadd.s32 8448, %v4495_v8 }
  0x96   :  { %8492 = vst [vmem:[#allocation70_spill] sm:$0xff] %v5079_v4 }
  0x97   :  { %v1277_v35 = vadd.f32 %v1276_v40, %v1275_v25  ;;  %v1282_v25 = vsel %vm1166_vm6, %v1096_v36, 0.0  ;;  %v1098_v40 = vsel %vm8162_vm15, %v628_v32, 0.0  ;;  %v1099_v36 = vsel %vm8163_vm0, %v636_v12, 0.0  ;;  %8495 = vst [vmem:[#allocation73_spill] sm:$0xff] %v5107_v59 }
  0x98   :  { %v5098_v32 = vadd.s32 8320, %v4495_v8  ;;  %vm8169_vm15 = vcmp.lt.s32.totalorder %v5079_v4, %v4502_v14  ;;  %vm8174_vm0 = vcmp.lt.s32.totalorder %v5088_v30, %v4502_v14  ;;  %v1288_v12 = vsel %vm1166_vm6, %v1099_v36, 0.0  ;;  %v45_v30 = vld [vmem:[#allocation4 + $0x90] sm:$0xff] }
  0x99   :  { %v1279_v58 = vadd.f32 %v1278_v56, %v1277_v35  ;;  %v1284_v56 = vsel %vm1166_vm6, %v1097_v31, 0.0  ;;  %v637_v35 = vcombine.high %v635_v17, %v635_v17  ;;  %v5126_v36 = vadd.s32 8704, %v4495_v8 }
  0x9a   :  { %8494 = vst [vmem:[#allocation72_spill] sm:$0xff] %v5098_v32  ;;  %v662_v4 = vrot.slane %v44_v22, %v4493_v6 }
  0x9b   :  { %v1281_v45 = vadd.f32 %v1280_v2, %v1279_v58  ;;  %v1286_v58 = vsel %vm1166_vm6, %v1098_v40, 0.0  ;;  %v1100_v2 = vsel %vm8168_vm1, %v635_v17, 0.0  ;;  %v1101_v40 = vsel %vm8169_vm15, %v637_v35, 0.0  ;;  %8497 = vst [vmem:[#allocation75_spill] sm:$0xff] %v5126_v36 }
  0x9c   :  { %v5117_v17 = vadd.s32 8576, %v4495_v8  ;;  %vm8175_vm1 = vcmp.lt.s32.totalorder %v5098_v32, %v4502_v14  ;;  %vm8180_vm15 = vcmp.lt.s32.totalorder %v5107_v59, %v4502_v14  ;;  %v655_v35 = vcombine.high %v44_v22, %v44_v22 }
  0x9d   :  { %v1283_v47 = vadd.f32 %v1282_v25, %v1281_v45  ;;  %v652_v25 = vrot.slane %v638_v52, %v4493_v6  ;;  %v653_v45 = vcombine.high %v645_v48, %v645_v48  ;;  %v5145_v22 = vadd.s32 8960, %v4495_v8 }
  0x9e   :  { %8496 = vst [vmem:[#allocation74_spill] sm:$0xff] %v5117_v17 }
  0x9f   :  { %v1285_v31 = vadd.f32 %v1284_v56, %v1283_v47  ;;  %v1290_v47 = vsel %vm1166_vm6, %v1100_v2, 0.0  ;;  %v1102_v56 = vsel %vm8174_vm0, %v645_v48, 0.0  ;;  %v1103_v2 = vsel %vm8175_vm1, %v653_v45, 0.0  ;;  %8499 = vst [vmem:[#allocation77_spill] sm:$0xff] %v5145_v22 }
  0xa0   :  { %v5136_v48 = vadd.s32 8832, %v4495_v8  ;;  %vm8181_vm0 = vcmp.lt.s32.totalorder %v5117_v17, %v4502_v14  ;;  %vm8186_vm1 = vcmp.lt.s32.totalorder %v5126_v36, %v4502_v14  ;;  %v1296_v45 = vsel %vm1166_vm6, %v1103_v2, 0.0  ;;  %v46_v36 = vld [vmem:[#allocation4 + $0x98] sm:$0xff] }
  0xa1   :  { %v1287_v9 = vadd.f32 %v1286_v58, %v1285_v31  ;;  %v1292_v58 = vsel %vm1166_vm6, %v1101_v40, 0.0  ;;  %v654_v31 = vcombine.high %v652_v25, %v652_v25  ;;  %v5164_v2 = vadd.s32 9216, %v4495_v8 }
  0xa2   :  { %8498 = vst [vmem:[#allocation76_spill] sm:$0xff] %v5136_v48  ;;  %v679_v17 = vrot.slane %v45_v30, %v4493_v6 }
  0xa3   :  { %v1289_v52 = vadd.f32 %v1288_v12, %v1287_v9  ;;  %v1294_v9 = vsel %vm1166_vm6, %v1102_v56, 0.0  ;;  %v1104_v12 = vsel %vm8180_vm15, %v652_v25, 0.0  ;;  %v1105_v56 = vsel %vm8181_vm0, %v654_v31, 0.0  ;;  %8501 = vst [vmem:[#allocation79_spill] sm:$0xff] %v5164_v2 }
  0xa4   :  { %v5155_v25 = vadd.s32 9088, %v4495_v8  ;;  %vm8187_vm15 = vcmp.lt.s32.totalorder %v5136_v48, %v4502_v14  ;;  %vm8192_vm0 = vcmp.lt.s32.totalorder %v5145_v22, %v4502_v14  ;;  %v672_v31 = vcombine.high %v45_v30, %v45_v30 }
  0xa5   :  { %v1291_v63 = vadd.f32 %v1290_v47, %v1289_v52  ;;  %v669_v47 = vrot.slane %v655_v35, %v4493_v6  ;;  %v670_v52 = vcombine.high %v662_v4, %v662_v4  ;;  %v5183_v30 = vadd.s32 9472, %v4495_v8 }
  0xa6   :  { %8500 = vst [vmem:[#allocation78_spill] sm:$0xff] %v5155_v25 }
  0xa7   :  { %v1293_v40 = vadd.f32 %v1292_v58, %v1291_v63  ;;  %v1298_v63 = vsel %vm1166_vm6, %v1104_v12, 0.0  ;;  %v1106_v58 = vsel %vm8186_vm1, %v662_v4, 0.0  ;;  %v1107_v12 = vsel %vm8187_vm15, %v670_v52, 0.0  ;;  %8503 = vst [vmem:[#allocation81_spill] sm:$0xff] %v5183_v30 }
  0xa8   :  { %v5174_v4 = vadd.s32 9344, %v4495_v8  ;;  %vm8193_vm1 = vcmp.lt.s32.totalorder %v5155_v25, %v4502_v14  ;;  %vm8198_vm15 = vcmp.lt.s32.totalorder %v5164_v2, %v4502_v14  ;;  %v1304_v52 = vsel %vm1166_vm6, %v1107_v12, 0.0  ;;  %v47_v2 = vld [vmem:[#allocation4 + $0xa0] sm:$0xff] }
  0xa9   :  { %v1295_v32 = vadd.f32 %v1294_v9, %v1293_v40  ;;  %v1300_v9 = vsel %vm1166_vm6, %v1105_v56, 0.0  ;;  %v671_v40 = vcombine.high %v669_v47, %v669_v47  ;;  %v5202_v12 = vadd.s32 9728, %v4495_v8 }
  0xaa   :  { %8502 = vst [vmem:[#allocation80_spill] sm:$0xff] %v5174_v4  ;;  %v696_v25 = vrot.slane %v46_v36, %v4493_v6 }
  0xab   :  { %v1297_v35 = vadd.f32 %v1296_v45, %v1295_v32  ;;  %v1302_v32 = vsel %vm1166_vm6, %v1106_v58, 0.0  ;;  %v1108_v45 = vsel %vm8192_vm0, %v669_v47, 0.0  ;;  %v1109_v58 = vsel %vm8193_vm1, %v671_v40, 0.0  ;;  %8505 = vst [vmem:[#allocation83_spill] sm:$0xff] %v5202_v12 }
  0xac   :  { %v5193_v47 = vadd.s32 9600, %v4495_v8  ;;  %vm8199_vm0 = vcmp.lt.s32.totalorder %v5174_v4, %v4502_v14  ;;  %vm8204_vm1 = vcmp.lt.s32.totalorder %v5183_v30, %v4502_v14  ;;  %v689_v40 = vcombine.high %v46_v36, %v46_v36 }
  0xad   :  { %v1299_v59 = vadd.f32 %v1298_v63, %v1297_v35  ;;  %v686_v63 = vrot.slane %v672_v31, %v4493_v6  ;;  %v687_v35 = vcombine.high %v679_v17, %v679_v17  ;;  %v5221_v36 = vadd.s32 9984, %v4495_v8 }
  0xae   :  { %8504 = vst [vmem:[#allocation82_spill] sm:$0xff] %v5193_v47 }
  0xaf   :  { %v1301_v56 = vadd.f32 %v1300_v9, %v1299_v59  ;;  %v1306_v59 = vsel %vm1166_vm6, %v1108_v45, 0.0  ;;  %v1110_v9 = vsel %vm8198_vm15, %v679_v17, 0.0  ;;  %v1111_v45 = vsel %vm8199_vm0, %v687_v35, 0.0  ;;  %8507 = vst [vmem:[#allocation85_spill] sm:$0xff] %v5221_v36 }
  0xb0   :  { %v5212_v17 = vadd.s32 9856, %v4495_v8  ;;  %vm8205_vm15 = vcmp.lt.s32.totalorder %v5193_v47, %v4502_v14  ;;  %vm8210_vm0 = vcmp.lt.s32.totalorder %v5202_v12, %v4502_v14  ;;  %v1312_v35 = vsel %vm1166_vm6, %v1111_v45, 0.0  ;;  %v48_v12 = vld [vmem:[#allocation4 + $0xa8] sm:$0xff] }
  0xb1   :  { %v1303_v48 = vadd.f32 %v1302_v32, %v1301_v56  ;;  %v1308_v32 = vsel %vm1166_vm6, %v1109_v58, 0.0  ;;  %v688_v56 = vcombine.high %v686_v63, %v686_v63  ;;  %v5240_v45 = vadd.s32 10240, %v4495_v8 }
  0xb2   :  { %8506 = vst [vmem:[#allocation84_spill] sm:$0xff] %v5212_v17  ;;  %v713_v47 = vrot.slane %v47_v2, %v4493_v6 }
  0xb3   :  { %v1305_v31 = vadd.f32 %v1304_v52, %v1303_v48  ;;  %v1310_v48 = vsel %vm1166_vm6, %v1110_v9, 0.0  ;;  %v1112_v52 = vsel %vm8204_vm1, %v686_v63, 0.0  ;;  %v1113_v9 = vsel %vm8205_vm15, %v688_v56, 0.0  ;;  %8509 = vst [vmem:[#allocation87_spill] sm:$0xff] %v5240_v45 }
  0xb4   :  { %v5231_v63 = vadd.s32 10112, %v4495_v8  ;;  %vm8211_vm1 = vcmp.lt.s32.totalorder %v5212_v17, %v4502_v14  ;;  %vm8216_vm15 = vcmp.lt.s32.totalorder %v5221_v36, %v4502_v14  ;;  %v706_v56 = vcombine.high %v47_v2, %v47_v2 }
  0xb5   :  { %v1307_v22 = vadd.f32 %v1306_v59, %v1305_v31  ;;  %v703_v59 = vrot.slane %v689_v40, %v4493_v6  ;;  %v704_v31 = vcombine.high %v696_v25, %v696_v25  ;;  %v5259_v2 = vadd.s32 10496, %v4495_v8 }
  0xb6   :  { %8508 = vst [vmem:[#allocation86_spill] sm:$0xff] %v5231_v63 }
  0xb7   :  { %v1309_v58 = vadd.f32 %v1308_v32, %v1307_v22  ;;  %v1314_v22 = vsel %vm1166_vm6, %v1112_v52, 0.0  ;;  %v1114_v32 = vsel %vm8210_vm0, %v696_v25, 0.0  ;;  %v1115_v52 = vsel %vm8211_vm1, %v704_v31, 0.0  ;;  %8511 = vst [vmem:[#allocation89_spill] sm:$0xff] %v5259_v2 }
  0xb8   :  { %v5250_v25 = vadd.s32 10368, %v4495_v8  ;;  %vm8217_vm0 = vcmp.lt.s32.totalorder %v5231_v63, %v4502_v14  ;;  %vm8222_vm1 = vcmp.lt.s32.totalorder %v5240_v45, %v4502_v14  ;;  %v1320_v31 = vsel %vm1166_vm6, %v1115_v52, 0.0  ;;  %v49_v45 = vld [vmem:[#allocation4 + $0xb0] sm:$0xff] }
  0xb9   :  { %v1311_v4 = vadd.f32 %v1310_v48, %v1309_v58  ;;  %v1316_v48 = vsel %vm1166_vm6, %v1113_v9, 0.0  ;;  %v705_v58 = vcombine.high %v703_v59, %v703_v59  ;;  %v5278_v52 = vadd.s32 10752, %v4495_v8 }
  0xba   :  { %8510 = vst [vmem:[#allocation88_spill] sm:$0xff] %v5250_v25  ;;  %v730_v63 = vrot.slane %v48_v12, %v4493_v6 }
  0xbb   :  { %v1313_v40 = vadd.f32 %v1312_v35, %v1311_v4  ;;  %v1318_v4 = vsel %vm1166_vm6, %v1114_v32, 0.0  ;;  %v1116_v35 = vsel %vm8216_vm15, %v703_v59, 0.0  ;;  %v1117_v32 = vsel %vm8217_vm0, %v705_v58, 0.0  ;;  %8513 = vst [vmem:[#allocation91_spill] sm:$0xff] %v5278_v52 }
  0xbc   :  { %v5269_v59 = vadd.s32 10624, %v4495_v8  ;;  %vm8223_vm15 = vcmp.lt.s32.totalorder %v5250_v25, %v4502_v14  ;;  %vm8228_vm0 = vcmp.lt.s32.totalorder %v5259_v2, %v4502_v14  ;;  %v723_v58 = vcombine.high %v48_v12, %v48_v12 }
  0xbd   :  { %v1315_v30 = vadd.f32 %v1314_v22, %v1313_v40  ;;  %v720_v22 = vrot.slane %v706_v56, %v4493_v6  ;;  %v721_v40 = vcombine.high %v713_v47, %v713_v47  ;;  %v5297_v12 = vadd.s32 11008, %v4495_v8 }
  0xbe   :  { %8512 = vst [vmem:[#allocation90_spill] sm:$0xff] %v5269_v59 }
  0xbf   :  { %v1317_v9 = vadd.f32 %v1316_v48, %v1315_v30  ;;  %v1322_v30 = vsel %vm1166_vm6, %v1116_v35, 0.0  ;;  %v1118_v48 = vsel %vm8222_vm1, %v713_v47, 0.0  ;;  %v1119_v35 = vsel %vm8223_vm15, %v721_v40, 0.0  ;;  %8515 = vst [vmem:[#allocation93_spill] sm:$0xff] %v5297_v12 }
  0xc0   :  { %v5288_v47 = vadd.s32 10880, %v4495_v8  ;;  %vm8229_vm1 = vcmp.lt.s32.totalorder %v5269_v59, %v4502_v14  ;;  %vm8234_vm15 = vcmp.lt.s32.totalorder %v5278_v52, %v4502_v14  ;;  %v1328_v40 = vsel %vm1166_vm6, %v1119_v35, 0.0  ;;  %v50_v52 = vld [vmem:[#allocation4 + $0xb8] sm:$0xff] }
  0xc1   :  { %v1319_v17 = vadd.f32 %v1318_v4, %v1317_v9  ;;  %v1324_v4 = vsel %vm1166_vm6, %v1117_v32, 0.0  ;;  %v722_v9 = vcombine.high %v720_v22, %v720_v22  ;;  %v5316_v35 = vadd.s32 11264, %v4495_v8 }
  0xc2   :  { %8514 = vst [vmem:[#allocation92_spill] sm:$0xff] %v5288_v47  ;;  %v747_v59 = vrot.slane %v49_v45, %v4493_v6 }
  0xc3   :  { %v1321_v56 = vadd.f32 %v1320_v31, %v1319_v17  ;;  %v1326_v17 = vsel %vm1166_vm6, %v1118_v48, 0.0  ;;  %v1120_v31 = vsel %vm8228_vm0, %v720_v22, 0.0  ;;  %v1121_v48 = vsel %vm8229_vm1, %v722_v9, 0.0  ;;  %8517 = vst [vmem:[#allocation95_spill] sm:$0xff] %v5316_v35 }
  0xc4   :  { %v5307_v22 = vadd.s32 11136, %v4495_v8  ;;  %vm8235_vm0 = vcmp.lt.s32.totalorder %v5288_v47, %v4502_v14  ;;  %vm8240_vm1 = vcmp.lt.s32.totalorder %v5297_v12, %v4502_v14  ;;  %v740_v9 = vcombine.high %v49_v45, %v49_v45 }
  0xc5   :  { %v1323_v36 = vadd.f32 %v1322_v30, %v1321_v56  ;;  %v737_v30 = vrot.slane %v723_v58, %v4493_v6  ;;  %v738_v56 = vcombine.high %v730_v63, %v730_v63  ;;  %v5335_v45 = vadd.s32 11520, %v4495_v8 }
  0xc6   :  { %8516 = vst [vmem:[#allocation94_spill] sm:$0xff] %v5307_v22 }
  0xc7   :  { %v1325_v32 = vadd.f32 %v1324_v4, %v1323_v36  ;;  %v1330_v36 = vsel %vm1166_vm6, %v1120_v31, 0.0  ;;  %v1122_v4 = vsel %vm8234_vm15, %v730_v63, 0.0  ;;  %v1123_v31 = vsel %vm8235_vm0, %v738_v56, 0.0  ;;  %8519 = vst [vmem:[#allocation97_spill] sm:$0xff] %v5335_v45 }
  0xc8   :  { %v5326_v63 = vadd.s32 11392, %v4495_v8  ;;  %vm8241_vm15 = vcmp.lt.s32.totalorder %v5307_v22, %v4502_v14  ;;  %vm8246_vm0 = vcmp.lt.s32.totalorder %v5316_v35, %v4502_v14  ;;  %v1336_v56 = vsel %vm1166_vm6, %v1123_v31, 0.0  ;;  %v51_v35 = vld [vmem:[#allocation4 + $0xc0] sm:$0xff] }
  0xc9   :  { %v1327_v25 = vadd.f32 %v1326_v17, %v1325_v32  ;;  %v1332_v17 = vsel %vm1166_vm6, %v1121_v48, 0.0  ;;  %v739_v32 = vcombine.high %v737_v30, %v737_v30  ;;  %v5354_v31 = vadd.s32 11776, %v4495_v8 }
  0xca   :  { %8518 = vst [vmem:[#allocation96_spill] sm:$0xff] %v5326_v63  ;;  %v764_v22 = vrot.slane %v50_v52, %v4493_v6 }
  0xcb   :  { %v1329_v58 = vadd.f32 %v1328_v40, %v1327_v25  ;;  %v1334_v25 = vsel %vm1166_vm6, %v1122_v4, 0.0  ;;  %v1124_v40 = vsel %vm8240_vm1, %v737_v30, 0.0  ;;  %v1125_v4 = vsel %vm8241_vm15, %v739_v32, 0.0  ;;  %8521 = vst [vmem:[#allocation99_spill] sm:$0xff] %v5354_v31 }
  0xcc   :  { %v5345_v30 = vadd.s32 11648, %v4495_v8  ;;  %vm8247_vm1 = vcmp.lt.s32.totalorder %v5326_v63, %v4502_v14  ;;  %vm8252_vm15 = vcmp.lt.s32.totalorder %v5335_v45, %v4502_v14  ;;  %v757_v32 = vcombine.high %v50_v52, %v50_v52 }
  0xcd   :  { %v1331_v2 = vadd.f32 %v1330_v36, %v1329_v58  ;;  %v754_v36 = vrot.slane %v740_v9, %v4493_v6  ;;  %v755_v58 = vcombine.high %v747_v59, %v747_v59  ;;  %v5373_v52 = vadd.s32 12032, %v4495_v8 }
  0xce   :  { %8520 = vst [vmem:[#allocation98_spill] sm:$0xff] %v5345_v30 }
  0xcf   :  { %v1333_v48 = vadd.f32 %v1332_v17, %v1331_v2  ;;  %v1338_v2 = vsel %vm1166_vm6, %v1124_v40, 0.0  ;;  %v1126_v17 = vsel %vm8246_vm0, %v747_v59, 0.0  ;;  %v1127_v40 = vsel %vm8247_vm1, %v755_v58, 0.0  ;;  %8523 = vst [vmem:[#allocation101_spill] sm:$0xff] %v5373_v52 }
  0xd0   :  { %v5364_v59 = vadd.s32 11904, %v4495_v8  ;;  %vm8253_vm0 = vcmp.lt.s32.totalorder %v5345_v30, %v4502_v14  ;;  %vm8258_vm1 = vcmp.lt.s32.totalorder %v5354_v31, %v4502_v14  ;;  %v1344_v58 = vsel %vm1166_vm6, %v1127_v40, 0.0  ;;  %v52_v31 = vld [vmem:[#allocation4 + $0xc8] sm:$0xff] }
  0xd1   :  { %v1335_v47 = vadd.f32 %v1334_v25, %v1333_v48  ;;  %v1340_v25 = vsel %vm1166_vm6, %v1125_v4, 0.0  ;;  %v756_v48 = vcombine.high %v754_v36, %v754_v36  ;;  %v5392_v40 = vadd.s32 12288, %v4495_v8 }
  0xd2   :  { %8522 = vst [vmem:[#allocation100_spill] sm:$0xff] %v5364_v59  ;;  %v781_v30 = vrot.slane %v51_v35, %v4493_v6 }
  0xd3   :  { %v1337_v9 = vadd.f32 %v1336_v56, %v1335_v47  ;;  %v1342_v47 = vsel %vm1166_vm6, %v1126_v17, 0.0  ;;  %v1128_v56 = vsel %vm8252_vm15, %v754_v36, 0.0  ;;  %v1129_v17 = vsel %vm8253_vm0, %v756_v48, 0.0  ;;  %8525 = vst [vmem:[#allocation103_spill] sm:$0xff] %v5392_v40 }
  0xd4   :  { %v5383_v36 = vadd.s32 12160, %v4495_v8  ;;  %vm8259_vm15 = vcmp.lt.s32.totalorder %v5364_v59, %v4502_v14  ;;  %vm8264_vm0 = vcmp.lt.s32.totalorder %v5373_v52, %v4502_v14  ;;  %v774_v48 = vcombine.high %v51_v35, %v51_v35 }
  0xd5   :  { %v1339_v12 = vadd.f32 %v1338_v2, %v1337_v9  ;;  %v771_v2 = vrot.slane %v757_v32, %v4493_v6  ;;  %v772_v9 = vcombine.high %v764_v22, %v764_v22  ;;  %v5411_v35 = vadd.s32 12544, %v4495_v8 }
  0xd6   :  { %8524 = vst [vmem:[#allocation102_spill] sm:$0xff] %v5383_v36 }
  0xd7   :  { %v1341_v4 = vadd.f32 %v1340_v25, %v1339_v12  ;;  %v1346_v12 = vsel %vm1166_vm6, %v1128_v56, 0.0  ;;  %v1130_v25 = vsel %vm8258_vm1, %v764_v22, 0.0  ;;  %v1131_v56 = vsel %vm8259_vm15, %v772_v9, 0.0  ;;  %8527 = vst [vmem:[#allocation105_spill] sm:$0xff] %v5411_v35 }
  0xd8   :  { %v5402_v22 = vadd.s32 12416, %v4495_v8  ;;  %vm8265_vm1 = vcmp.lt.s32.totalorder %v5383_v36, %v4502_v14  ;;  %vm8270_vm15 = vcmp.lt.s32.totalorder %v5392_v40, %v4502_v14  ;;  %v1352_v9 = vsel %vm1166_vm6, %v1131_v56, 0.0  ;;  %v53_v40 = vld [vmem:[#allocation4 + $0xd0] sm:$0xff] }
  0xd9   :  { %v1343_v63 = vadd.f32 %v1342_v47, %v1341_v4  ;;  %v1348_v47 = vsel %vm1166_vm6, %v1129_v17, 0.0  ;;  %v773_v4 = vcombine.high %v771_v2, %v771_v2  ;;  %v5430_v56 = vadd.s32 12800, %v4495_v8 }
  0xda   :  { %8526 = vst [vmem:[#allocation104_spill] sm:$0xff] %v5402_v22  ;;  %v798_v36 = vrot.slane %v52_v31, %v4493_v6 }
  0xdb   :  { %v1345_v32 = vadd.f32 %v1344_v58, %v1343_v63  ;;  %v1350_v63 = vsel %vm1166_vm6, %v1130_v25, 0.0  ;;  %v1132_v58 = vsel %vm8264_vm0, %v771_v2, 0.0  ;;  %v1133_v25 = vsel %vm8265_vm1, %v773_v4, 0.0  ;;  %8529 = vst [vmem:[#allocation107_spill] sm:$0xff] %v5430_v56 }
  0xdc   :  { %v5421_v2 = vadd.s32 12672, %v4495_v8  ;;  %vm8271_vm0 = vcmp.lt.s32.totalorder %v5402_v22, %v4502_v14  ;;  %vm8276_vm1 = vcmp.lt.s32.totalorder %v5411_v35, %v4502_v14  ;;  %v791_v4 = vcombine.high %v52_v31, %v52_v31 }
  0xdd   :  { %v1347_v45 = vadd.f32 %v1346_v12, %v1345_v32  ;;  %v788_v12 = vrot.slane %v774_v48, %v4493_v6  ;;  %v789_v32 = vcombine.high %v781_v30, %v781_v30  ;;  %v5449_v31 = vadd.s32 13056, %v4495_v8 }
  0xde   :  { %8528 = vst [vmem:[#allocation106_spill] sm:$0xff] %v5421_v2 }
  0xdf   :  { %v1349_v17 = vadd.f32 %v1348_v47, %v1347_v45  ;;  %v1354_v45 = vsel %vm1166_vm6, %v1132_v58, 0.0  ;;  %v1134_v47 = vsel %vm8270_vm15, %v781_v30, 0.0  ;;  %v1135_v58 = vsel %vm8271_vm0, %v789_v32, 0.0  ;;  %8531 = vst [vmem:[#allocation109_spill] sm:$0xff] %v5449_v31 }
  0xe0   :  { %v5440_v30 = vadd.s32 12928, %v4495_v8  ;;  %vm8277_vm15 = vcmp.lt.s32.totalorder %v5421_v2, %v4502_v14  ;;  %vm8282_vm0 = vcmp.lt.s32.totalorder %v5430_v56, %v4502_v14  ;;  %v1360_v32 = vsel %vm1166_vm6, %v1135_v58, 0.0  ;;  %v54_v56 = vld [vmem:[#allocation4 + $0xd8] sm:$0xff] }
  0xe1   :  { %v1351_v59 = vadd.f32 %v1350_v63, %v1349_v17  ;;  %v1356_v63 = vsel %vm1166_vm6, %v1133_v25, 0.0  ;;  %v790_v17 = vcombine.high %v788_v12, %v788_v12  ;;  %v5468_v58 = vadd.s32 13312, %v4495_v8 }
  0xe2   :  { %8530 = vst [vmem:[#allocation108_spill] sm:$0xff] %v5440_v30  ;;  %v815_v2 = vrot.slane %v53_v40, %v4493_v6 }
  0xe3   :  { %v1353_v48 = vadd.f32 %v1352_v9, %v1351_v59  ;;  %v1358_v59 = vsel %vm1166_vm6, %v1134_v47, 0.0  ;;  %v1136_v9 = vsel %vm8276_vm1, %v788_v12, 0.0  ;;  %v1137_v47 = vsel %vm8277_vm15, %v790_v17, 0.0  ;;  %8533 = vst [vmem:[#allocation111_spill] sm:$0xff] %v5468_v58 }
  0xe4   :  { %v5459_v12 = vadd.s32 13184, %v4495_v8  ;;  %vm8283_vm1 = vcmp.lt.s32.totalorder %v5440_v30, %v4502_v14  ;;  %vm8288_vm15 = vcmp.lt.s32.totalorder %v5449_v31, %v4502_v14  ;;  %v808_v17 = vcombine.high %v53_v40, %v53_v40 }
  0xe5   :  { %v1355_v52 = vadd.f32 %v1354_v45, %v1353_v48  ;;  %v805_v45 = vrot.slane %v791_v4, %v4493_v6  ;;  %v806_v48 = vcombine.high %v798_v36, %v798_v36  ;;  %v5487_v40 = vadd.s32 13568, %v4495_v8 }
  0xe6   :  { %8532 = vst [vmem:[#allocation110_spill] sm:$0xff] %v5459_v12 }
  0xe7   :  { %v1357_v25 = vadd.f32 %v1356_v63, %v1355_v52  ;;  %v1362_v52 = vsel %vm1166_vm6, %v1136_v9, 0.0  ;;  %v1138_v63 = vsel %vm8282_vm0, %v798_v36, 0.0  ;;  %v1139_v9 = vsel %vm8283_vm1, %v806_v48, 0.0  ;;  %8535 = vst [vmem:[#allocation113_spill] sm:$0xff] %v5487_v40 }
  0xe8   :  { %v5478_v36 = vadd.s32 13440, %v4495_v8  ;;  %vm8289_vm0 = vcmp.lt.s32.totalorder %v5459_v12, %v4502_v14  ;;  %vm8294_vm1 = vcmp.lt.s32.totalorder %v5468_v58, %v4502_v14  ;;  %v1368_v48 = vsel %vm1166_vm6, %v1139_v9, 0.0  ;;  %v55_v58 = vld [vmem:[#allocation4 + $0xe0] sm:$0xff] }
  0xe9   :  { %v1359_v22 = vadd.f32 %v1358_v59, %v1357_v25  ;;  %v1364_v59 = vsel %vm1166_vm6, %v1137_v47, 0.0  ;;  %v807_v25 = vcombine.high %v805_v45, %v805_v45  ;;  %v5506_v9 = vadd.s32 13824, %v4495_v8 }
  0xea   :  { %8534 = vst [vmem:[#allocation112_spill] sm:$0xff] %v5478_v36  ;;  %v832_v12 = vrot.slane %v54_v56, %v4493_v6 }
  0xeb   :  { %v1361_v4 = vadd.f32 %v1360_v32, %v1359_v22  ;;  %v1366_v22 = vsel %vm1166_vm6, %v1138_v63, 0.0  ;;  %v1140_v32 = vsel %vm8288_vm15, %v805_v45, 0.0  ;;  %v1141_v63 = vsel %vm8289_vm0, %v807_v25, 0.0  ;;  %8537 = vst [vmem:[#allocation115_spill] sm:$0xff] %v5506_v9 }
  0xec   :  { %v5497_v45 = vadd.s32 13696, %v4495_v8  ;;  %vm8295_vm15 = vcmp.lt.s32.totalorder %v5478_v36, %v4502_v14  ;;  %vm8300_vm0 = vcmp.lt.s32.totalorder %v5487_v40, %v4502_v14  ;;  %v825_v25 = vcombine.high %v54_v56, %v54_v56 }
  0xed   :  { %v1363_v35 = vadd.f32 %v1362_v52, %v1361_v4  ;;  %v822_v52 = vrot.slane %v808_v17, %v4493_v6  ;;  %v823_v4 = vcombine.high %v815_v2, %v815_v2  ;;  %v5525_v56 = vadd.s32 14080, %v4495_v8 }
  0xee   :  { %8536 = vst [vmem:[#allocation114_spill] sm:$0xff] %v5497_v45 }
  0xef   :  { %v1365_v47 = vadd.f32 %v1364_v59, %v1363_v35  ;;  %v1370_v35 = vsel %vm1166_vm6, %v1140_v32, 0.0  ;;  %v1142_v59 = vsel %vm8294_vm1, %v815_v2, 0.0  ;;  %v1143_v32 = vsel %vm8295_vm15, %v823_v4, 0.0  ;;  %8539 = vst [vmem:[#allocation117_spill] sm:$0xff] %v5525_v56 }
  0xf0   :  { %v5516_v2 = vadd.s32 13952, %v4495_v8  ;;  %vm8301_vm1 = vcmp.lt.s32.totalorder %v5497_v45, %v4502_v14  ;;  %vm8306_vm15 = vcmp.lt.s32.totalorder %v5506_v9, %v4502_v14  ;;  %v1376_v4 = vsel %vm1166_vm6, %v1143_v32, 0.0  ;;  %v56_v9 = vld [vmem:[#allocation4 + $0xe8] sm:$0xff] }
  0xf1   :  { %v1367_v30 = vadd.f32 %v1366_v22, %v1365_v47  ;;  %v1372_v22 = vsel %vm1166_vm6, %v1141_v63, 0.0  ;;  %v824_v47 = vcombine.high %v822_v52, %v822_v52  ;;  %v5544_v32 = vadd.s32 14336, %v4495_v8 }
  0xf2   :  { %8538 = vst [vmem:[#allocation116_spill] sm:$0xff] %v5516_v2  ;;  %v849_v45 = vrot.slane %v55_v58, %v4493_v6 }
  0xf3   :  { %v1369_v17 = vadd.f32 %v1368_v48, %v1367_v30  ;;  %v1374_v30 = vsel %vm1166_vm6, %v1142_v59, 0.0  ;;  %v1144_v48 = vsel %vm8300_vm0, %v822_v52, 0.0  ;;  %v1145_v59 = vsel %vm8301_vm1, %v824_v47, 0.0  ;;  %8541 = vst [vmem:[#allocation119_spill] sm:$0xff] %v5544_v32 }
  0xf4   :  { %v5535_v52 = vadd.s32 14208, %v4495_v8  ;;  %vm8307_vm0 = vcmp.lt.s32.totalorder %v5516_v2, %v4502_v14  ;;  %vm8312_vm1 = vcmp.lt.s32.totalorder %v5525_v56, %v4502_v14  ;;  %v842_v47 = vcombine.high %v55_v58, %v55_v58 }
  0xf5   :  { %v1371_v31 = vadd.f32 %v1370_v35, %v1369_v17  ;;  %v839_v35 = vrot.slane %v825_v25, %v4493_v6  ;;  %v840_v17 = vcombine.high %v832_v12, %v832_v12  ;;  %v5563_v58 = vadd.s32 14592, %v4495_v8 }
  0xf6   :  { %8540 = vst [vmem:[#allocation118_spill] sm:$0xff] %v5535_v52 }
  0xf7   :  { %v1373_v63 = vadd.f32 %v1372_v22, %v1371_v31  ;;  %v1378_v31 = vsel %vm1166_vm6, %v1144_v48, 0.0  ;;  %v1146_v22 = vsel %vm8306_vm15, %v832_v12, 0.0  ;;  %v1147_v48 = vsel %vm8307_vm0, %v840_v17, 0.0  ;;  %8543 = vst [vmem:[#allocation121_spill] sm:$0xff] %v5563_v58 }
  0xf8   :  { %v5554_v12 = vadd.s32 14464, %v4495_v8  ;;  %vm8313_vm15 = vcmp.lt.s32.totalorder %v5535_v52, %v4502_v14  ;;  %vm8318_vm0 = vcmp.lt.s32.totalorder %v5544_v32, %v4502_v14  ;;  %v1384_v17 = vsel %vm1166_vm6, %v1147_v48, 0.0  ;;  %v57_v32 = vld [vmem:[#allocation4 + $0xf0] sm:$0xff] }
  0xf9   :  { %v1375_v36 = vadd.f32 %v1374_v30, %v1373_v63  ;;  %v1380_v30 = vsel %vm1166_vm6, %v1145_v59, 0.0  ;;  %v841_v63 = vcombine.high %v839_v35, %v839_v35  ;;  %v5582_v48 = vadd.s32 14848, %v4495_v8 }
  0xfa   :  { %8542 = vst [vmem:[#allocation120_spill] sm:$0xff] %v5554_v12  ;;  %v866_v52 = vrot.slane %v56_v9, %v4493_v6 }
  0xfb   :  { %v1377_v25 = vadd.f32 %v1376_v4, %v1375_v36  ;;  %v1382_v36 = vsel %vm1166_vm6, %v1146_v22, 0.0  ;;  %v1148_v4 = vsel %vm8312_vm1, %v839_v35, 0.0  ;;  %v1149_v22 = vsel %vm8313_vm15, %v841_v63, 0.0  ;;  %8545 = vst [vmem:[#allocation123_spill] sm:$0xff] %v5582_v48 }
  0xfc   :  { %v5573_v35 = vadd.s32 14720, %v4495_v8  ;;  %vm8319_vm1 = vcmp.lt.s32.totalorder %v5554_v12, %v4502_v14  ;;  %vm8324_vm15 = vcmp.lt.s32.totalorder %v5563_v58, %v4502_v14  ;;  %v859_v63 = vcombine.high %v56_v9, %v56_v9 }
  0xfd   :  { %v1379_v40 = vadd.f32 %v1378_v31, %v1377_v25  ;;  %v856_v31 = vrot.slane %v842_v47, %v4493_v6  ;;  %v857_v25 = vcombine.high %v849_v45, %v849_v45  ;;  %v5601_v9 = vadd.s32 15104, %v4495_v8 }
  0xfe   :  { %8544 = vst [vmem:[#allocation122_spill] sm:$0xff] %v5573_v35 }
  0xff   :  { %v1381_v59 = vadd.f32 %v1380_v30, %v1379_v40  ;;  %v1386_v40 = vsel %vm1166_vm6, %v1148_v4, 0.0  ;;  %v1150_v30 = vsel %vm8318_vm0, %v849_v45, 0.0  ;;  %v1151_v4 = vsel %vm8319_vm1, %v857_v25, 0.0  ;;  %8547 = vst [vmem:[#allocation125_spill] sm:$0xff] %v5601_v9 }
 0x100   :  { %v5592_v45 = vadd.s32 14976, %v4495_v8  ;;  %vm8325_vm0 = vcmp.lt.s32.totalorder %v5573_v35, %v4502_v14  ;;  %vm8330_vm1 = vcmp.lt.s32.totalorder %v5582_v48, %v4502_v14  ;;  %v1392_v25 = vsel %vm1166_vm6, %v1151_v4, 0.0  ;;  %v58_v48 = vld [vmem:[#allocation4 + $0xf8] sm:$0xff] }
 0x101   :  { %v1383_v2 = vadd.f32 %v1382_v36, %v1381_v59  ;;  %v1388_v36 = vsel %vm1166_vm6, %v1149_v22, 0.0  ;;  %v858_v59 = vcombine.high %v856_v31, %v856_v31  ;;  %v5620_v4 = vadd.s32 15360, %v4495_v8 }
 0x102   :  { %8546 = vst [vmem:[#allocation124_spill] sm:$0xff] %v5592_v45  ;;  %v883_v35 = vrot.slane %v57_v32, %v4493_v6 }
 0x103   :  { %v1385_v47 = vadd.f32 %v1384_v17, %v1383_v2  ;;  %v1390_v2 = vsel %vm1166_vm6, %v1150_v30, 0.0  ;;  %v1152_v17 = vsel %vm8324_vm15, %v856_v31, 0.0  ;;  %v1153_v30 = vsel %vm8325_vm0, %v858_v59, 0.0  ;;  %8549 = vst [vmem:[#allocation127_spill] sm:$0xff] %v5620_v4 }
 0x104   :  { %v5611_v31 = vadd.s32 15232, %v4495_v8  ;;  %vm8331_vm15 = vcmp.lt.s32.totalorder %v5592_v45, %v4502_v14  ;;  %vm8336_vm0 = vcmp.lt.s32.totalorder %v5601_v9, %v4502_v14  ;;  %v876_v59 = vcombine.high %v57_v32, %v57_v32 }
 0x105   :  { %v1387_v56 = vadd.f32 %v1386_v40, %v1385_v47  ;;  %v873_v40 = vrot.slane %v859_v63, %v4493_v6  ;;  %v874_v47 = vcombine.high %v866_v52, %v866_v52  ;;  %v5639_v32 = vadd.s32 15616, %v4495_v8 }
 0x106   :  { %8548 = vst [vmem:[#allocation126_spill] sm:$0xff] %v5611_v31 }
 0x107   :  { %v1389_v22 = vadd.f32 %v1388_v36, %v1387_v56  ;;  %v1394_v56 = vsel %vm1166_vm6, %v1152_v17, 0.0  ;;  %v1154_v36 = vsel %vm8330_vm1, %v866_v52, 0.0  ;;  %v1155_v17 = vsel %vm8331_vm15, %v874_v47, 0.0  ;;  %8551 = vst [vmem:[#allocation129_spill] sm:$0xff] %v5639_v32 }
 0x108   :  { %v5630_v52 = vadd.s32 15488, %v4495_v8  ;;  %vm8337_vm1 = vcmp.lt.s32.totalorder %v5611_v31, %v4502_v14  ;;  %vm8342_vm15 = vcmp.lt.s32.totalorder %v5620_v4, %v4502_v14  ;;  %v1400_v47 = vsel %vm1166_vm6, %v1155_v17, 0.0 }
 0x109   :  { %v1391_v12 = vadd.f32 %v1390_v2, %v1389_v22  ;;  %v1396_v2 = vsel %vm1166_vm6, %v1153_v30, 0.0  ;;  %v875_v22 = vcombine.high %v873_v40, %v873_v40  ;;  %v5658_v17 = vadd.s32 15872, %v4495_v8 }
 0x10a   :  { %8550 = vst [vmem:[#allocation128_spill] sm:$0xff] %v5630_v52  ;;  %v900_v31 = vrot.slane %v58_v48, %v4493_v6 }
 0x10b   :  { %v1393_v63 = vadd.f32 %v1392_v25, %v1391_v12  ;;  %v1398_v12 = vsel %vm1166_vm6, %v1154_v36, 0.0  ;;  %v1156_v25 = vsel %vm8336_vm0, %v873_v40, 0.0  ;;  %v1157_v36 = vsel %vm8337_vm1, %v875_v22, 0.0  ;;  %8553 = vst [vmem:[#allocation131_spill] sm:$0xff] %v5658_v17 }
 0x10c   :  { %v5649_v40 = vadd.s32 15744, %v4495_v8  ;;  %vm8343_vm0 = vcmp.lt.s32.totalorder %v5630_v52, %v4502_v14  ;;  %vm8348_vm1 = vcmp.lt.s32.totalorder %v5639_v32, %v4502_v14  ;;  %v893_v22 = vcombine.high %v58_v48, %v58_v48 }
 0x10d   :  { %v1395_v58 = vadd.f32 %v1394_v56, %v1393_v63  ;;  %v890_v56 = vrot.slane %v876_v59, %v4493_v6  ;;  %v891_v63 = vcombine.high %v883_v35, %v883_v35  ;;  %v5677_v48 = vadd.s32 16128, %v4495_v8 }
 0x10e   :  { %8552 = vst [vmem:[#allocation130_spill] sm:$0xff] %v5649_v40  ;;  %v5687_v32 = vadd.s32 16256, %v4495_v8 }
 0x10f   :  { %v1397_v30 = vadd.f32 %v1396_v2, %v1395_v58  ;;  %v1402_v58 = vsel %vm1166_vm6, %v1156_v25, 0.0  ;;  %v1158_v2 = vsel %vm8342_vm15, %v883_v35, 0.0  ;;  %v1159_v25 = vsel %vm8343_vm0, %v891_v63, 0.0  ;;  %8555 = vst [vmem:[#allocation133_spill] sm:$0xff] %v5677_v48 }
 0x110   :  { %v5668_v35 = vadd.s32 16000, %v4495_v8  ;;  %vm8350_vm15 = vcmp.lt.s32.totalorder %v5649_v40, %v4502_v14  ;;  %vm330_vm0 = vcmp.lt.s32.totalorder %v5658_v17, %v4502_v14  ;;  %v1408_v63 = vsel %vm1166_vm6, %v1159_v25, 0.0  ;;  %8556 = vst [vmem:[#allocation134_spill] sm:$0xff] %v5687_v32 }
 0x111   :  { %v1399_v45 = vadd.f32 %v1398_v12, %v1397_v30  ;;  %v1404_v12 = vsel %vm1166_vm6, %v1157_v36, 0.0  ;;  %v892_v30 = vcombine.high %v890_v56, %v890_v56  ;;  %vm332_vm14 = vcmp.lt.s32.totalorder %v5677_v48, %v4502_v14 }
 0x112   :  { %8554 = vst [vmem:[#allocation132_spill] sm:$0xff] %v5668_v35 }
 0x113   :  { %v1401_v59 = vadd.f32 %v1400_v47, %v1399_v45  ;;  %v1406_v45 = vsel %vm1166_vm6, %v1158_v2, 0.0  ;;  %v1160_v47 = vsel %vm8348_vm1, %v890_v56, 0.0  ;;  %v1161_v2 = vsel %vm8350_vm15, %v892_v30, 0.0 }
 0x114   :  { %vm8355_vm1 = vcmp.lt.s32.totalorder %v5668_v35, %v4502_v14  ;;  %v1162_v56 = vsel %vm330_vm0, %v900_v31, 0.0  ;;  %vm333_vm15 = vcmp.lt.s32.totalorder %v5687_v32, %v4502_v14 }
 0x115   :  { %v1403_v9 = vadd.f32 %v1402_v58, %v1401_v59  ;;  %v907_v58 = vrot.slane %v893_v22, %v4493_v6  ;;  %v908_v59 = vcombine.high %v900_v31, %v900_v31  ;;  %v1412_v22 = vsel %vm1166_vm6, %v1161_v2, 0.0 }
 0x117   :  { %v1405_v36 = vadd.f32 %v1404_v12, %v1403_v9  ;;  %v1410_v9 = vsel %vm1166_vm6, %v1160_v47, 0.0  ;;  %v909_v30 = vcombine.high %v907_v58, %v907_v58  ;;  %v1163_v25 = vsel %vm8355_vm1, %v908_v59, 0.0 }
 0x118   :  { %v1414_v47 = vsel %vm1166_vm6, %v1162_v56, 0.0  ;;  %v1164_v31 = vsel %vm332_vm14, %v907_v58, 0.0  ;;  %vm74_vm1 = vcmp.gt.s32.totalorder %v4502_v14, 1 }
 0x119   :  { %v1407_v52 = vadd.f32 %v1406_v45, %v1405_v36  ;;  %v1416_v36 = vsel %vm1166_vm6, %v1163_v25, 0.0  ;;  %v1418_v59 = vsel %vm1166_vm6, %v1164_v31, 0.0  ;;  %v75_v58 = vsel %vm74_vm1, %v4502_v14, 1 }
 0x11a   :  { %v76_v56 = vcvt.s32.f32 %v75_v58  ;;  %vm8560_vm1 = vcmp.lt.s32.totalorder %v4585_v57, %v4502_v14 }
 0x11b   :  { %v1409_v12 = vadd.f32 %v1408_v63, %v1407_v52  ;;  %v1165_v63 = vsel %vm333_vm15, %v909_v30, 0.0 }
 0x11c   :  { %4349 = vrcp.f32 %v76_v56 }
 0x11d   :  { %v1411_v45 = vadd.f32 %v1410_v9, %v1409_v12  ;;  %v1420_v12 = vsel %vm1166_vm6, %v1165_v63, 0.0 }
 0x11f   :  { %v1413_v52 = vadd.f32 %v1412_v22, %v1411_v45  ;;  %v4448_v22 = vmov 269488144  }
 0x120   :  { %v1428_v25 = vunpack.c.l.s4 %v4448_v22 }
 0x121   :  { %v1415_v2 = vadd.f32 %v1414_v47, %v1413_v52 }
 0x122   :  { %v1429_v45 = vunpack.c.0.s8 %v1428_v25 }
 0x123   :  { %v1417_v9 = vadd.f32 %v1416_v36, %v1415_v2  ;;  %v4354_v2 = vld [vmem:[#allocation4 + $0x8] sm:$0xff] }
 0x124   :  { %v5719_v31 = vsub.s32 %v1429_v45, %v4489_v3 }
 0x125   :  { %v1419_v35 = vadd.f32 %v1418_v59, %v1417_v9 }
 0x126   :  { %v5715_v32 = vpop.eup %4349 }
 0x127   :  { %v1421_v17 = vadd.f32 %v1420_v12, %v1419_v35 }
 0x129   :  { %1422 = vadd.xlane.f32.xlu0 %v1421_v17  ;;  %v4353_v17 = vld [vmem:[#allocation4] sm:$0xff] }
 0x1b6   :  { %v1423_v30 = vpop.xlane.xlu0 %1422 }
 0x1b7   :  { %v1425_v47 = vmul.f32 %v5715_v32, %v1423_v30  ;;  %v4355_v30 = vld [vmem:[#allocation4 + $0x10] sm:$0xff] }
 0x1b9   :  { %v5722_v35 = vrot.slane %v1425_v47, %v5719_v31 }
 0x1bb   :  { %v5725_v52 = vsub.f32 %v4353_v17, %v5722_v35  ;;  %v5732_v59 = vsub.f32 %v4354_v2, %v5722_v35  ;;  %v5749_v47 = vsub.f32 %v4355_v30, %v5722_v35 }
 0x1bd   :  { %8557 = vst [vmem:[#allocation135_spill] sm:$0xff] %v5725_v52  ;;  %v1499_v36 = vcombine.high %v5725_v52, %v5725_v52  ;;  %v1506_v63 = vrot.slane %v5725_v52, %v4493_v6  ;;  %8558 = vst [vmem:[#allocation136_spill] sm:$0xff] %v5732_v59  ;;  %v1516_v12 = vcombine.high %v5732_v59, %v5732_v59 }
 0x1be   :  { %v1523_v56 = vrot.slane %v5732_v59, %v4493_v6  ;;  %8559 = vst [vmem:[#allocation137_spill] sm:$0xff] %v5749_v47 }
 0x1bf   :  { %v1513_v3 = vrot.slane %v1499_v36, %v4493_v6  ;;  %v1514_v9 = vcombine.high %v1506_v63, %v1506_v63  ;;  %v2171_v22 = vsel %vm206_vm2, %v1506_v63, 0.0  ;;  %v1530_v2 = vrot.slane %v1516_v12, %v4493_v6 }
 0x1c0   :  { %v2299_v17 = vmul.f32 %v2171_v22, %v2171_v22  ;;  %v1531_v59 = vcombine.high %v1523_v56, %v1523_v56  ;;  %v1540_v12 = vrot.slane %v5749_v47, %v4493_v6 }
 0x1c1   :  { %v1515_v58 = vcombine.high %v1513_v3, %v1513_v3  ;;  %v2172_v25 = vsel %vm207_vm3, %v1514_v9, 0.0  ;;  %v2173_v45 = vsel %vm208_vm4, %v1513_v3, 0.0  ;;  %v2175_v9 = vsel %vm210_vm7, %v1523_v56, 0.0 }
 0x1c2   :  { %v2300_v36 = vmul.f32 %v2172_v25, %v2172_v25  ;;  %v2301_v8 = vmul.f32 %v2173_v45, %v2173_v45  ;;  %v1533_v3 = vcombine.high %v5749_v47, %v5749_v47  ;;  %v2427_v30 = vsel %vm1166_vm6, %v2299_v17, 0.0  ;;  %v4356_v17 = vld [vmem:[#allocation4 + $0x18] sm:$0xff] }
 0x1c3   :  { %v2174_v63 = vsel %vm209_vm5, %v1515_v58, 0.0  ;;  %v1532_v25 = vcombine.high %v1530_v2, %v1530_v2  ;;  %v2176_v58 = vsel %vm211_vm8, %v1531_v59, 0.0  ;;  %v2303_v18 = vmul.f32 %v2175_v9, %v2175_v9 }
 0x1c4   :  { %v2302_v15 = vmul.f32 %v2174_v63, %v2174_v63  ;;  %v2428_v22 = vsel %vm1166_vm6, %v2300_v36, 0.0  ;;  %v2430_v56 = vsel %vm1166_vm6, %v2301_v8, 0.0  ;;  %v2177_v63 = vsel %vm212_vm9, %v1530_v2, 0.0 }
 0x1c5   :  { %v2429_v45 = vadd.f32 %v2428_v22, %v2427_v30  ;;  %v5772_v36 = vsub.f32 %v4356_v17, %v5722_v35  ;;  %v2304_v13 = vmul.f32 %v2176_v58, %v2176_v58  ;;  %v1547_v52 = vrot.slane %v1533_v3, %v4493_v6  ;;  %v4357_v17 = vld [vmem:[#allocation4 + $0x20] sm:$0xff] }
 0x1c6   :  { %v2432_v47 = vsel %vm1166_vm6, %v2302_v15, 0.0  ;;  %v1548_v24 = vcombine.high %v1540_v12, %v1540_v12  ;;  %v2178_v59 = vsel %vm213_vm10, %v1532_v25, 0.0  ;;  %v2305_v9 = vmul.f32 %v2177_v63, %v2177_v63 }
 0x1c7   :  { %v2431_v20 = vadd.f32 %v2430_v56, %v2429_v45  ;;  %v2434_v30 = vsel %vm1166_vm6, %v2303_v18, 0.0  ;;  %v2179_v2 = vsel %vm214_vm11, %v1540_v12, 0.0  ;;  %v1550_v58 = vcombine.high %v5772_v36, %v5772_v36 }
 0x1c8   :  { %v2306_v15 = vmul.f32 %v2178_v59, %v2178_v59  ;;  %v2436_v3 = vsel %vm1166_vm6, %v2304_v13, 0.0  ;;  %v1549_v45 = vcombine.high %v1547_v52, %v1547_v52  ;;  %v1557_v56 = vrot.slane %v5772_v36, %v4493_v6 }
 0x1c9   :  { %v2433_v8 = vadd.f32 %v2432_v47, %v2431_v20  ;;  %v2180_v20 = vsel %vm8398_vm12, %v1548_v24, 0.0  ;;  %v2307_v47 = vmul.f32 %v2179_v2, %v2179_v2  ;;  %v2438_v25 = vsel %vm1166_vm6, %v2305_v9, 0.0 }
 0x1ca   :  { %v2181_v12 = vsel %vm8368_vm13, %v1547_v52, 0.0  ;;  %v5796_v13 = vsub.f32 %v4357_v17, %v5722_v35  ;;  %v2308_v59 = vmul.f32 %v2180_v20, %v2180_v20  ;;  %v1565_v46 = vcombine.high %v1557_v56, %v1557_v56 }
 0x1cb   :  { %v2435_v22 = vadd.f32 %v2434_v30, %v2433_v8  ;;  %v2440_v8 = vsel %vm1166_vm6, %v2306_v15, 0.0  ;;  %v1564_v30 = vrot.slane %v1550_v58, %v4493_v6  ;;  %v2182_v24 = vsel %vm8560_vm1, %v1549_v45, 0.0 }
 0x1cc   :  { %v2309_v2 = vmul.f32 %v2181_v12, %v2181_v12  ;;  %vm8561_vm13 = vcmp.lt.s32.totalorder %v4594_v61, %v4502_v14  ;;  %v1567_v20 = vcombine.high %v5796_v13, %v5796_v13  ;;  %v2310_v15 = vmul.f32 %v2182_v24, %v2182_v24 }
 0x1cd   :  { %v2437_v18 = vadd.f32 %v2436_v3, %v2435_v22  ;;  %v2442_v22 = vsel %vm1166_vm6, %v2307_v47, 0.0  ;;  %v2183_v52 = vsel %vm8561_vm13, %v1557_v56, 0.0  ;;  %v2444_v58 = vsel %vm1166_vm6, %v2308_v59, 0.0 }
 0x1ce   :  { %vm8562_vm1 = vcmp.lt.s32.totalorder %v4604_v5, %v4502_v14  ;;  %v2311_v12 = vmul.f32 %v2183_v52, %v2183_v52  ;;  %vm8563_vm13 = vcmp.lt.s32.totalorder %v4613_v11, %v4502_v14  ;;  %vm8754_vm12 = vcmp.lt.s32.totalorder %v5649_v40, %v4502_v14 }
 0x1cf   :  { %v2439_v63 = vadd.f32 %v2438_v25, %v2437_v18  ;;  %v1566_v18 = vcombine.high %v1564_v30, %v1564_v30  ;;  %v1574_v25 = vrot.slane %v5796_v13, %v4493_v6  ;;  %v2184_v45 = vsel %vm8562_vm1, %v1565_v46, 0.0 }
 0x1d0   :  { %v2185_v56 = vsel %vm8563_vm13, %v1564_v30, 0.0  ;;  %v2312_v24 = vmul.f32 %v2184_v45, %v2184_v45  ;;  %vm8564_vm1 = vcmp.lt.s32.totalorder %v4623_v23, %v4502_v14  ;;  %vm8565_vm13 = vcmp.lt.s32.totalorder %v4632_v29, %v4502_v14 }
 0x1d1   :  { %v2441_v9 = vadd.f32 %v2440_v8, %v2439_v63  ;;  %v2446_v63 = vsel %vm1166_vm6, %v2309_v2, 0.0  ;;  %v4358_v8 = vld [vmem:[#allocation4 + $0x28] sm:$0xff]  ;;  %v1582_v5 = vcombine.high %v1574_v25, %v1574_v25  ;;  %v2186_v46 = vsel %vm8564_vm1, %v1566_v18, 0.0 }
 0x1d2   :  { %v5820_v59 = vsub.f32 %v4358_v8, %v5722_v35  ;;  %v2313_v52 = vmul.f32 %v2185_v56, %v2185_v56  ;;  %v2187_v30 = vsel %vm8565_vm13, %v1574_v25, 0.0  ;;  %vm8566_vm1 = vcmp.lt.s32.totalorder %v4642_v37, %v4502_v14 }
 0x1d3   :  { %v2443_v3 = vadd.f32 %v2442_v22, %v2441_v9  ;;  %v2448_v9 = vsel %vm1166_vm6, %v2310_v15, 0.0  ;;  %v1581_v22 = vrot.slane %v1567_v20, %v4493_v6  ;;  %v2314_v15 = vmul.f32 %v2186_v46, %v2186_v46 }
 0x1d4   :  { %v1584_v45 = vcombine.high %v5820_v59, %v5820_v59  ;;  %v2452_v20 = vsel %vm1166_vm6, %v2312_v24, 0.0  ;;  %v2188_v18 = vsel %vm8566_vm1, %v1582_v5, 0.0  ;;  %v2315_v56 = vmul.f32 %v2187_v30, %v2187_v30 }
 0x1d5   :  { %v2445_v47 = vadd.f32 %v2444_v58, %v2443_v3  ;;  %v2450_v3 = vsel %vm1166_vm6, %v2311_v12, 0.0  ;;  %vm8567_vm13 = vcmp.lt.s32.totalorder %v4651_v42, %v4502_v14  ;;  %v2316_v46 = vmul.f32 %v2188_v18, %v2188_v18 }
 0x1d6   :  { %v2189_v25 = vsel %vm8567_vm13, %v1581_v22, 0.0  ;;  %vm8568_vm1 = vcmp.lt.s32.totalorder %v4661_v51, %v4502_v14  ;;  %vm8569_vm13 = vcmp.lt.s32.totalorder %v4670_v55, %v4502_v14 }
 0x1d7   :  { %v2447_v17 = vadd.f32 %v2446_v63, %v2445_v47  ;;  %v1583_v47 = vcombine.high %v1581_v22, %v1581_v22  ;;  %v1591_v63 = vrot.slane %v5820_v59, %v4493_v6  ;;  %v2317_v30 = vmul.f32 %v2189_v25, %v2189_v25 }
 0x1d9   :  { %v2449_v2 = vadd.f32 %v2448_v9, %v2447_v17  ;;  %v2454_v17 = vsel %vm1166_vm6, %v2313_v52, 0.0  ;;  %v4359_v9 = vld [vmem:[#allocation4 + $0x30] sm:$0xff]  ;;  %v1599_v37 = vcombine.high %v1591_v63, %v1591_v63  ;;  %v2190_v5 = vsel %vm8568_vm1, %v1583_v47, 0.0 }
 0x1da   :  { %v5844_v24 = vsub.f32 %v4359_v9, %v5722_v35  ;;  %v2191_v22 = vsel %vm8569_vm13, %v1591_v63, 0.0  ;;  %vm8570_vm1 = vcmp.lt.s32.totalorder %v4680_v0, %v4502_v14  ;;  %vm8571_vm13 = vcmp.lt.s32.totalorder %v4689_v7, %v4502_v14 }
 0x1db   :  { %v2451_v58 = vadd.f32 %v2450_v3, %v2449_v2  ;;  %v2456_v2 = vsel %vm1166_vm6, %v2314_v15, 0.0  ;;  %v1598_v3 = vrot.slane %v1584_v45, %v4493_v6  ;;  %v2318_v15 = vmul.f32 %v2190_v5, %v2190_v5 }
 0x1dc   :  { %v1601_v18 = vcombine.high %v5844_v24, %v5844_v24  ;;  %v2460_v45 = vsel %vm1166_vm6, %v2316_v46, 0.0  ;;  %v2192_v47 = vsel %vm8570_vm1, %v1599_v37, 0.0  ;;  %v2319_v25 = vmul.f32 %v2191_v22, %v2191_v22 }
 0x1dd   :  { %v2453_v12 = vadd.f32 %v2452_v20, %v2451_v58  ;;  %v2458_v58 = vsel %vm1166_vm6, %v2315_v56, 0.0  ;;  %v2193_v63 = vsel %vm8571_vm13, %v1598_v3, 0.0  ;;  %v2320_v5 = vmul.f32 %v2192_v47, %v2192_v47 }
 0x1de   :  { %vm8572_vm1 = vcmp.lt.s32.totalorder %v4699_v21, %v4502_v14  ;;  %v2321_v22 = vmul.f32 %v2193_v63, %v2193_v63  ;;  %vm8573_vm13 = vcmp.lt.s32.totalorder %v4708_v28, %v4502_v14 }
 0x1df   :  { %v2455_v8 = vadd.f32 %v2454_v17, %v2453_v12  ;;  %v1600_v12 = vcombine.high %v1598_v3, %v1598_v3  ;;  %v1608_v17 = vrot.slane %v5844_v24, %v4493_v6 }
 0x1e1   :  { %v2457_v52 = vadd.f32 %v2456_v2, %v2455_v8  ;;  %v2462_v8 = vsel %vm1166_vm6, %v2317_v30, 0.0  ;;  %v4360_v2 = vld [vmem:[#allocation4 + $0x38] sm:$0xff]  ;;  %v1616_v0 = vcombine.high %v1608_v17, %v1608_v17  ;;  %v2194_v37 = vsel %vm8572_vm1, %v1600_v12, 0.0 }
 0x1e2   :  { %v5868_v46 = vsub.f32 %v4360_v2, %v5722_v35  ;;  %v2195_v3 = vsel %vm8573_vm13, %v1608_v17, 0.0  ;;  %vm8574_vm1 = vcmp.lt.s32.totalorder %v4718_v38, %v4502_v14  ;;  %vm8575_vm13 = vcmp.lt.s32.totalorder %v4727_v44, %v4502_v14 }
 0x1e3   :  { %v2459_v20 = vadd.f32 %v2458_v58, %v2457_v52  ;;  %v2464_v52 = vsel %vm1166_vm6, %v2318_v15, 0.0  ;;  %v1615_v58 = vrot.slane %v1601_v18, %v4493_v6  ;;  %v2322_v15 = vmul.f32 %v2194_v37, %v2194_v37 }
 0x1e4   :  { %v1618_v47 = vcombine.high %v5868_v46, %v5868_v46  ;;  %v2468_v18 = vsel %vm1166_vm6, %v2320_v5, 0.0  ;;  %v2196_v12 = vsel %vm8574_vm1, %v1616_v0, 0.0  ;;  %v2323_v63 = vmul.f32 %v2195_v3, %v2195_v3 }
 0x1e5   :  { %v2461_v56 = vadd.f32 %v2460_v45, %v2459_v20  ;;  %v2466_v20 = vsel %vm1166_vm6, %v2319_v25, 0.0  ;;  %v2197_v17 = vsel %vm8575_vm13, %v1615_v58, 0.0  ;;  %v2324_v37 = vmul.f32 %v2196_v12, %v2196_v12 }
 0x1e6   :  { %vm8576_vm1 = vcmp.lt.s32.totalorder %v4737_v54, %v4502_v14  ;;  %v2325_v3 = vmul.f32 %v2197_v17, %v2197_v17  ;;  %vm8577_vm13 = vcmp.lt.s32.totalorder %v4746_v60, %v4502_v14 }
 0x1e7   :  { %v2463_v9 = vadd.f32 %v2462_v8, %v2461_v56  ;;  %v1617_v56 = vcombine.high %v1615_v58, %v1615_v58  ;;  %v1625_v8 = vrot.slane %v5868_v46, %v4493_v6 }
 0x1e9   :  { %v2465_v30 = vadd.f32 %v2464_v52, %v2463_v9  ;;  %v2470_v9 = vsel %vm1166_vm6, %v2321_v22, 0.0  ;;  %v4361_v52 = vld [vmem:[#allocation4 + $0x40] sm:$0xff]  ;;  %v1633_v38 = vcombine.high %v1625_v8, %v1625_v8  ;;  %v2198_v0 = vsel %vm8576_vm1, %v1617_v56, 0.0 }
 0x1ea   :  { %v5892_v5 = vsub.f32 %v4361_v52, %v5722_v35  ;;  %v2199_v58 = vsel %vm8577_vm13, %v1625_v8, 0.0  ;;  %vm8578_vm1 = vcmp.lt.s32.totalorder %v4756_v10, %v4502_v14  ;;  %vm8579_vm13 = vcmp.lt.s32.totalorder %v4765_v19, %v4502_v14 }
 0x1eb   :  { %v2467_v45 = vadd.f32 %v2466_v20, %v2465_v30  ;;  %v2472_v30 = vsel %vm1166_vm6, %v2322_v15, 0.0  ;;  %v1632_v20 = vrot.slane %v1618_v47, %v4493_v6  ;;  %v2326_v15 = vmul.f32 %v2198_v0, %v2198_v0 }
 0x1ec   :  { %v1635_v12 = vcombine.high %v5892_v5, %v5892_v5  ;;  %v2476_v47 = vsel %vm1166_vm6, %v2324_v37, 0.0  ;;  %v2200_v56 = vsel %vm8578_vm1, %v1633_v38, 0.0  ;;  %v2327_v17 = vmul.f32 %v2199_v58, %v2199_v58 }
 0x1ed   :  { %v2469_v25 = vadd.f32 %v2468_v18, %v2467_v45  ;;  %v2474_v45 = vsel %vm1166_vm6, %v2323_v63, 0.0  ;;  %v2201_v8 = vsel %vm8579_vm13, %v1632_v20, 0.0  ;;  %v2328_v0 = vmul.f32 %v2200_v56, %v2200_v56 }
 0x1ee   :  { %vm8580_vm1 = vcmp.lt.s32.totalorder %v4775_v34, %v4502_v14  ;;  %v2329_v58 = vmul.f32 %v2201_v8, %v2201_v8  ;;  %vm8581_vm13 = vcmp.lt.s32.totalorder %v4784_v41, %v4502_v14 }
 0x1ef   :  { %v2471_v2 = vadd.f32 %v2470_v9, %v2469_v25  ;;  %v1634_v25 = vcombine.high %v1632_v20, %v1632_v20  ;;  %v1642_v9 = vrot.slane %v5892_v5, %v4493_v6 }
 0x1f1   :  { %v2473_v22 = vadd.f32 %v2472_v30, %v2471_v2  ;;  %v2478_v2 = vsel %vm1166_vm6, %v2325_v3, 0.0  ;;  %v4362_v30 = vld [vmem:[#allocation4 + $0x48] sm:$0xff]  ;;  %v1650_v10 = vcombine.high %v1642_v9, %v1642_v9  ;;  %v2202_v38 = vsel %vm8580_vm1, %v1634_v25, 0.0 }
 0x1f2   :  { %v5916_v37 = vsub.f32 %v4362_v30, %v5722_v35  ;;  %v2203_v20 = vsel %vm8581_vm13, %v1642_v9, 0.0  ;;  %vm8582_vm1 = vcmp.lt.s32.totalorder %v4794_v53, %v4502_v14  ;;  %vm8583_vm13 = vcmp.lt.s32.totalorder %v4803_v62, %v4502_v14 }
 0x1f3   :  { %v2475_v18 = vadd.f32 %v2474_v45, %v2473_v22  ;;  %v2480_v22 = vsel %vm1166_vm6, %v2326_v15, 0.0  ;;  %v1649_v45 = vrot.slane %v1635_v12, %v4493_v6  ;;  %v2330_v15 = vmul.f32 %v2202_v38, %v2202_v38 }
 0x1f4   :  { %v1652_v56 = vcombine.high %v5916_v37, %v5916_v37  ;;  %v2484_v12 = vsel %vm1166_vm6, %v2328_v0, 0.0  ;;  %v2204_v25 = vsel %vm8582_vm1, %v1650_v10, 0.0  ;;  %v2331_v8 = vmul.f32 %v2203_v20, %v2203_v20 }
 0x1f5   :  { %v2477_v63 = vadd.f32 %v2476_v47, %v2475_v18  ;;  %v2482_v18 = vsel %vm1166_vm6, %v2327_v17, 0.0  ;;  %v2205_v9 = vsel %vm8583_vm13, %v1649_v45, 0.0  ;;  %v2332_v38 = vmul.f32 %v2204_v25, %v2204_v25 }
 0x1f6   :  { %vm8584_vm1 = vcmp.lt.s32.totalorder %v4813_v16, %v4502_v14  ;;  %v2333_v20 = vmul.f32 %v2205_v9, %v2205_v9  ;;  %vm8585_vm13 = vcmp.lt.s32.totalorder %v4822_v26, %v4502_v14 }
 0x1f7   :  { %v2479_v52 = vadd.f32 %v2478_v2, %v2477_v63  ;;  %v1651_v63 = vcombine.high %v1649_v45, %v1649_v45  ;;  %v1659_v2 = vrot.slane %v5916_v37, %v4493_v6 }
 0x1f9   :  { %v2481_v3 = vadd.f32 %v2480_v22, %v2479_v52  ;;  %v2486_v52 = vsel %vm1166_vm6, %v2329_v58, 0.0  ;;  %v4363_v22 = vld [vmem:[#allocation4 + $0x50] sm:$0xff]  ;;  %v1667_v53 = vcombine.high %v1659_v2, %v1659_v2  ;;  %v2206_v10 = vsel %vm8584_vm1, %v1651_v63, 0.0 }
 0x1fa   :  { %v5940_v0 = vsub.f32 %v4363_v22, %v5722_v35  ;;  %v2207_v45 = vsel %vm8585_vm13, %v1659_v2, 0.0  ;;  %vm8586_vm1 = vcmp.lt.s32.totalorder %v4832_v43, %v4502_v14  ;;  %vm8587_vm13 = vcmp.lt.s32.totalorder %v4841_v49, %v4502_v14 }
 0x1fb   :  { %v2483_v47 = vadd.f32 %v2482_v18, %v2481_v3  ;;  %v2488_v3 = vsel %vm1166_vm6, %v2330_v15, 0.0  ;;  %v1666_v18 = vrot.slane %v1652_v56, %v4493_v6  ;;  %v2334_v15 = vmul.f32 %v2206_v10, %v2206_v10 }
 0x1fc   :  { %v1669_v25 = vcombine.high %v5940_v0, %v5940_v0  ;;  %v2492_v56 = vsel %vm1166_vm6, %v2332_v38, 0.0  ;;  %v2208_v63 = vsel %vm8586_vm1, %v1667_v53, 0.0  ;;  %v2335_v9 = vmul.f32 %v2207_v45, %v2207_v45 }
 0x1fd   :  { %v2485_v17 = vadd.f32 %v2484_v12, %v2483_v47  ;;  %v2490_v47 = vsel %vm1166_vm6, %v2331_v8, 0.0  ;;  %v2209_v2 = vsel %vm8587_vm13, %v1666_v18, 0.0  ;;  %v2336_v10 = vmul.f32 %v2208_v63, %v2208_v63 }
 0x1fe   :  { %vm8588_vm1 = vcmp.lt.s32.totalorder %v4851_v1, %v4502_v14  ;;  %v2337_v45 = vmul.f32 %v2209_v2, %v2209_v2 }
 0x1ff   :  { %v2487_v30 = vadd.f32 %v2486_v52, %v2485_v17  ;;  %v1668_v17 = vcombine.high %v1666_v18, %v1666_v18  ;;  %v1676_v52 = vrot.slane %v5940_v0, %v4493_v6  ;;  %v8589_v18 = vld [vmem:[#allocation47_spill] sm:$0xff] }
 0x200   :  { %vm8590_vm13 = vcmp.lt.s32.totalorder %v8589_v18, %v4502_v14 }
 0x201   :  { %v2489_v58 = vadd.f32 %v2488_v3, %v2487_v30  ;;  %v2494_v30 = vsel %vm1166_vm6, %v2333_v20, 0.0  ;;  %v4364_v3 = vld [vmem:[#allocation4 + $0x58] sm:$0xff]  ;;  %v1684_v43 = vcombine.high %v1676_v52, %v1676_v52  ;;  %v2210_v53 = vsel %vm8588_vm1, %v1668_v17, 0.0  ;;  %v8591_v17 = vld [vmem:[#allocation48_spill] sm:$0xff] }
 0x202   :  { %v5964_v38 = vsub.f32 %v4364_v3, %v5722_v35  ;;  %vm8592_vm1 = vcmp.lt.s32.totalorder %v8591_v17, %v4502_v14 }
 0x203   :  { %v2491_v12 = vadd.f32 %v2490_v47, %v2489_v58  ;;  %v2496_v58 = vsel %vm1166_vm6, %v2334_v15, 0.0  ;;  %v1683_v47 = vrot.slane %v1669_v25, %v4493_v6  ;;  %v2338_v15 = vmul.f32 %v2210_v53, %v2210_v53  ;;  %v4365_v53 = vld [vmem:[#allocation4 + $0x60] sm:$0xff] }
 0x204   :  { %v1686_v63 = vcombine.high %v5964_v38, %v5964_v38  ;;  %v2500_v25 = vsel %vm1166_vm6, %v2336_v10, 0.0  ;;  %v1693_v3 = vrot.slane %v5964_v38, %v4493_v6  ;;  %v2212_v2 = vsel %vm8592_vm1, %v1684_v43, 0.0  ;;  %v8595_v43 = vld [vmem:[#allocation50_spill] sm:$0xff] }
 0x205   :  { %v2493_v8 = vadd.f32 %v2492_v56, %v2491_v12  ;;  %v2498_v12 = vsel %vm1166_vm6, %v2335_v9, 0.0  ;;  %v2211_v56 = vsel %vm8590_vm13, %v1676_v52, 0.0  ;;  %v8593_v52 = vld [vmem:[#allocation49_spill] sm:$0xff]  ;;  %v5988_v10 = vsub.f32 %v4365_v53, %v5722_v35 }
 0x206   :  { %vm8594_vm13 = vcmp.lt.s32.totalorder %v8593_v52, %v4502_v14  ;;  %v2340_v18 = vmul.f32 %v2212_v2, %v2212_v2  ;;  %v2504_v1 = vsel %vm1166_vm6, %v2338_v15, 0.0  ;;  %v1700_v49 = vrot.slane %v1686_v63, %v4493_v6 }
 0x207   :  { %v2495_v22 = vadd.f32 %v2494_v30, %v2493_v8  ;;  %v1685_v30 = vcombine.high %v1683_v47, %v1683_v47  ;;  %v1701_v17 = vcombine.high %v1693_v3, %v1693_v3  ;;  %vm8596_vm1 = vcmp.lt.s32.totalorder %v8595_v43, %v4502_v14 }
 0x208   :  { %v1703_v2 = vcombine.high %v5988_v10, %v5988_v10  ;;  %v2508_v63 = vsel %vm1166_vm6, %v2340_v18, 0.0  ;;  %v1702_v53 = vcombine.high %v1700_v49, %v1700_v49  ;;  %v1710_v43 = vrot.slane %v5988_v10, %v4493_v6 }
 0x209   :  { %v2497_v20 = vadd.f32 %v2496_v58, %v2495_v22  ;;  %v2339_v22 = vmul.f32 %v2211_v56, %v2211_v56  ;;  %v2502_v58 = vsel %vm1166_vm6, %v2337_v45, 0.0  ;;  %v2214_v56 = vsel %vm8596_vm1, %v1685_v30, 0.0  ;;  %v8599_v30 = vld [vmem:[#allocation52_spill] sm:$0xff] }
 0x20a   :  { %v2342_v15 = vmul.f32 %v2214_v56, %v2214_v56  ;;  %vm8600_vm1 = vcmp.lt.s32.totalorder %v8599_v30, %v4502_v14  ;;  %v4366_v56 = vld [vmem:[#allocation4 + $0x68] sm:$0xff]  ;;  %v1717_v26 = vrot.slane %v1703_v2, %v4493_v6  ;;  %v1718_v30 = vcombine.high %v1710_v43, %v1710_v43 }
 0x20b   :  { %v2499_v8 = vadd.f32 %v2498_v12, %v2497_v20  ;;  %v2213_v20 = vsel %vm8594_vm13, %v1683_v47, 0.0  ;;  %v8597_v47 = vld [vmem:[#allocation51_spill] sm:$0xff]  ;;  %v6012_v18 = vsub.f32 %v4366_v56, %v5722_v35 }
 0x20c   :  { %vm8598_vm13 = vcmp.lt.s32.totalorder %v8597_v47, %v4502_v14  ;;  %v2512_v52 = vsel %vm1166_vm6, %v2342_v15, 0.0  ;;  %v1719_v56 = vcombine.high %v1717_v26, %v1717_v26 }
 0x20d   :  { %v2501_v9 = vadd.f32 %v2500_v25, %v2499_v8  ;;  %v2341_v8 = vmul.f32 %v2213_v20, %v2213_v20  ;;  %v2506_v25 = vsel %vm1166_vm6, %v2339_v22, 0.0 }
 0x20f   :  { %v2503_v12 = vadd.f32 %v2502_v58, %v2501_v9  ;;  %v2215_v9 = vsel %vm8598_vm13, %v1693_v3, 0.0  ;;  %v8601_v3 = vld [vmem:[#allocation53_spill] sm:$0xff] }
 0x210   :  { %v2343_v20 = vmul.f32 %v2215_v9, %v2215_v9  ;;  %vm8602_vm13 = vcmp.lt.s32.totalorder %v8601_v3, %v4502_v14 }
 0x211   :  { %v2505_v45 = vadd.f32 %v2504_v1, %v2503_v12  ;;  %v2216_v1 = vsel %vm8600_vm1, %v1701_v17, 0.0  ;;  %v2510_v12 = vsel %vm1166_vm6, %v2341_v8, 0.0  ;;  %v8603_v17 = vld [vmem:[#allocation54_spill] sm:$0xff] }
 0x212   :  { %v2344_v47 = vmul.f32 %v2216_v1, %v2216_v1  ;;  %vm8604_vm1 = vcmp.lt.s32.totalorder %v8603_v17, %v4502_v14  ;;  %v1720_v1 = vcombine.high %v6012_v18, %v6012_v18  ;;  %v1727_v17 = vrot.slane %v6012_v18, %v4493_v6 }
 0x213   :  { %v2507_v58 = vadd.f32 %v2506_v25, %v2505_v45  ;;  %v2217_v45 = vsel %vm8602_vm13, %v1700_v49, 0.0  ;;  %v2218_v9 = vsel %vm8604_vm1, %v1702_v53, 0.0  ;;  %v8605_v49 = vld [vmem:[#allocation55_spill] sm:$0xff]  ;;  %v8607_v53 = vld [vmem:[#allocation56_spill] sm:$0xff] }
 0x214   :  { %vm8606_vm13 = vcmp.lt.s32.totalorder %v8605_v49, %v4502_v14  ;;  %v2346_v15 = vmul.f32 %v2218_v9, %v2218_v9  ;;  %v2516_v2 = vsel %vm1166_vm6, %v2344_v47, 0.0  ;;  %vm8608_vm1 = vcmp.lt.s32.totalorder %v8607_v53, %v4502_v14  ;;  %v4367_v9 = vld [vmem:[#allocation4 + $0x70] sm:$0xff] }
 0x215   :  { %v2509_v22 = vadd.f32 %v2508_v63, %v2507_v58  ;;  %v2345_v58 = vmul.f32 %v2217_v45, %v2217_v45  ;;  %v2514_v63 = vsel %vm1166_vm6, %v2343_v20, 0.0  ;;  %v6036_v47 = vsub.f32 %v4367_v9, %v5722_v35 }
 0x216   :  { %v2520_v3 = vsel %vm1166_vm6, %v2346_v15, 0.0  ;;  %v1734_v16 = vrot.slane %v1720_v1, %v4493_v6  ;;  %v1735_v53 = vcombine.high %v1727_v17, %v1727_v17 }
 0x217   :  { %v2511_v25 = vadd.f32 %v2510_v12, %v2509_v22  ;;  %v2219_v22 = vsel %vm8606_vm13, %v1710_v43, 0.0  ;;  %v8609_v43 = vld [vmem:[#allocation57_spill] sm:$0xff] }
 0x218   :  { %v2347_v45 = vmul.f32 %v2219_v22, %v2219_v22  ;;  %vm8610_vm13 = vcmp.lt.s32.totalorder %v8609_v43, %v4502_v14  ;;  %v1736_v9 = vcombine.high %v1734_v16, %v1734_v16 }
 0x219   :  { %v2513_v8 = vadd.f32 %v2512_v52, %v2511_v25  ;;  %v2220_v52 = vsel %vm8608_vm1, %v1718_v30, 0.0  ;;  %v2518_v25 = vsel %vm1166_vm6, %v2345_v58, 0.0  ;;  %v8611_v30 = vld [vmem:[#allocation58_spill] sm:$0xff] }
 0x21a   :  { %v2348_v49 = vmul.f32 %v2220_v52, %v2220_v52  ;;  %vm8612_vm1 = vcmp.lt.s32.totalorder %v8611_v30, %v4502_v14  ;;  %v1737_v52 = vcombine.high %v6036_v47, %v6036_v47  ;;  %v1744_v30 = vrot.slane %v6036_v47, %v4493_v6 }
 0x21b   :  { %v2515_v12 = vadd.f32 %v2514_v63, %v2513_v8  ;;  %v2221_v8 = vsel %vm8610_vm13, %v1717_v26, 0.0  ;;  %v2222_v22 = vsel %vm8612_vm1, %v1719_v56, 0.0  ;;  %v8613_v26 = vld [vmem:[#allocation59_spill] sm:$0xff]  ;;  %v8615_v56 = vld [vmem:[#allocation60_spill] sm:$0xff] }
 0x21c   :  { %vm8614_vm13 = vcmp.lt.s32.totalorder %v8613_v26, %v4502_v14  ;;  %v2350_v15 = vmul.f32 %v2222_v22, %v2222_v22  ;;  %v2524_v1 = vsel %vm1166_vm6, %v2348_v49, 0.0  ;;  %vm8616_vm1 = vcmp.lt.s32.totalorder %v8615_v56, %v4502_v14  ;;  %v4368_v22 = vld [vmem:[#allocation4 + $0x78] sm:$0xff] }
 0x21d   :  { %v2517_v20 = vadd.f32 %v2516_v2, %v2515_v12  ;;  %v2349_v12 = vmul.f32 %v2221_v8, %v2221_v8  ;;  %v2522_v2 = vsel %vm1166_vm6, %v2347_v45, 0.0  ;;  %v6060_v49 = vsub.f32 %v4368_v22, %v5722_v35 }
 0x21e   :  { %v2528_v43 = vsel %vm1166_vm6, %v2350_v15, 0.0  ;;  %v1751_v62 = vrot.slane %v1737_v52, %v4493_v6  ;;  %v1752_v56 = vcombine.high %v1744_v30, %v1744_v30 }
 0x21f   :  { %v2519_v63 = vadd.f32 %v2518_v25, %v2517_v20  ;;  %v2223_v20 = vsel %vm8614_vm13, %v1727_v17, 0.0  ;;  %v8617_v17 = vld [vmem:[#allocation61_spill] sm:$0xff] }
 0x220   :  { %v2351_v8 = vmul.f32 %v2223_v20, %v2223_v20  ;;  %vm8618_vm13 = vcmp.lt.s32.totalorder %v8617_v17, %v4502_v14  ;;  %v1753_v22 = vcombine.high %v1751_v62, %v1751_v62 }
 0x221   :  { %v2521_v58 = vadd.f32 %v2520_v3, %v2519_v63  ;;  %v2224_v3 = vsel %vm8616_vm1, %v1735_v53, 0.0  ;;  %v2526_v63 = vsel %vm1166_vm6, %v2349_v12, 0.0  ;;  %v8619_v53 = vld [vmem:[#allocation62_spill] sm:$0xff] }
 0x222   :  { %v2352_v26 = vmul.f32 %v2224_v3, %v2224_v3  ;;  %vm8620_vm1 = vcmp.lt.s32.totalorder %v8619_v53, %v4502_v14  ;;  %v1754_v3 = vcombine.high %v6060_v49, %v6060_v49  ;;  %v1761_v53 = vrot.slane %v6060_v49, %v4493_v6 }
 0x223   :  { %v2523_v25 = vadd.f32 %v2522_v2, %v2521_v58  ;;  %v2225_v58 = vsel %vm8618_vm13, %v1734_v16, 0.0  ;;  %v2226_v20 = vsel %vm8620_vm1, %v1736_v9, 0.0  ;;  %v8621_v16 = vld [vmem:[#allocation63_spill] sm:$0xff]  ;;  %v8623_v9 = vld [vmem:[#allocation64_spill] sm:$0xff] }
 0x224   :  { %vm8622_vm13 = vcmp.lt.s32.totalorder %v8621_v16, %v4502_v14  ;;  %v2354_v15 = vmul.f32 %v2226_v20, %v2226_v20  ;;  %v2532_v52 = vsel %vm1166_vm6, %v2352_v26, 0.0  ;;  %vm8624_vm1 = vcmp.lt.s32.totalorder %v8623_v9, %v4502_v14  ;;  %v4369_v20 = vld [vmem:[#allocation4 + $0x80] sm:$0xff] }
 0x225   :  { %v2525_v45 = vadd.f32 %v2524_v1, %v2523_v25  ;;  %v2353_v25 = vmul.f32 %v2225_v58, %v2225_v58  ;;  %v2530_v1 = vsel %vm1166_vm6, %v2351_v8, 0.0  ;;  %v6084_v26 = vsub.f32 %v4369_v20, %v5722_v35 }
 0x226   :  { %v2536_v17 = vsel %vm1166_vm6, %v2354_v15, 0.0  ;;  %v1768_v41 = vrot.slane %v1754_v3, %v4493_v6  ;;  %v1769_v9 = vcombine.high %v1761_v53, %v1761_v53 }
 0x227   :  { %v2527_v2 = vadd.f32 %v2526_v63, %v2525_v45  ;;  %v2227_v45 = vsel %vm8622_vm13, %v1744_v30, 0.0  ;;  %v8625_v30 = vld [vmem:[#allocation65_spill] sm:$0xff] }
 0x228   :  { %v2355_v58 = vmul.f32 %v2227_v45, %v2227_v45  ;;  %vm8626_vm13 = vcmp.lt.s32.totalorder %v8625_v30, %v4502_v14  ;;  %v1770_v20 = vcombine.high %v1768_v41, %v1768_v41 }
 0x229   :  { %v2529_v12 = vadd.f32 %v2528_v43, %v2527_v2  ;;  %v2228_v43 = vsel %vm8624_vm1, %v1752_v56, 0.0  ;;  %v2534_v2 = vsel %vm1166_vm6, %v2353_v25, 0.0  ;;  %v8627_v56 = vld [vmem:[#allocation66_spill] sm:$0xff] }
 0x22a   :  { %v2356_v16 = vmul.f32 %v2228_v43, %v2228_v43  ;;  %vm8628_vm1 = vcmp.lt.s32.totalorder %v8627_v56, %v4502_v14  ;;  %v1771_v43 = vcombine.high %v6084_v26, %v6084_v26  ;;  %v1778_v56 = vrot.slane %v6084_v26, %v4493_v6 }
 0x22b   :  { %v2531_v63 = vadd.f32 %v2530_v1, %v2529_v12  ;;  %v2229_v12 = vsel %vm8626_vm13, %v1751_v62, 0.0  ;;  %v2230_v45 = vsel %vm8628_vm1, %v1753_v22, 0.0  ;;  %v8629_v62 = vld [vmem:[#allocation67_spill] sm:$0xff]  ;;  %v8631_v22 = vld [vmem:[#allocation68_spill] sm:$0xff] }
 0x22c   :  { %vm8630_vm13 = vcmp.lt.s32.totalorder %v8629_v62, %v4502_v14  ;;  %v2358_v15 = vmul.f32 %v2230_v45, %v2230_v45  ;;  %v2540_v3 = vsel %vm1166_vm6, %v2356_v16, 0.0  ;;  %vm8632_vm1 = vcmp.lt.s32.totalorder %v8631_v22, %v4502_v14  ;;  %v4370_v45 = vld [vmem:[#allocation4 + $0x88] sm:$0xff] }
 0x22d   :  { %v2533_v8 = vadd.f32 %v2532_v52, %v2531_v63  ;;  %v2357_v63 = vmul.f32 %v2229_v12, %v2229_v12  ;;  %v2538_v52 = vsel %vm1166_vm6, %v2355_v58, 0.0  ;;  %v6108_v16 = vsub.f32 %v4370_v45, %v5722_v35 }
 0x22e   :  { %v2544_v30 = vsel %vm1166_vm6, %v2358_v15, 0.0  ;;  %v1785_v34 = vrot.slane %v1771_v43, %v4493_v6  ;;  %v1786_v22 = vcombine.high %v1778_v56, %v1778_v56 }
 0x22f   :  { %v2535_v1 = vadd.f32 %v2534_v2, %v2533_v8  ;;  %v2231_v8 = vsel %vm8630_vm13, %v1761_v53, 0.0  ;;  %v8633_v53 = vld [vmem:[#allocation69_spill] sm:$0xff] }
 0x230   :  { %v2359_v12 = vmul.f32 %v2231_v8, %v2231_v8  ;;  %vm8634_vm13 = vcmp.lt.s32.totalorder %v8633_v53, %v4502_v14  ;;  %v1787_v45 = vcombine.high %v1785_v34, %v1785_v34 }
 0x231   :  { %v2537_v25 = vadd.f32 %v2536_v17, %v2535_v1  ;;  %v2232_v17 = vsel %vm8632_vm1, %v1769_v9, 0.0  ;;  %v2542_v1 = vsel %vm1166_vm6, %v2357_v63, 0.0  ;;  %v8635_v9 = vld [vmem:[#allocation70_spill] sm:$0xff] }
 0x232   :  { %v2360_v62 = vmul.f32 %v2232_v17, %v2232_v17  ;;  %vm8636_vm1 = vcmp.lt.s32.totalorder %v8635_v9, %v4502_v14  ;;  %v1788_v17 = vcombine.high %v6108_v16, %v6108_v16  ;;  %v1795_v9 = vrot.slane %v6108_v16, %v4493_v6 }
 0x233   :  { %v2539_v2 = vadd.f32 %v2538_v52, %v2537_v25  ;;  %v2233_v25 = vsel %vm8634_vm13, %v1768_v41, 0.0  ;;  %v2234_v8 = vsel %vm8636_vm1, %v1770_v20, 0.0  ;;  %v8637_v41 = vld [vmem:[#allocation71_spill] sm:$0xff]  ;;  %v8639_v20 = vld [vmem:[#allocation72_spill] sm:$0xff] }
 0x234   :  { %vm8638_vm13 = vcmp.lt.s32.totalorder %v8637_v41, %v4502_v14  ;;  %v2362_v15 = vmul.f32 %v2234_v8, %v2234_v8  ;;  %v2548_v43 = vsel %vm1166_vm6, %v2360_v62, 0.0  ;;  %vm8640_vm1 = vcmp.lt.s32.totalorder %v8639_v20, %v4502_v14  ;;  %v4371_v8 = vld [vmem:[#allocation4 + $0x90] sm:$0xff] }
 0x235   :  { %v2541_v58 = vadd.f32 %v2540_v3, %v2539_v2  ;;  %v2361_v2 = vmul.f32 %v2233_v25, %v2233_v25  ;;  %v2546_v3 = vsel %vm1166_vm6, %v2359_v12, 0.0  ;;  %v6132_v62 = vsub.f32 %v4371_v8, %v5722_v35 }
 0x236   :  { %v2552_v53 = vsel %vm1166_vm6, %v2362_v15, 0.0  ;;  %v1802_v19 = vrot.slane %v1788_v17, %v4493_v6  ;;  %v1803_v20 = vcombine.high %v1795_v9, %v1795_v9 }
 0x237   :  { %v2543_v52 = vadd.f32 %v2542_v1, %v2541_v58  ;;  %v2235_v58 = vsel %vm8638_vm13, %v1778_v56, 0.0  ;;  %v8641_v56 = vld [vmem:[#allocation73_spill] sm:$0xff] }
 0x238   :  { %v2363_v25 = vmul.f32 %v2235_v58, %v2235_v58  ;;  %vm8642_vm13 = vcmp.lt.s32.totalorder %v8641_v56, %v4502_v14  ;;  %v1804_v8 = vcombine.high %v1802_v19, %v1802_v19 }
 0x239   :  { %v2545_v63 = vadd.f32 %v2544_v30, %v2543_v52  ;;  %v2236_v30 = vsel %vm8640_vm1, %v1786_v22, 0.0  ;;  %v2550_v52 = vsel %vm1166_vm6, %v2361_v2, 0.0  ;;  %v8643_v22 = vld [vmem:[#allocation74_spill] sm:$0xff] }
 0x23a   :  { %v2364_v41 = vmul.f32 %v2236_v30, %v2236_v30  ;;  %vm8644_vm1 = vcmp.lt.s32.totalorder %v8643_v22, %v4502_v14  ;;  %v1805_v30 = vcombine.high %v6132_v62, %v6132_v62  ;;  %v1812_v22 = vrot.slane %v6132_v62, %v4493_v6 }
 0x23b   :  { %v2547_v1 = vadd.f32 %v2546_v3, %v2545_v63  ;;  %v2237_v63 = vsel %vm8642_vm13, %v1785_v34, 0.0  ;;  %v2238_v58 = vsel %vm8644_vm1, %v1787_v45, 0.0  ;;  %v8645_v34 = vld [vmem:[#allocation75_spill] sm:$0xff]  ;;  %v8647_v45 = vld [vmem:[#allocation76_spill] sm:$0xff] }
 0x23c   :  { %vm8646_vm13 = vcmp.lt.s32.totalorder %v8645_v34, %v4502_v14  ;;  %v2366_v15 = vmul.f32 %v2238_v58, %v2238_v58  ;;  %v2556_v17 = vsel %vm1166_vm6, %v2364_v41, 0.0  ;;  %vm8648_vm1 = vcmp.lt.s32.totalorder %v8647_v45, %v4502_v14  ;;  %v4372_v58 = vld [vmem:[#allocation4 + $0x98] sm:$0xff] }
 0x23d   :  { %v2549_v12 = vadd.f32 %v2548_v43, %v2547_v1  ;;  %v2365_v1 = vmul.f32 %v2237_v63, %v2237_v63  ;;  %v2554_v43 = vsel %vm1166_vm6, %v2363_v25, 0.0  ;;  %v6156_v41 = vsub.f32 %v4372_v58, %v5722_v35 }
 0x23e   :  { %v2560_v56 = vsel %vm1166_vm6, %v2366_v15, 0.0  ;;  %v1819_v60 = vrot.slane %v1805_v30, %v4493_v6  ;;  %v1820_v45 = vcombine.high %v1812_v22, %v1812_v22 }
 0x23f   :  { %v2551_v3 = vadd.f32 %v2550_v52, %v2549_v12  ;;  %v2239_v12 = vsel %vm8646_vm13, %v1795_v9, 0.0  ;;  %v8649_v9 = vld [vmem:[#allocation77_spill] sm:$0xff] }
 0x240   :  { %v2367_v63 = vmul.f32 %v2239_v12, %v2239_v12  ;;  %vm8650_vm13 = vcmp.lt.s32.totalorder %v8649_v9, %v4502_v14  ;;  %v1821_v58 = vcombine.high %v1819_v60, %v1819_v60 }
 0x241   :  { %v2553_v2 = vadd.f32 %v2552_v53, %v2551_v3  ;;  %v2240_v53 = vsel %vm8648_vm1, %v1803_v20, 0.0  ;;  %v2558_v3 = vsel %vm1166_vm6, %v2365_v1, 0.0  ;;  %v8651_v20 = vld [vmem:[#allocation78_spill] sm:$0xff] }
 0x242   :  { %v2368_v34 = vmul.f32 %v2240_v53, %v2240_v53  ;;  %vm8652_vm1 = vcmp.lt.s32.totalorder %v8651_v20, %v4502_v14  ;;  %v1822_v53 = vcombine.high %v6156_v41, %v6156_v41  ;;  %v1829_v20 = vrot.slane %v6156_v41, %v4493_v6 }
 0x243   :  { %v2555_v52 = vadd.f32 %v2554_v43, %v2553_v2  ;;  %v2241_v2 = vsel %vm8650_vm13, %v1802_v19, 0.0  ;;  %v2242_v12 = vsel %vm8652_vm1, %v1804_v8, 0.0  ;;  %v8653_v19 = vld [vmem:[#allocation79_spill] sm:$0xff]  ;;  %v8655_v8 = vld [vmem:[#allocation80_spill] sm:$0xff] }
 0x244   :  { %vm8654_vm13 = vcmp.lt.s32.totalorder %v8653_v19, %v4502_v14  ;;  %v2370_v15 = vmul.f32 %v2242_v12, %v2242_v12  ;;  %v2564_v30 = vsel %vm1166_vm6, %v2368_v34, 0.0  ;;  %vm8656_vm1 = vcmp.lt.s32.totalorder %v8655_v8, %v4502_v14  ;;  %v4373_v12 = vld [vmem:[#allocation4 + $0xa0] sm:$0xff] }
 0x245   :  { %v2557_v25 = vadd.f32 %v2556_v17, %v2555_v52  ;;  %v2369_v52 = vmul.f32 %v2241_v2, %v2241_v2  ;;  %v2562_v17 = vsel %vm1166_vm6, %v2367_v63, 0.0  ;;  %v6180_v34 = vsub.f32 %v4373_v12, %v5722_v35 }
 0x246   :  { %v2568_v9 = vsel %vm1166_vm6, %v2370_v15, 0.0  ;;  %v1836_v54 = vrot.slane %v1822_v53, %v4493_v6  ;;  %v1837_v8 = vcombine.high %v1829_v20, %v1829_v20 }
 0x247   :  { %v2559_v43 = vadd.f32 %v2558_v3, %v2557_v25  ;;  %v2243_v25 = vsel %vm8654_vm13, %v1812_v22, 0.0  ;;  %v8657_v22 = vld [vmem:[#allocation81_spill] sm:$0xff] }
 0x248   :  { %v2371_v2 = vmul.f32 %v2243_v25, %v2243_v25  ;;  %vm8658_vm13 = vcmp.lt.s32.totalorder %v8657_v22, %v4502_v14  ;;  %v1838_v12 = vcombine.high %v1836_v54, %v1836_v54 }
 0x249   :  { %v2561_v1 = vadd.f32 %v2560_v56, %v2559_v43  ;;  %v2244_v56 = vsel %vm8656_vm1, %v1820_v45, 0.0  ;;  %v2566_v43 = vsel %vm1166_vm6, %v2369_v52, 0.0  ;;  %v8659_v45 = vld [vmem:[#allocation82_spill] sm:$0xff] }
 0x24a   :  { %v2372_v19 = vmul.f32 %v2244_v56, %v2244_v56  ;;  %vm8660_vm1 = vcmp.lt.s32.totalorder %v8659_v45, %v4502_v14  ;;  %v1839_v56 = vcombine.high %v6180_v34, %v6180_v34  ;;  %v1846_v45 = vrot.slane %v6180_v34, %v4493_v6 }
 0x24b   :  { %v2563_v3 = vadd.f32 %v2562_v17, %v2561_v1  ;;  %v2245_v1 = vsel %vm8658_vm13, %v1819_v60, 0.0  ;;  %v2246_v25 = vsel %vm8660_vm1, %v1821_v58, 0.0  ;;  %v8661_v60 = vld [vmem:[#allocation83_spill] sm:$0xff]  ;;  %v8663_v58 = vld [vmem:[#allocation84_spill] sm:$0xff] }
 0x24c   :  { %vm8662_vm13 = vcmp.lt.s32.totalorder %v8661_v60, %v4502_v14  ;;  %v2374_v15 = vmul.f32 %v2246_v25, %v2246_v25  ;;  %v2572_v53 = vsel %vm1166_vm6, %v2372_v19, 0.0  ;;  %vm8664_vm1 = vcmp.lt.s32.totalorder %v8663_v58, %v4502_v14  ;;  %v4374_v25 = vld [vmem:[#allocation4 + $0xa8] sm:$0xff] }
 0x24d   :  { %v2565_v63 = vadd.f32 %v2564_v30, %v2563_v3  ;;  %v2373_v3 = vmul.f32 %v2245_v1, %v2245_v1  ;;  %v2570_v30 = vsel %vm1166_vm6, %v2371_v2, 0.0  ;;  %v6204_v19 = vsub.f32 %v4374_v25, %v5722_v35 }
 0x24e   :  { %v2576_v22 = vsel %vm1166_vm6, %v2374_v15, 0.0  ;;  %v1853_v44 = vrot.slane %v1839_v56, %v4493_v6  ;;  %v1854_v58 = vcombine.high %v1846_v45, %v1846_v45 }
 0x24f   :  { %v2567_v17 = vadd.f32 %v2566_v43, %v2565_v63  ;;  %v2247_v63 = vsel %vm8662_vm13, %v1829_v20, 0.0  ;;  %v8665_v20 = vld [vmem:[#allocation85_spill] sm:$0xff] }
 0x250   :  { %v2375_v1 = vmul.f32 %v2247_v63, %v2247_v63  ;;  %vm8666_vm13 = vcmp.lt.s32.totalorder %v8665_v20, %v4502_v14  ;;  %v1855_v25 = vcombine.high %v1853_v44, %v1853_v44 }
 0x251   :  { %v2569_v52 = vadd.f32 %v2568_v9, %v2567_v17  ;;  %v2248_v9 = vsel %vm8664_vm1, %v1837_v8, 0.0  ;;  %v2574_v17 = vsel %vm1166_vm6, %v2373_v3, 0.0  ;;  %v8667_v8 = vld [vmem:[#allocation86_spill] sm:$0xff] }
 0x252   :  { %v2376_v60 = vmul.f32 %v2248_v9, %v2248_v9  ;;  %vm8668_vm1 = vcmp.lt.s32.totalorder %v8667_v8, %v4502_v14  ;;  %v1856_v9 = vcombine.high %v6204_v19, %v6204_v19  ;;  %v1863_v8 = vrot.slane %v6204_v19, %v4493_v6 }
 0x253   :  { %v2571_v43 = vadd.f32 %v2570_v30, %v2569_v52  ;;  %v2249_v52 = vsel %vm8666_vm13, %v1836_v54, 0.0  ;;  %v2250_v63 = vsel %vm8668_vm1, %v1838_v12, 0.0  ;;  %v8669_v54 = vld [vmem:[#allocation87_spill] sm:$0xff]  ;;  %v8671_v12 = vld [vmem:[#allocation88_spill] sm:$0xff] }
 0x254   :  { %vm8670_vm13 = vcmp.lt.s32.totalorder %v8669_v54, %v4502_v14  ;;  %v2378_v15 = vmul.f32 %v2250_v63, %v2250_v63  ;;  %v2580_v56 = vsel %vm1166_vm6, %v2376_v60, 0.0  ;;  %vm8672_vm1 = vcmp.lt.s32.totalorder %v8671_v12, %v4502_v14  ;;  %v4375_v63 = vld [vmem:[#allocation4 + $0xb0] sm:$0xff] }
 0x255   :  { %v2573_v2 = vadd.f32 %v2572_v53, %v2571_v43  ;;  %v2377_v43 = vmul.f32 %v2249_v52, %v2249_v52  ;;  %v2578_v53 = vsel %vm1166_vm6, %v2375_v1, 0.0  ;;  %v6228_v60 = vsub.f32 %v4375_v63, %v5722_v35 }
 0x256   :  { %v2584_v20 = vsel %vm1166_vm6, %v2378_v15, 0.0  ;;  %v1870_v28 = vrot.slane %v1856_v9, %v4493_v6  ;;  %v1871_v12 = vcombine.high %v1863_v8, %v1863_v8 }
 0x257   :  { %v2575_v30 = vadd.f32 %v2574_v17, %v2573_v2  ;;  %v2251_v2 = vsel %vm8670_vm13, %v1846_v45, 0.0  ;;  %v8673_v45 = vld [vmem:[#allocation89_spill] sm:$0xff] }
 0x258   :  { %v2379_v52 = vmul.f32 %v2251_v2, %v2251_v2  ;;  %vm8674_vm13 = vcmp.lt.s32.totalorder %v8673_v45, %v4502_v14  ;;  %v1872_v63 = vcombine.high %v1870_v28, %v1870_v28 }
 0x259   :  { %v2577_v3 = vadd.f32 %v2576_v22, %v2575_v30  ;;  %v2252_v22 = vsel %vm8672_vm1, %v1854_v58, 0.0  ;;  %v2582_v30 = vsel %vm1166_vm6, %v2377_v43, 0.0  ;;  %v8675_v58 = vld [vmem:[#allocation90_spill] sm:$0xff] }
 0x25a   :  { %v2380_v54 = vmul.f32 %v2252_v22, %v2252_v22  ;;  %vm8676_vm1 = vcmp.lt.s32.totalorder %v8675_v58, %v4502_v14  ;;  %v1873_v22 = vcombine.high %v6228_v60, %v6228_v60  ;;  %v1880_v58 = vrot.slane %v6228_v60, %v4493_v6 }
 0x25b   :  { %v2579_v17 = vadd.f32 %v2578_v53, %v2577_v3  ;;  %v2253_v3 = vsel %vm8674_vm13, %v1853_v44, 0.0  ;;  %v2254_v2 = vsel %vm8676_vm1, %v1855_v25, 0.0  ;;  %v8677_v44 = vld [vmem:[#allocation91_spill] sm:$0xff]  ;;  %v8679_v25 = vld [vmem:[#allocation92_spill] sm:$0xff] }
 0x25c   :  { %vm8678_vm13 = vcmp.lt.s32.totalorder %v8677_v44, %v4502_v14  ;;  %v2382_v15 = vmul.f32 %v2254_v2, %v2254_v2  ;;  %v2588_v9 = vsel %vm1166_vm6, %v2380_v54, 0.0  ;;  %vm8680_vm1 = vcmp.lt.s32.totalorder %v8679_v25, %v4502_v14  ;;  %v4376_v2 = vld [vmem:[#allocation4 + $0xb8] sm:$0xff] }
 0x25d   :  { %v2581_v1 = vadd.f32 %v2580_v56, %v2579_v17  ;;  %v2381_v17 = vmul.f32 %v2253_v3, %v2253_v3  ;;  %v2586_v56 = vsel %vm1166_vm6, %v2379_v52, 0.0  ;;  %v6252_v54 = vsub.f32 %v4376_v2, %v5722_v35 }
 0x25e   :  { %v2592_v45 = vsel %vm1166_vm6, %v2382_v15, 0.0  ;;  %v1887_v21 = vrot.slane %v1873_v22, %v4493_v6  ;;  %v1888_v25 = vcombine.high %v1880_v58, %v1880_v58 }
 0x25f   :  { %v2583_v53 = vadd.f32 %v2582_v30, %v2581_v1  ;;  %v2255_v1 = vsel %vm8678_vm13, %v1863_v8, 0.0  ;;  %v8681_v8 = vld [vmem:[#allocation93_spill] sm:$0xff] }
 0x260   :  { %v2383_v3 = vmul.f32 %v2255_v1, %v2255_v1  ;;  %vm8682_vm13 = vcmp.lt.s32.totalorder %v8681_v8, %v4502_v14  ;;  %v1889_v2 = vcombine.high %v1887_v21, %v1887_v21 }
 0x261   :  { %v2585_v43 = vadd.f32 %v2584_v20, %v2583_v53  ;;  %v2256_v20 = vsel %vm8680_vm1, %v1871_v12, 0.0  ;;  %v2590_v53 = vsel %vm1166_vm6, %v2381_v17, 0.0  ;;  %v8683_v12 = vld [vmem:[#allocation94_spill] sm:$0xff] }
 0x262   :  { %v2384_v44 = vmul.f32 %v2256_v20, %v2256_v20  ;;  %vm8684_vm1 = vcmp.lt.s32.totalorder %v8683_v12, %v4502_v14  ;;  %v1890_v20 = vcombine.high %v6252_v54, %v6252_v54  ;;  %v1897_v12 = vrot.slane %v6252_v54, %v4493_v6 }
 0x263   :  { %v2587_v30 = vadd.f32 %v2586_v56, %v2585_v43  ;;  %v2257_v43 = vsel %vm8682_vm13, %v1870_v28, 0.0  ;;  %v2258_v1 = vsel %vm8684_vm1, %v1872_v63, 0.0  ;;  %v8685_v28 = vld [vmem:[#allocation95_spill] sm:$0xff]  ;;  %v8687_v63 = vld [vmem:[#allocation96_spill] sm:$0xff] }
 0x264   :  { %vm8686_vm13 = vcmp.lt.s32.totalorder %v8685_v28, %v4502_v14  ;;  %v2386_v15 = vmul.f32 %v2258_v1, %v2258_v1  ;;  %v2596_v22 = vsel %vm1166_vm6, %v2384_v44, 0.0  ;;  %vm8688_vm1 = vcmp.lt.s32.totalorder %v8687_v63, %v4502_v14  ;;  %v4377_v1 = vld [vmem:[#allocation4 + $0xc0] sm:$0xff] }
 0x265   :  { %v2589_v52 = vadd.f32 %v2588_v9, %v2587_v30  ;;  %v2385_v30 = vmul.f32 %v2257_v43, %v2257_v43  ;;  %v2594_v9 = vsel %vm1166_vm6, %v2383_v3, 0.0  ;;  %v6276_v44 = vsub.f32 %v4377_v1, %v5722_v35 }
 0x266   :  { %v2600_v8 = vsel %vm1166_vm6, %v2386_v15, 0.0  ;;  %v1904_v7 = vrot.slane %v1890_v20, %v4493_v6  ;;  %v1905_v63 = vcombine.high %v1897_v12, %v1897_v12 }
 0x267   :  { %v2591_v56 = vadd.f32 %v2590_v53, %v2589_v52  ;;  %v2259_v52 = vsel %vm8686_vm13, %v1880_v58, 0.0  ;;  %v8689_v58 = vld [vmem:[#allocation97_spill] sm:$0xff] }
 0x268   :  { %v2387_v43 = vmul.f32 %v2259_v52, %v2259_v52  ;;  %vm8690_vm13 = vcmp.lt.s32.totalorder %v8689_v58, %v4502_v14  ;;  %v1906_v1 = vcombine.high %v1904_v7, %v1904_v7 }
 0x269   :  { %v2593_v17 = vadd.f32 %v2592_v45, %v2591_v56  ;;  %v2260_v45 = vsel %vm8688_vm1, %v1888_v25, 0.0  ;;  %v2598_v56 = vsel %vm1166_vm6, %v2385_v30, 0.0  ;;  %v8691_v25 = vld [vmem:[#allocation98_spill] sm:$0xff] }
 0x26a   :  { %v2388_v28 = vmul.f32 %v2260_v45, %v2260_v45  ;;  %vm8692_vm1 = vcmp.lt.s32.totalorder %v8691_v25, %v4502_v14  ;;  %v1907_v45 = vcombine.high %v6276_v44, %v6276_v44  ;;  %v1914_v25 = vrot.slane %v6276_v44, %v4493_v6 }
 0x26b   :  { %v2595_v53 = vadd.f32 %v2594_v9, %v2593_v17  ;;  %v2261_v17 = vsel %vm8690_vm13, %v1887_v21, 0.0  ;;  %v2262_v52 = vsel %vm8692_vm1, %v1889_v2, 0.0  ;;  %v8693_v21 = vld [vmem:[#allocation99_spill] sm:$0xff]  ;;  %v8695_v2 = vld [vmem:[#allocation100_spill] sm:$0xff] }
 0x26c   :  { %vm8694_vm13 = vcmp.lt.s32.totalorder %v8693_v21, %v4502_v14  ;;  %v2390_v15 = vmul.f32 %v2262_v52, %v2262_v52  ;;  %v2604_v20 = vsel %vm1166_vm6, %v2388_v28, 0.0  ;;  %vm8696_vm1 = vcmp.lt.s32.totalorder %v8695_v2, %v4502_v14  ;;  %v4378_v52 = vld [vmem:[#allocation4 + $0xc8] sm:$0xff] }
 0x26d   :  { %v2597_v3 = vadd.f32 %v2596_v22, %v2595_v53  ;;  %v2389_v53 = vmul.f32 %v2261_v17, %v2261_v17  ;;  %v2602_v22 = vsel %vm1166_vm6, %v2387_v43, 0.0  ;;  %v6300_v28 = vsub.f32 %v4378_v52, %v5722_v35 }
 0x26e   :  { %v2608_v58 = vsel %vm1166_vm6, %v2390_v15, 0.0  ;;  %v1921_v55 = vrot.slane %v1907_v45, %v4493_v6  ;;  %v1922_v2 = vcombine.high %v1914_v25, %v1914_v25 }
 0x26f   :  { %v2599_v9 = vadd.f32 %v2598_v56, %v2597_v3  ;;  %v2263_v3 = vsel %vm8694_vm13, %v1897_v12, 0.0  ;;  %v8697_v12 = vld [vmem:[#allocation101_spill] sm:$0xff] }
 0x270   :  { %v2391_v17 = vmul.f32 %v2263_v3, %v2263_v3  ;;  %vm8698_vm13 = vcmp.lt.s32.totalorder %v8697_v12, %v4502_v14  ;;  %v1923_v52 = vcombine.high %v1921_v55, %v1921_v55 }
 0x271   :  { %v2601_v30 = vadd.f32 %v2600_v8, %v2599_v9  ;;  %v2264_v8 = vsel %vm8696_vm1, %v1905_v63, 0.0  ;;  %v2606_v9 = vsel %vm1166_vm6, %v2389_v53, 0.0  ;;  %v8699_v63 = vld [vmem:[#allocation102_spill] sm:$0xff] }
 0x272   :  { %v2392_v21 = vmul.f32 %v2264_v8, %v2264_v8  ;;  %vm8700_vm1 = vcmp.lt.s32.totalorder %v8699_v63, %v4502_v14  ;;  %v1924_v8 = vcombine.high %v6300_v28, %v6300_v28  ;;  %v1931_v63 = vrot.slane %v6300_v28, %v4493_v6 }
 0x273   :  { %v2603_v56 = vadd.f32 %v2602_v22, %v2601_v30  ;;  %v2265_v30 = vsel %vm8698_vm13, %v1904_v7, 0.0  ;;  %v2266_v3 = vsel %vm8700_vm1, %v1906_v1, 0.0  ;;  %v8701_v7 = vld [vmem:[#allocation103_spill] sm:$0xff]  ;;  %v8703_v1 = vld [vmem:[#allocation104_spill] sm:$0xff] }
 0x274   :  { %vm8702_vm13 = vcmp.lt.s32.totalorder %v8701_v7, %v4502_v14  ;;  %v2394_v15 = vmul.f32 %v2266_v3, %v2266_v3  ;;  %v2612_v45 = vsel %vm1166_vm6, %v2392_v21, 0.0  ;;  %vm8704_vm1 = vcmp.lt.s32.totalorder %v8703_v1, %v4502_v14  ;;  %v4379_v3 = vld [vmem:[#allocation4 + $0xd0] sm:$0xff] }
 0x275   :  { %v2605_v43 = vadd.f32 %v2604_v20, %v2603_v56  ;;  %v2393_v56 = vmul.f32 %v2265_v30, %v2265_v30  ;;  %v2610_v20 = vsel %vm1166_vm6, %v2391_v17, 0.0  ;;  %v6324_v21 = vsub.f32 %v4379_v3, %v5722_v35 }
 0x276   :  { %v2616_v12 = vsel %vm1166_vm6, %v2394_v15, 0.0  ;;  %v1938_v51 = vrot.slane %v1924_v8, %v4493_v6  ;;  %v1939_v1 = vcombine.high %v1931_v63, %v1931_v63 }
 0x277   :  { %v2607_v22 = vadd.f32 %v2606_v9, %v2605_v43  ;;  %v2267_v43 = vsel %vm8702_vm13, %v1914_v25, 0.0  ;;  %v8705_v25 = vld [vmem:[#allocation105_spill] sm:$0xff] }
 0x278   :  { %v2395_v30 = vmul.f32 %v2267_v43, %v2267_v43  ;;  %vm8706_vm13 = vcmp.lt.s32.totalorder %v8705_v25, %v4502_v14  ;;  %v1940_v3 = vcombine.high %v1938_v51, %v1938_v51 }
 0x279   :  { %v2609_v53 = vadd.f32 %v2608_v58, %v2607_v22  ;;  %v2268_v58 = vsel %vm8704_vm1, %v1922_v2, 0.0  ;;  %v2614_v22 = vsel %vm1166_vm6, %v2393_v56, 0.0  ;;  %v8707_v2 = vld [vmem:[#allocation106_spill] sm:$0xff] }
 0x27a   :  { %v2396_v7 = vmul.f32 %v2268_v58, %v2268_v58  ;;  %vm8708_vm1 = vcmp.lt.s32.totalorder %v8707_v2, %v4502_v14  ;;  %v1941_v58 = vcombine.high %v6324_v21, %v6324_v21  ;;  %v1948_v2 = vrot.slane %v6324_v21, %v4493_v6 }
 0x27b   :  { %v2611_v9 = vadd.f32 %v2610_v20, %v2609_v53  ;;  %v2269_v53 = vsel %vm8706_vm13, %v1921_v55, 0.0  ;;  %v2270_v43 = vsel %vm8708_vm1, %v1923_v52, 0.0  ;;  %v8709_v55 = vld [vmem:[#allocation107_spill] sm:$0xff]  ;;  %v8711_v52 = vld [vmem:[#allocation108_spill] sm:$0xff] }
 0x27c   :  { %vm8710_vm13 = vcmp.lt.s32.totalorder %v8709_v55, %v4502_v14  ;;  %v2398_v15 = vmul.f32 %v2270_v43, %v2270_v43  ;;  %v2620_v8 = vsel %vm1166_vm6, %v2396_v7, 0.0  ;;  %vm8712_vm1 = vcmp.lt.s32.totalorder %v8711_v52, %v4502_v14  ;;  %v4380_v43 = vld [vmem:[#allocation4 + $0xd8] sm:$0xff] }
 0x27d   :  { %v2613_v17 = vadd.f32 %v2612_v45, %v2611_v9  ;;  %v2397_v9 = vmul.f32 %v2269_v53, %v2269_v53  ;;  %v2618_v45 = vsel %vm1166_vm6, %v2395_v30, 0.0  ;;  %v6348_v7 = vsub.f32 %v4380_v43, %v5722_v35 }
 0x27e   :  { %v2624_v25 = vsel %vm1166_vm6, %v2398_v15, 0.0  ;;  %v1955_v42 = vrot.slane %v1941_v58, %v4493_v6  ;;  %v1956_v52 = vcombine.high %v1948_v2, %v1948_v2 }
 0x27f   :  { %v2615_v20 = vadd.f32 %v2614_v22, %v2613_v17  ;;  %v2271_v17 = vsel %vm8710_vm13, %v1931_v63, 0.0  ;;  %v8713_v63 = vld [vmem:[#allocation109_spill] sm:$0xff] }
 0x280   :  { %v2399_v53 = vmul.f32 %v2271_v17, %v2271_v17  ;;  %vm8714_vm13 = vcmp.lt.s32.totalorder %v8713_v63, %v4502_v14  ;;  %v1957_v43 = vcombine.high %v1955_v42, %v1955_v42 }
 0x281   :  { %v2617_v56 = vadd.f32 %v2616_v12, %v2615_v20  ;;  %v2272_v12 = vsel %vm8712_vm1, %v1939_v1, 0.0  ;;  %v2622_v20 = vsel %vm1166_vm6, %v2397_v9, 0.0  ;;  %v8715_v1 = vld [vmem:[#allocation110_spill] sm:$0xff] }
 0x282   :  { %v2400_v55 = vmul.f32 %v2272_v12, %v2272_v12  ;;  %vm8716_vm1 = vcmp.lt.s32.totalorder %v8715_v1, %v4502_v14  ;;  %v1958_v12 = vcombine.high %v6348_v7, %v6348_v7  ;;  %v1965_v1 = vrot.slane %v6348_v7, %v4493_v6 }
 0x283   :  { %v2619_v22 = vadd.f32 %v2618_v45, %v2617_v56  ;;  %v2273_v56 = vsel %vm8714_vm13, %v1938_v51, 0.0  ;;  %v2274_v17 = vsel %vm8716_vm1, %v1940_v3, 0.0  ;;  %v8717_v51 = vld [vmem:[#allocation111_spill] sm:$0xff]  ;;  %v8719_v3 = vld [vmem:[#allocation112_spill] sm:$0xff] }
 0x284   :  { %vm8718_vm13 = vcmp.lt.s32.totalorder %v8717_v51, %v4502_v14  ;;  %v2402_v15 = vmul.f32 %v2274_v17, %v2274_v17  ;;  %v2628_v58 = vsel %vm1166_vm6, %v2400_v55, 0.0  ;;  %vm8720_vm1 = vcmp.lt.s32.totalorder %v8719_v3, %v4502_v14  ;;  %v4381_v17 = vld [vmem:[#allocation4 + $0xe0] sm:$0xff] }
 0x285   :  { %v2621_v30 = vadd.f32 %v2620_v8, %v2619_v22  ;;  %v2401_v22 = vmul.f32 %v2273_v56, %v2273_v56  ;;  %v2626_v8 = vsel %vm1166_vm6, %v2399_v53, 0.0  ;;  %v6372_v55 = vsub.f32 %v4381_v17, %v5722_v35 }
 0x286   :  { %v2632_v63 = vsel %vm1166_vm6, %v2402_v15, 0.0  ;;  %v1972_v29 = vrot.slane %v1958_v12, %v4493_v6  ;;  %v1973_v3 = vcombine.high %v1965_v1, %v1965_v1 }
 0x287   :  { %v2623_v45 = vadd.f32 %v2622_v20, %v2621_v30  ;;  %v2275_v30 = vsel %vm8718_vm13, %v1948_v2, 0.0  ;;  %v8721_v2 = vld [vmem:[#allocation113_spill] sm:$0xff] }
 0x288   :  { %v2403_v56 = vmul.f32 %v2275_v30, %v2275_v30  ;;  %vm8722_vm13 = vcmp.lt.s32.totalorder %v8721_v2, %v4502_v14  ;;  %v1974_v17 = vcombine.high %v1972_v29, %v1972_v29 }
 0x289   :  { %v2625_v9 = vadd.f32 %v2624_v25, %v2623_v45  ;;  %v2276_v25 = vsel %vm8720_vm1, %v1956_v52, 0.0  ;;  %v2630_v45 = vsel %vm1166_vm6, %v2401_v22, 0.0  ;;  %v8723_v52 = vld [vmem:[#allocation114_spill] sm:$0xff] }
 0x28a   :  { %v2404_v51 = vmul.f32 %v2276_v25, %v2276_v25  ;;  %vm8724_vm1 = vcmp.lt.s32.totalorder %v8723_v52, %v4502_v14  ;;  %v1975_v25 = vcombine.high %v6372_v55, %v6372_v55  ;;  %v1982_v52 = vrot.slane %v6372_v55, %v4493_v6 }
 0x28b   :  { %v2627_v20 = vadd.f32 %v2626_v8, %v2625_v9  ;;  %v2277_v9 = vsel %vm8722_vm13, %v1955_v42, 0.0  ;;  %v2278_v30 = vsel %vm8724_vm1, %v1957_v43, 0.0  ;;  %v8725_v42 = vld [vmem:[#allocation115_spill] sm:$0xff]  ;;  %v8727_v43 = vld [vmem:[#allocation116_spill] sm:$0xff] }
 0x28c   :  { %vm8726_vm13 = vcmp.lt.s32.totalorder %v8725_v42, %v4502_v14  ;;  %v2406_v15 = vmul.f32 %v2278_v30, %v2278_v30  ;;  %v2636_v12 = vsel %vm1166_vm6, %v2404_v51, 0.0  ;;  %vm8728_vm1 = vcmp.lt.s32.totalorder %v8727_v43, %v4502_v14  ;;  %v4382_v30 = vld [vmem:[#allocation4 + $0xe8] sm:$0xff] }
 0x28d   :  { %v2629_v53 = vadd.f32 %v2628_v58, %v2627_v20  ;;  %v2405_v20 = vmul.f32 %v2277_v9, %v2277_v9  ;;  %v2634_v58 = vsel %vm1166_vm6, %v2403_v56, 0.0  ;;  %v6396_v51 = vsub.f32 %v4382_v30, %v5722_v35 }
 0x28e   :  { %v2640_v2 = vsel %vm1166_vm6, %v2406_v15, 0.0  ;;  %v1989_v23 = vrot.slane %v1975_v25, %v4493_v6  ;;  %v1990_v43 = vcombine.high %v1982_v52, %v1982_v52 }
 0x28f   :  { %v2631_v8 = vadd.f32 %v2630_v45, %v2629_v53  ;;  %v2279_v53 = vsel %vm8726_vm13, %v1965_v1, 0.0  ;;  %v8729_v1 = vld [vmem:[#allocation117_spill] sm:$0xff] }
 0x290   :  { %v2407_v9 = vmul.f32 %v2279_v53, %v2279_v53  ;;  %vm8730_vm13 = vcmp.lt.s32.totalorder %v8729_v1, %v4502_v14  ;;  %v1991_v30 = vcombine.high %v1989_v23, %v1989_v23 }
 0x291   :  { %v2633_v22 = vadd.f32 %v2632_v63, %v2631_v8  ;;  %v2280_v63 = vsel %vm8728_vm1, %v1973_v3, 0.0  ;;  %v2638_v8 = vsel %vm1166_vm6, %v2405_v20, 0.0  ;;  %v8731_v3 = vld [vmem:[#allocation118_spill] sm:$0xff] }
 0x292   :  { %v2408_v42 = vmul.f32 %v2280_v63, %v2280_v63  ;;  %vm8732_vm1 = vcmp.lt.s32.totalorder %v8731_v3, %v4502_v14  ;;  %v1992_v63 = vcombine.high %v6396_v51, %v6396_v51  ;;  %v1999_v3 = vrot.slane %v6396_v51, %v4493_v6 }
 0x293   :  { %v2635_v45 = vadd.f32 %v2634_v58, %v2633_v22  ;;  %v2281_v22 = vsel %vm8730_vm13, %v1972_v29, 0.0  ;;  %v2282_v53 = vsel %vm8732_vm1, %v1974_v17, 0.0  ;;  %v8733_v29 = vld [vmem:[#allocation119_spill] sm:$0xff]  ;;  %v8735_v17 = vld [vmem:[#allocation120_spill] sm:$0xff] }
 0x294   :  { %vm8734_vm13 = vcmp.lt.s32.totalorder %v8733_v29, %v4502_v14  ;;  %v2410_v15 = vmul.f32 %v2282_v53, %v2282_v53  ;;  %v2644_v25 = vsel %vm1166_vm6, %v2408_v42, 0.0  ;;  %vm8736_vm1 = vcmp.lt.s32.totalorder %v8735_v17, %v4502_v14  ;;  %v4383_v53 = vld [vmem:[#allocation4 + $0xf0] sm:$0xff] }
 0x295   :  { %v2637_v56 = vadd.f32 %v2636_v12, %v2635_v45  ;;  %v2409_v45 = vmul.f32 %v2281_v22, %v2281_v22  ;;  %v2642_v12 = vsel %vm1166_vm6, %v2407_v9, 0.0  ;;  %v6420_v42 = vsub.f32 %v4383_v53, %v5722_v35 }
 0x296   :  { %v2648_v1 = vsel %vm1166_vm6, %v2410_v15, 0.0  ;;  %v2006_v11 = vrot.slane %v1992_v63, %v4493_v6  ;;  %v2007_v17 = vcombine.high %v1999_v3, %v1999_v3 }
 0x297   :  { %v2639_v58 = vadd.f32 %v2638_v8, %v2637_v56  ;;  %v2283_v56 = vsel %vm8734_vm13, %v1982_v52, 0.0  ;;  %v8737_v52 = vld [vmem:[#allocation121_spill] sm:$0xff] }
 0x298   :  { %v2411_v22 = vmul.f32 %v2283_v56, %v2283_v56  ;;  %vm8738_vm13 = vcmp.lt.s32.totalorder %v8737_v52, %v4502_v14  ;;  %v2008_v53 = vcombine.high %v2006_v11, %v2006_v11 }
 0x299   :  { %v2641_v20 = vadd.f32 %v2640_v2, %v2639_v58  ;;  %v2284_v2 = vsel %vm8736_vm1, %v1990_v43, 0.0  ;;  %v2646_v58 = vsel %vm1166_vm6, %v2409_v45, 0.0  ;;  %v8739_v43 = vld [vmem:[#allocation122_spill] sm:$0xff] }
 0x29a   :  { %v2412_v29 = vmul.f32 %v2284_v2, %v2284_v2  ;;  %vm8740_vm1 = vcmp.lt.s32.totalorder %v8739_v43, %v4502_v14  ;;  %v2009_v2 = vcombine.high %v6420_v42, %v6420_v42  ;;  %v2016_v43 = vrot.slane %v6420_v42, %v4493_v6 }
 0x29b   :  { %v2643_v8 = vadd.f32 %v2642_v12, %v2641_v20  ;;  %v2285_v20 = vsel %vm8738_vm13, %v1989_v23, 0.0  ;;  %v2286_v56 = vsel %vm8740_vm1, %v1991_v30, 0.0  ;;  %v8741_v23 = vld [vmem:[#allocation123_spill] sm:$0xff]  ;;  %v8743_v30 = vld [vmem:[#allocation124_spill] sm:$0xff] }
 0x29c   :  { %vm8742_vm13 = vcmp.lt.s32.totalorder %v8741_v23, %v4502_v14  ;;  %v2414_v15 = vmul.f32 %v2286_v56, %v2286_v56  ;;  %v2652_v63 = vsel %vm1166_vm6, %v2412_v29, 0.0  ;;  %vm8744_vm1 = vcmp.lt.s32.totalorder %v8743_v30, %v4502_v14  ;;  %v4384_v56 = vld [vmem:[#allocation4 + $0xf8] sm:$0xff] }
 0x29d   :  { %v2645_v9 = vadd.f32 %v2644_v25, %v2643_v8  ;;  %v2413_v8 = vmul.f32 %v2285_v20, %v2285_v20  ;;  %v2650_v25 = vsel %vm1166_vm6, %v2411_v22, 0.0  ;;  %v6444_v29 = vsub.f32 %v4384_v56, %v5722_v35 }
 0x29e   :  { %v2656_v52 = vsel %vm1166_vm6, %v2414_v15, 0.0  ;;  %v2023_v61 = vrot.slane %v2009_v2, %v4493_v6  ;;  %v2024_v30 = vcombine.high %v2016_v43, %v2016_v43 }
 0x29f   :  { %v2647_v12 = vadd.f32 %v2646_v58, %v2645_v9  ;;  %v2287_v9 = vsel %vm8742_vm13, %v1999_v3, 0.0  ;;  %v8745_v3 = vld [vmem:[#allocation125_spill] sm:$0xff] }
 0x2a0   :  { %v2415_v20 = vmul.f32 %v2287_v9, %v2287_v9  ;;  %vm8746_vm13 = vcmp.lt.s32.totalorder %v8745_v3, %v4502_v14 }
 0x2a1   :  { %v2649_v45 = vadd.f32 %v2648_v1, %v2647_v12  ;;  %v2288_v1 = vsel %vm8744_vm1, %v2007_v17, 0.0  ;;  %v2654_v12 = vsel %vm1166_vm6, %v2413_v8, 0.0  ;;  %v8747_v17 = vld [vmem:[#allocation126_spill] sm:$0xff] }
 0x2a2   :  { %v2416_v23 = vmul.f32 %v2288_v1, %v2288_v1  ;;  %vm8748_vm1 = vcmp.lt.s32.totalorder %v8747_v17, %v4502_v14  ;;  %v2026_v1 = vcombine.high %v6444_v29, %v6444_v29 }
 0x2a3   :  { %v2651_v58 = vadd.f32 %v2650_v25, %v2649_v45  ;;  %v2289_v45 = vsel %vm8746_vm13, %v2006_v11, 0.0  ;;  %v2290_v9 = vsel %vm8748_vm1, %v2008_v53, 0.0  ;;  %vm8749_vm13 = vcmp.lt.s32.totalorder %v5620_v4, %v4502_v14  ;;  %v8750_v53 = vld [vmem:[#allocation128_spill] sm:$0xff] }
 0x2a4   :  { %v2291_v11 = vsel %vm8749_vm13, %v2016_v43, 0.0  ;;  %v2418_v15 = vmul.f32 %v2290_v9, %v2290_v9  ;;  %v2660_v2 = vsel %vm1166_vm6, %v2416_v23, 0.0  ;;  %vm8751_vm1 = vcmp.lt.s32.totalorder %v8750_v53, %v4502_v14  ;;  %v8752_v43 = vld [vmem:[#allocation129_spill] sm:$0xff] }
 0x2a5   :  { %v2653_v22 = vadd.f32 %v2652_v63, %v2651_v58  ;;  %v2417_v58 = vmul.f32 %v2289_v45, %v2289_v45  ;;  %v2658_v63 = vsel %vm1166_vm6, %v2415_v20, 0.0  ;;  %v2419_v45 = vmul.f32 %v2291_v11, %v2291_v11 }
 0x2a6   :  { %vm8753_vm13 = vcmp.lt.s32.totalorder %v8752_v43, %v4502_v14  ;;  %v2664_v23 = vsel %vm1166_vm6, %v2418_v15, 0.0 }
 0x2a7   :  { %v2655_v25 = vadd.f32 %v2654_v12, %v2653_v22  ;;  %v2025_v22 = vcombine.high %v2023_v61, %v2023_v61  ;;  %v2033_v12 = vrot.slane %v6444_v29, %v4493_v6  ;;  %v2293_v56 = vsel %vm8753_vm13, %v2023_v61, 0.0 }
 0x2a8   :  { %v2666_v11 = vsel %vm1166_vm6, %v2419_v45, 0.0 }
 0x2a9   :  { %v2657_v8 = vadd.f32 %v2656_v52, %v2655_v25  ;;  %v2292_v52 = vsel %vm8751_vm1, %v2024_v30, 0.0  ;;  %v2662_v25 = vsel %vm1166_vm6, %v2417_v58, 0.0  ;;  %v2041_v4 = vcombine.high %v2033_v12, %v2033_v12 }
 0x2aa   :  { %v2420_v9 = vmul.f32 %v2292_v52, %v2292_v52  ;;  %v2294_v53 = vsel %vm8754_vm12, %v2025_v22, 0.0 }
 0x2ab   :  { %v2659_v35 = vadd.f32 %v2658_v63, %v2657_v8  ;;  %v2040_v63 = vrot.slane %v2026_v1, %v4493_v6 }
 0x2ac   :  { %v2668_v52 = vsel %vm1166_vm6, %v2420_v9, 0.0 }
 0x2ad   :  { %v2661_v20 = vadd.f32 %v2660_v2, %v2659_v35  ;;  %v2421_v35 = vmul.f32 %v2293_v56, %v2293_v56  ;;  %v2295_v2 = vsel %vm330_vm0, %v2033_v12, 0.0  ;;  %v2042_v15 = vcombine.high %v2040_v63, %v2040_v63 }
 0x2ae   :  { %v2423_v40 = vmul.f32 %v2295_v2, %v2295_v2  ;;  %v2297_v45 = vsel %vm332_vm14, %v2040_v63, 0.0 }
 0x2af   :  { %v2663_v8 = vadd.f32 %v2662_v25, %v2661_v20  ;;  %v2422_v20 = vmul.f32 %v2294_v53, %v2294_v53  ;;  %v8756_v25 = vld [vmem:[#allocation132_spill] sm:$0xff]  ;;  %v2670_v22 = vsel %vm1166_vm6, %v2421_v35, 0.0  ;;  %v2298_v9 = vsel %vm333_vm15, %v2042_v15, 0.0 }
 0x2b0   :  { %vm8757_vm1 = vcmp.lt.s32.totalorder %v8756_v25, %v4502_v14  ;;  %v2426_v2 = vmul.f32 %v2298_v9, %v2298_v9  ;;  %v8760_v9 = vld [vmem:[#allocation136_spill] sm:$0xff] }
 0x2b1   :  { %v2665_v30 = vadd.f32 %v2664_v23, %v2663_v8  ;;  %v2296_v1 = vsel %vm8757_vm1, %v2041_v4, 0.0  ;;  %v2672_v12 = vsel %vm1166_vm6, %v2422_v20, 0.0  ;;  %v2674_v4 = vsel %vm1166_vm6, %v2423_v40, 0.0 }
 0x2b2   :  { %v2424_v8 = vmul.f32 %v2296_v1, %v2296_v1 }
 0x2b3   :  { %v2667_v61 = vadd.f32 %v2666_v11, %v2665_v30  ;;  %v2425_v30 = vmul.f32 %v2297_v45, %v2297_v45 }
 0x2b4   :  { %v2676_v35 = vsel %vm1166_vm6, %v2424_v8, 0.0 }
 0x2b5   :  { %v2669_v43 = vadd.f32 %v2668_v52, %v2667_v61  ;;  %v2678_v52 = vsel %vm1166_vm6, %v2425_v30, 0.0 }
 0x2b7   :  { %v2671_v56 = vadd.f32 %v2670_v22, %v2669_v43  ;;  %v2680_v43 = vsel %vm1166_vm6, %v2426_v2, 0.0 }
 0x2b9   :  { %v2673_v23 = vadd.f32 %v2672_v12, %v2671_v56  ;;  %v8759_v56 = vld [vmem:[#allocation135_spill] sm:$0xff] }
 0x2bb   :  { %v2675_v11 = vadd.f32 %v2674_v4, %v2673_v23  ;;  %v8761_v23 = vld [vmem:[#allocation137_spill] sm:$0xff] }
 0x2bd   :  { %v2677_v61 = vadd.f32 %v2676_v35, %v2675_v11 }
 0x2bf   :  { %v2679_v63 = vadd.f32 %v2678_v52, %v2677_v61 }
 0x2c1   :  { %v2681_v1 = vadd.f32 %v2680_v43, %v2679_v63 }
 0x2c3   :  { %2682 = vadd.xlane.f32.xlu0 %v2681_v1 }
 0x350   :  { %v2683_v20 = vpop.xlane.xlu0 %2682 }
 0x351   :  { %v2684_v22 = vmul.f32 %v5715_v32, %v2683_v20 }
 0x353   :  { %v2685_v15 = vadd.f32 1e-05, %v2684_v22 }
 0x355   :  { %4351 = vrsqrt.f32 %v2685_v15 }
 0x35f   :  { %v4352_v45 = vpop.eup %4351 }
 0x360   :  { %v2694_v40 = vrot.slane %v4352_v45, %v5719_v31 }
 0x362   :  { %v2696_v12 = vmul.f32 %v2694_v40, %v8759_v56  ;;  %v2697_v8 = vmul.f32 %v2694_v40, %v8760_v9  ;;  %v2698_v4 = vmul.f32 %v2694_v40, %v8761_v23  ;;  %v2699_v30 = vmul.f32 %v2694_v40, %v5772_v36 }
 0x363   :  { %v2700_v11 = vmul.f32 %v2694_v40, %v5796_v13  ;;  %v2701_v2 = vmul.f32 %v2694_v40, %v5820_v59  ;;  %v2702_v35 = vmul.f32 %v2694_v40, %v5844_v24  ;;  %v6502_v32 = vmul.f32 %v2694_v40, %v5868_v46 }
 0x364   :  { %v6505_v61 = vmul.f32 %v2694_v40, %v5892_v5  ;;  %v6508_v31 = vmul.f32 %v2694_v40, %v5916_v37  ;;  %v6511_v52 = vmul.f32 %v2694_v40, %v5940_v0  ;;  %v6514_v36 = vmul.f32 %v2694_v40, %v5964_v38 }
 0x365   :  { %v6517_v13 = vmul.f32 %v2694_v40, %v5988_v10  ;;  %v6520_v59 = vmul.f32 %v2694_v40, %v6012_v18  ;;  %v6523_v24 = vmul.f32 %v2694_v40, %v6036_v47  ;;  %v6526_v46 = vmul.f32 %v2694_v40, %v6060_v49 }
 0x366   :  { %v6529_v5 = vmul.f32 %v2694_v40, %v6084_v26  ;;  %v6532_v37 = vmul.f32 %v2694_v40, %v6108_v16  ;;  %v6535_v0 = vmul.f32 %v2694_v40, %v6132_v62  ;;  %v6538_v38 = vmul.f32 %v2694_v40, %v6156_v41 }
 0x367   :  { %v6541_v10 = vmul.f32 %v2694_v40, %v6180_v34  ;;  %v6544_v18 = vmul.f32 %v2694_v40, %v6204_v19  ;;  %v6547_v47 = vmul.f32 %v2694_v40, %v6228_v60  ;;  %v6550_v49 = vmul.f32 %v2694_v40, %v6252_v54 }
 0x368   :  { %v6553_v26 = vmul.f32 %v2694_v40, %v6276_v44  ;;  %v6556_v16 = vmul.f32 %v2694_v40, %v6300_v28  ;;  %v6559_v62 = vmul.f32 %v2694_v40, %v6324_v21  ;;  %v6562_v41 = vmul.f32 %v2694_v40, %v6348_v7 }
 0x369   :  { %v6565_v34 = vmul.f32 %v2694_v40, %v6372_v55  ;;  %v6568_v19 = vmul.f32 %v2694_v40, %v6396_v51  ;;  %v6571_v60 = vmul.f32 %v2694_v40, %v6420_v42  ;;  %v6574_v54 = vmul.f32 %v2694_v40, %v6444_v29 }
 0x36a   :  { %v2760_v44 = vcombine.high %v2696_v12, %v2696_v12  ;;  %v6577_v28 = vrot.slane %v2696_v12, %v4493_v6  ;;  %v2777_v21 = vcombine.high %v2697_v8, %v2697_v8  ;;  %v6580_v7 = vrot.slane %v2697_v8, %v4493_v6 }
 0x36b   :  { %v2794_v63 = vcombine.high %v2698_v4, %v2698_v4  ;;  %v6583_v55 = vrot.slane %v2698_v4, %v4493_v6  ;;  %v2811_v51 = vcombine.high %v2699_v30, %v2699_v30  ;;  %v6586_v43 = vrot.slane %v2699_v30, %v4493_v6 }
 0x36c   :  { %v6589_v42 = vrot.slane %v2760_v44, %v4493_v6  ;;  %v6594_v1 = vrot.slane %v2777_v21, %v4493_v6  ;;  %v2828_v9 = vcombine.high %v2700_v11, %v2700_v11  ;;  %v6613_v8 = vrot.slane %v2700_v11, %v4493_v6 }
 0x36d   :  { %v6599_v22 = vrot.slane %v2794_v63, %v4493_v6  ;;  %v6604_v45 = vrot.slane %v2811_v51, %v4493_v6  ;;  %v2845_v30 = vcombine.high %v2701_v2, %v2701_v2  ;;  %v6620_v44 = vrot.slane %v2701_v2, %v4493_v6 }
 0x36e   :  { %v6623_v21 = vrot.slane %v2828_v9, %v4493_v6  ;;  %v2862_v51 = vcombine.high %v2702_v35, %v2702_v35  ;;  %v6628_v11 = vrot.slane %v2702_v35, %v4493_v6  ;;  %v2879_v2 = vcombine.high %v6502_v32, %v6502_v32 }
 0x36f   :  { %v6631_v40 = vrot.slane %v2845_v30, %v4493_v6  ;;  %v6639_v9 = vrot.slane %v6502_v32, %v4493_v6  ;;  %v2896_v30 = vcombine.high %v6505_v61, %v6505_v61  ;;  %v6659_v63 = vrot.slane %v6505_v61, %v4493_v6 }
 0x370   :  { %v6644_v23 = vrot.slane %v2862_v51, %v4493_v6  ;;  %v6653_v15 = vrot.slane %v2879_v2, %v4493_v6  ;;  %v2913_v12 = vcombine.high %v6508_v31, %v6508_v31  ;;  %v6670_v2 = vrot.slane %v6508_v31, %v4493_v6 }
 0x371   :  { %v6664_v35 = vrot.slane %v2896_v30, %v4493_v6  ;;  %v2930_v4 = vcombine.high %v6511_v52, %v6511_v52  ;;  %v6680_v30 = vrot.slane %v6511_v52, %v4493_v6  ;;  %v2947_v32 = vcombine.high %v6514_v36, %v6514_v36 }
 0x372   :  { %v6685_v20 = vrot.slane %v2913_v12, %v4493_v6  ;;  %v6698_v52 = vrot.slane %v6514_v36, %v4493_v6  ;;  %v2964_v12 = vcombine.high %v6517_v13, %v6517_v13  ;;  %v2981_v56 = vcombine.high %v6520_v59, %v6520_v59 }
 0x373   :  { %v6692_v61 = vrot.slane %v2930_v4, %v4493_v6  ;;  %v6705_v31 = vrot.slane %v2947_v32, %v4493_v6  ;;  %v6709_v4 = vrot.slane %v6517_v13, %v4493_v6  ;;  %v6722_v32 = vrot.slane %v6520_v59, %v4493_v6 }
 0x374   :  { %v6718_v53 = vrot.slane %v2964_v12, %v4493_v6  ;;  %v6729_v48 = vrot.slane %v2981_v56, %v4493_v6  ;;  %v2998_v36 = vcombine.high %v6523_v24, %v6523_v24  ;;  %v6739_v59 = vrot.slane %v6523_v24, %v4493_v6 }
 0x375   :  { %v3015_v13 = vcombine.high %v6526_v46, %v6526_v46  ;;  %v6750_v25 = vrot.slane %v6526_v46, %v4493_v6  ;;  %v3032_v29 = vcombine.high %v6529_v5, %v6529_v5  ;;  %v6761_v58 = vrot.slane %v6529_v5, %v4493_v6 }
 0x376   :  { %v6746_v51 = vrot.slane %v2998_v36, %v4493_v6  ;;  %v3049_v36 = vcombine.high %v6532_v37, %v6532_v37  ;;  %v3066_v46 = vcombine.high %v6535_v0, %v6535_v0  ;;  %v3083_v5 = vcombine.high %v6538_v38, %v6538_v38 }
 0x377   :  { %v6757_v12 = vrot.slane %v3015_v13, %v4493_v6  ;;  %8762 = vst [vmem:[#allocation135_spill] sm:$0xff] %v6761_v58  ;;  %v6770_v17 = vrot.slane %v3032_v29, %v4493_v6  ;;  %v6774_v13 = vrot.slane %v6532_v37, %v4493_v6  ;;  %v6791_v37 = vrot.slane %v6535_v0, %v4493_v6 }
 0x378   :  { %v6781_v3 = vrot.slane %v3049_v36, %v4493_v6  ;;  %v6798_v24 = vrot.slane %v3066_v46, %v4493_v6  ;;  %v6802_v58 = vrot.slane %v6538_v38, %v4493_v6  ;;  %v3100_v56 = vcombine.high %v6541_v10, %v6541_v10 }
 0x379   :  { %8763 = vst [vmem:[#allocation136_spill] sm:$0xff] %v6774_v13  ;;  %8765 = vst [vmem:[#allocation138_spill] sm:$0xff] %v6791_v37  ;;  %v6809_v29 = vrot.slane %v3083_v5, %v4493_v6  ;;  %v6813_v13 = vrot.slane %v6541_v10, %v4493_v6  ;;  %v3117_v46 = vcombine.high %v6544_v18, %v6544_v18 }
 0x37a   :  { %8764 = vst [vmem:[#allocation137_spill] sm:$0xff] %v6781_v3  ;;  %v6822_v3 = vrot.slane %v3100_v56, %v4493_v6  ;;  %v6826_v5 = vrot.slane %v6544_v18, %v4493_v6  ;;  %v3134_v38 = vcombine.high %v6547_v47, %v6547_v47  ;;  %v6843_v18 = vrot.slane %v6547_v47, %v4493_v6 }
 0x37b   :  { %8766 = vst [vmem:[#allocation139_spill] sm:$0xff] %v6813_v13  ;;  %v6833_v37 = vrot.slane %v3117_v46, %v4493_v6  ;;  %v3151_v10 = vcombine.high %v6550_v49, %v6550_v49  ;;  %v6854_v13 = vrot.slane %v6550_v49, %v4493_v6  ;;  %v3168_v36 = vcombine.high %v6553_v26, %v6553_v26 }
 0x37c   :  { %8767 = vst [vmem:[#allocation140_spill] sm:$0xff] %v6826_v5  ;;  %8769 = vst [vmem:[#allocation142_spill] sm:$0xff] %v6843_v18  ;;  %v6850_v0 = vrot.slane %v3134_v38, %v4493_v6  ;;  %v6865_v5 = vrot.slane %v6553_v26, %v4493_v6  ;;  %v3185_v38 = vcombine.high %v6556_v16, %v6556_v16 }
 0x37d   :  { %8768 = vst [vmem:[#allocation141_spill] sm:$0xff] %v6833_v37  ;;  %v6861_v56 = vrot.slane %v3151_v10, %v4493_v6  ;;  %v6874_v37 = vrot.slane %v3168_v36, %v4493_v6  ;;  %v6878_v10 = vrot.slane %v6556_v16, %v4493_v6  ;;  %v3202_v49 = vcombine.high %v6559_v62, %v6559_v62 }
 0x37e   :  { %8770 = vst [vmem:[#allocation143_spill] sm:$0xff] %v6865_v5  ;;  %v6885_v18 = vrot.slane %v3185_v38, %v4493_v6  ;;  %v6895_v16 = vrot.slane %v6559_v62, %v4493_v6  ;;  %v3219_v26 = vcombine.high %v6562_v41, %v6562_v41  ;;  %v6906_v5 = vrot.slane %v6562_v41, %v4493_v6 }
 0x37f   :  { %8771 = vst [vmem:[#allocation144_spill] sm:$0xff] %v6878_v10  ;;  %v6902_v47 = vrot.slane %v3202_v49, %v4493_v6  ;;  %v3236_v46 = vcombine.high %v6565_v34, %v6565_v34  ;;  %v6917_v10 = vrot.slane %v6565_v34, %v4493_v6  ;;  %v3253_v49 = vcombine.high %v6568_v19, %v6568_v19 }
 0x380   :  { %8772 = vst [vmem:[#allocation145_spill] sm:$0xff] %v6885_v18  ;;  %8773 = vst [vmem:[#allocation146_spill] sm:$0xff] %v6895_v16  ;;  %v6913_v36 = vrot.slane %v3219_v26, %v4493_v6  ;;  %v6930_v26 = vrot.slane %v6568_v19, %v4493_v6  ;;  %v3270_v41 = vcombine.high %v6571_v60, %v6571_v60  ;;  %v6964_v38 = vsel %vm206_vm2, %v6577_v28, 0.0 }
 0x381   :  { %8774 = vst [vmem:[#allocation147_spill] sm:$0xff] %v6917_v10  ;;  %v6926_v18 = vrot.slane %v3236_v46, %v4493_v6  ;;  %v6937_v16 = vrot.slane %v3253_v49, %v4493_v6  ;;  %v6947_v19 = vrot.slane %v6571_v60, %v4493_v6  ;;  %v3287_v34 = vcombine.high %v6574_v54, %v6574_v54 }
 0x382   :  { %8775 = vst [vmem:[#allocation148_spill] sm:$0xff] %v6930_v26  ;;  %v6954_v62 = vrot.slane %v3270_v41, %v4493_v6  ;;  %v6958_v10 = vrot.slane %v6574_v54, %v4493_v6  ;;  %v8778_v41 = vcombine.high %v6577_v28, %v6577_v28  ;;  %v6983_v46 = vsel %vm208_vm4, %v6589_v42, 0.0 }
 0x383   :  { %8776 = vst [vmem:[#allocation149_spill] sm:$0xff] %v6937_v16  ;;  %v6969_v26 = vrot.slane %v3287_v34, %v4493_v6  ;;  %8781 = vst [vmem:[#allocation12_spill] sm:$0xff] %v6983_v46  ;;  %v8782_v28 = vcombine.high %v6589_v42, %v6589_v42  ;;  %v7001_v16 = vsel %vm210_vm7, %v6580_v7, 0.0  ;;  %v8785_v34 = vcombine.high %v6580_v7, %v6580_v7 }
 0x384   :  { %v6977_v54 = vsel %vm207_vm3, %v8778_v41, 0.0  ;;  %v7017_v6 = vsel %vm212_vm9, %v6594_v1, 0.0  ;;  %v7031_v7 = vsel %vm214_vm11, %v6583_v55, 0.0  ;;  %v8788_v46 = vcombine.high %v6583_v55, %v6583_v55  ;;  %v8794_v55 = vld [vmem:[#allocation19_spill] sm:$0xff] }
 0x385   :  { %v6995_v49 = vsel %vm209_vm5, %v8782_v28, 0.0  ;;  %v7011_v42 = vsel %vm211_vm8, %v8785_v34, 0.0  ;;  %v8787_v28 = vcombine.high %v6594_v1, %v6594_v1  ;;  %vm8790_vm2 = vcmp.lt.s32.totalorder %v8789_v27, %v4502_v14 }
 0x386   :  { %v7039_v34 = vsel %vm8790_vm2, %v8788_v46, 0.0  ;;  %vm8791_vm3 = vcmp.lt.s32.totalorder %v4575_v50, %v4502_v14  ;;  %v8792_v1 = vcombine.high %v6599_v22, %v6599_v22  ;;  %vm8793_vm4 = vcmp.lt.s32.totalorder %v4585_v57, %v4502_v14  ;;  %v8797_v50 = vld [vmem:[#allocation20_spill] sm:$0xff] }
 0x387   :  { %v7025_v41 = vsel %vm213_vm10, %v8787_v28, 0.0  ;;  %v7045_v33 = vsel %vm8791_vm3, %v6599_v22, 0.0  ;;  %vm8795_vm5 = vcmp.lt.s32.totalorder %v8794_v55, %v4502_v14  ;;  %v8796_v46 = vcombine.high %v6586_v43, %v6586_v43  ;;  %v8799_v22 = vld [vmem:[#allocation21_spill] sm:$0xff]  ;;  %v8803_v55 = vld [vmem:[#allocation22_spill] sm:$0xff] }
 0x388   :  { %v7053_v39 = vsel %vm8793_vm4, %v8792_v1, 0.0  ;;  %v7059_v28 = vsel %vm8795_vm5, %v6586_v43, 0.0  ;;  %vm8798_vm6 = vcmp.lt.s32.totalorder %v8797_v50, %v4502_v14  ;;  %vm8800_vm7 = vcmp.lt.s32.totalorder %v8799_v22, %v4502_v14  ;;  %v8805_v43 = vld [vmem:[#allocation23_spill] sm:$0xff]  ;;  %v8809_v22 = vld [vmem:[#allocation24_spill] sm:$0xff] }
 0x389   :  { %v7067_v27 = vsel %vm8798_vm6, %v8796_v46, 0.0  ;;  %v7073_v57 = vsel %vm8800_vm7, %v6604_v45, 0.0  ;;  %v8802_v1 = vcombine.high %v6604_v45, %v6604_v45  ;;  %vm8804_vm8 = vcmp.lt.s32.totalorder %v8803_v55, %v4502_v14  ;;  %v8811_v45 = vld [vmem:[#allocation25_spill] sm:$0xff] }
 0x38a   :  { %8801 = vst [vmem:[#allocation13_spill] sm:$0xff] %v7073_v57  ;;  %vm8806_vm9 = vcmp.lt.s32.totalorder %v8805_v43, %v4502_v14  ;;  %v8808_v50 = vcombine.high %v6613_v8, %v6613_v8  ;;  %vm8810_vm10 = vcmp.lt.s32.totalorder %v8809_v22, %v4502_v14  ;;  %vm8812_vm11 = vcmp.lt.s32.totalorder %v8811_v45, %v4502_v14  ;;  %v8815_v43 = vld [vmem:[#allocation26_spill] sm:$0xff]  ;;  %v8821_v45 = vld [vmem:[#allocation28_spill] sm:$0xff] }
 0x38b   :  { %v7081_v60 = vsel %vm8804_vm8, %v8802_v1, 0.0  ;;  %v7087_v46 = vsel %vm8806_vm9, %v6613_v8, 0.0  ;;  %v7101_v1 = vsel %vm8812_vm11, %v6623_v21, 0.0  ;;  %v8814_v55 = vcombine.high %v6623_v21, %v6623_v21  ;;  %v8817_v8 = vld [vmem:[#allocation27_spill] sm:$0xff]  ;;  %v8823_v21 = vld [vmem:[#allocation29_spill] sm:$0xff] }
 0x38c   :  { %8807 = vst [vmem:[#allocation14_spill] sm:$0xff] %v7087_v46  ;;  %v7095_v57 = vsel %vm8810_vm10, %v8808_v50, 0.0  ;;  %8813 = vst [vmem:[#allocation15_spill] sm:$0xff] %v7101_v1  ;;  %vm8816_vm12 = vcmp.lt.s32.totalorder %v8815_v43, %v4502_v14  ;;  %vm8818_vm13 = vcmp.lt.s32.totalorder %v8817_v8, %v4502_v14  ;;  %v8820_v22 = vcombine.high %v6620_v44, %v6620_v44  ;;  %v8827_v8 = vld [vmem:[#allocation30_spill] sm:$0xff] }
 0x38d   :  { %v7109_v46 = vsel %vm8816_vm12, %v8814_v55, 0.0  ;;  %v7115_v50 = vsel %vm8818_vm13, %v6620_v44, 0.0  ;;  %vm8822_vm1 = vcmp.lt.s32.totalorder %v8821_v45, %v4502_v14  ;;  %vm8824_vm2 = vcmp.lt.s32.totalorder %v8823_v21, %v4502_v14  ;;  %v8829_v44 = vld [vmem:[#allocation31_spill] sm:$0xff]  ;;  %v8833_v21 = vld [vmem:[#allocation32_spill] sm:$0xff] }
 0x38e   :  { %8819 = vst [vmem:[#allocation16_spill] sm:$0xff] %v7115_v50  ;;  %v7123_v1 = vsel %vm8822_vm1, %v8820_v22, 0.0  ;;  %v7129_v55 = vsel %vm8824_vm2, %v6631_v40, 0.0  ;;  %v8826_v43 = vcombine.high %v6631_v40, %v6631_v40  ;;  %vm8828_vm3 = vcmp.lt.s32.totalorder %v8827_v8, %v4502_v14  ;;  %v8835_v40 = vld [vmem:[#allocation33_spill] sm:$0xff] }
 0x38f   :  { %8825 = vst [vmem:[#allocation17_spill] sm:$0xff] %v7129_v55  ;;  %vm8830_vm4 = vcmp.lt.s32.totalorder %v8829_v44, %v4502_v14  ;;  %v8832_v45 = vcombine.high %v6628_v11, %v6628_v11  ;;  %vm8834_vm5 = vcmp.lt.s32.totalorder %v8833_v21, %v4502_v14  ;;  %vm8836_vm6 = vcmp.lt.s32.totalorder %v8835_v40, %v4502_v14  ;;  %v8839_v44 = vld [vmem:[#allocation34_spill] sm:$0xff]  ;;  %v8845_v40 = vld [vmem:[#allocation36_spill] sm:$0xff] }
 0x390   :  { %v7137_v50 = vsel %vm8828_vm3, %v8826_v43, 0.0  ;;  %v7143_v22 = vsel %vm8830_vm4, %v6628_v11, 0.0  ;;  %v7157_v43 = vsel %vm8836_vm6, %v6644_v23, 0.0  ;;  %v8838_v8 = vcombine.high %v6644_v23, %v6644_v23  ;;  %v8841_v11 = vld [vmem:[#allocation35_spill] sm:$0xff]  ;;  %v8847_v23 = vld [vmem:[#allocation37_spill] sm:$0xff] }
 0x391   :  { %8831 = vst [vmem:[#allocation18_spill] sm:$0xff] %v7143_v22  ;;  %v7151_v55 = vsel %vm8834_vm5, %v8832_v45, 0.0  ;;  %8837 = vst [vmem:[#allocation19_spill] sm:$0xff] %v7157_v43  ;;  %vm8840_vm7 = vcmp.lt.s32.totalorder %v8839_v44, %v4502_v14  ;;  %vm8842_vm8 = vcmp.lt.s32.totalorder %v8841_v11, %v4502_v14  ;;  %v8844_v21 = vcombine.high %v6639_v9, %v6639_v9  ;;  %v8851_v11 = vld [vmem:[#allocation38_spill] sm:$0xff] }
 0x392   :  { %v7165_v22 = vsel %vm8840_vm7, %v8838_v8, 0.0  ;;  %v7171_v45 = vsel %vm8842_vm8, %v6639_v9, 0.0  ;;  %vm8846_vm9 = vcmp.lt.s32.totalorder %v8845_v40, %v4502_v14  ;;  %vm8848_vm10 = vcmp.lt.s32.totalorder %v8847_v23, %v4502_v14  ;;  %v8853_v9 = vld [vmem:[#allocation39_spill] sm:$0xff]  ;;  %v8857_v23 = vld [vmem:[#allocation40_spill] sm:$0xff] }
 0x393   :  { %8843 = vst [vmem:[#allocation20_spill] sm:$0xff] %v7171_v45  ;;  %v7179_v43 = vsel %vm8846_vm9, %v8844_v21, 0.0  ;;  %v7185_v8 = vsel %vm8848_vm10, %v6653_v15, 0.0  ;;  %v8850_v44 = vcombine.high %v6653_v15, %v6653_v15  ;;  %vm8852_vm11 = vcmp.lt.s32.totalorder %v8851_v11, %v4502_v14  ;;  %v8859_v15 = vld [vmem:[#allocation41_spill] sm:$0xff] }
 0x394   :  { %8849 = vst [vmem:[#allocation21_spill] sm:$0xff] %v7185_v8  ;;  %vm8854_vm12 = vcmp.lt.s32.totalorder %v8853_v9, %v4502_v14  ;;  %v8856_v40 = vcombine.high %v6659_v63, %v6659_v63  ;;  %vm8858_vm13 = vcmp.lt.s32.totalorder %v8857_v23, %v4502_v14  ;;  %vm8860_vm1 = vcmp.lt.s32.totalorder %v8859_v15, %v4502_v14  ;;  %v8863_v9 = vld [vmem:[#allocation42_spill] sm:$0xff]  ;;  %v8869_v15 = vld [vmem:[#allocation44_spill] sm:$0xff] }
 0x395   :  { %v7193_v45 = vsel %vm8852_vm11, %v8850_v44, 0.0  ;;  %v7199_v21 = vsel %vm8854_vm12, %v6659_v63, 0.0  ;;  %v7213_v44 = vsel %vm8860_vm1, %v6664_v35, 0.0  ;;  %v8862_v11 = vcombine.high %v6664_v35, %v6664_v35  ;;  %v8865_v63 = vld [vmem:[#allocation43_spill] sm:$0xff]  ;;  %v8871_v35 = vld [vmem:[#allocation45_spill] sm:$0xff] }
 0x396   :  { %8855 = vst [vmem:[#allocation22_spill] sm:$0xff] %v7199_v21  ;;  %v7207_v8 = vsel %vm8858_vm13, %v8856_v40, 0.0  ;;  %8861 = vst [vmem:[#allocation23_spill] sm:$0xff] %v7213_v44  ;;  %vm8864_vm2 = vcmp.lt.s32.totalorder %v8863_v9, %v4502_v14  ;;  %vm8866_vm3 = vcmp.lt.s32.totalorder %v8865_v63, %v4502_v14  ;;  %v8868_v23 = vcombine.high %v6670_v2, %v6670_v2  ;;  %v8875_v63 = vld [vmem:[#allocation46_spill] sm:$0xff] }
 0x397   :  { %v7221_v21 = vsel %vm8864_vm2, %v8862_v11, 0.0  ;;  %v7227_v40 = vsel %vm8866_vm3, %v6670_v2, 0.0  ;;  %vm8870_vm4 = vcmp.lt.s32.totalorder %v8869_v15, %v4502_v14  ;;  %vm8872_vm5 = vcmp.lt.s32.totalorder %v8871_v35, %v4502_v14  ;;  %v8877_v2 = vld [vmem:[#allocation47_spill] sm:$0xff]  ;;  %v8881_v35 = vld [vmem:[#allocation48_spill] sm:$0xff] }
 0x398   :  { %8867 = vst [vmem:[#allocation24_spill] sm:$0xff] %v7227_v40  ;;  %v7235_v44 = vsel %vm8870_vm4, %v8868_v23, 0.0  ;;  %v7241_v11 = vsel %vm8872_vm5, %v6685_v20, 0.0  ;;  %v8874_v9 = vcombine.high %v6685_v20, %v6685_v20  ;;  %vm8876_vm6 = vcmp.lt.s32.totalorder %v8875_v63, %v4502_v14  ;;  %v8883_v20 = vld [vmem:[#allocation49_spill] sm:$0xff] }
 0x399   :  { %8873 = vst [vmem:[#allocation25_spill] sm:$0xff] %v7241_v11  ;;  %vm8878_vm7 = vcmp.lt.s32.totalorder %v8877_v2, %v4502_v14  ;;  %v8880_v15 = vcombine.high %v6680_v30, %v6680_v30  ;;  %vm8882_vm8 = vcmp.lt.s32.totalorder %v8881_v35, %v4502_v14  ;;  %vm8884_vm9 = vcmp.lt.s32.totalorder %v8883_v20, %v4502_v14  ;;  %v8887_v2 = vld [vmem:[#allocation50_spill] sm:$0xff]  ;;  %v8893_v20 = vld [vmem:[#allocation52_spill] sm:$0xff] }
 0x39a   :  { %v7249_v40 = vsel %vm8876_vm6, %v8874_v9, 0.0  ;;  %v7255_v23 = vsel %vm8878_vm7, %v6680_v30, 0.0  ;;  %v7269_v9 = vsel %vm8884_vm9, %v6692_v61, 0.0  ;;  %v8886_v63 = vcombine.high %v6692_v61, %v6692_v61  ;;  %v8889_v30 = vld [vmem:[#allocation51_spill] sm:$0xff]  ;;  %v8895_v61 = vld [vmem:[#allocation53_spill] sm:$0xff] }
 0x39b   :  { %8879 = vst [vmem:[#allocation26_spill] sm:$0xff] %v7255_v23  ;;  %v7263_v11 = vsel %vm8882_vm8, %v8880_v15, 0.0  ;;  %8885 = vst [vmem:[#allocation27_spill] sm:$0xff] %v7269_v9  ;;  %vm8888_vm10 = vcmp.lt.s32.totalorder %v8887_v2, %v4502_v14  ;;  %vm8890_vm11 = vcmp.lt.s32.totalorder %v8889_v30, %v4502_v14  ;;  %v8892_v35 = vcombine.high %v6698_v52, %v6698_v52  ;;  %v8899_v30 = vld [vmem:[#allocation54_spill] sm:$0xff] }
 0x39c   :  { %v7277_v23 = vsel %vm8888_vm10, %v8886_v63, 0.0  ;;  %v7283_v15 = vsel %vm8890_vm11, %v6698_v52, 0.0  ;;  %vm8894_vm12 = vcmp.lt.s32.totalorder %v8893_v20, %v4502_v14  ;;  %vm8896_vm13 = vcmp.lt.s32.totalorder %v8895_v61, %v4502_v14  ;;  %v8901_v52 = vld [vmem:[#allocation55_spill] sm:$0xff]  ;;  %v8905_v61 = vld [vmem:[#allocation56_spill] sm:$0xff] }
 0x39d   :  { %8891 = vst [vmem:[#allocation28_spill] sm:$0xff] %v7283_v15  ;;  %v7291_v9 = vsel %vm8894_vm12, %v8892_v35, 0.0  ;;  %v7297_v63 = vsel %vm8896_vm13, %v6705_v31, 0.0  ;;  %v8898_v2 = vcombine.high %v6705_v31, %v6705_v31  ;;  %vm8900_vm1 = vcmp.lt.s32.totalorder %v8899_v30, %v4502_v14  ;;  %v8907_v31 = vld [vmem:[#allocation57_spill] sm:$0xff] }
 0x39e   :  { %8897 = vst [vmem:[#allocation29_spill] sm:$0xff] %v7297_v63  ;;  %vm8902_vm2 = vcmp.lt.s32.totalorder %v8901_v52, %v4502_v14  ;;  %v8904_v20 = vcombine.high %v6709_v4, %v6709_v4  ;;  %vm8906_vm3 = vcmp.lt.s32.totalorder %v8905_v61, %v4502_v14  ;;  %vm8908_vm4 = vcmp.lt.s32.totalorder %v8907_v31, %v4502_v14  ;;  %v8911_v52 = vld [vmem:[#allocation58_spill] sm:$0xff]  ;;  %v8917_v31 = vld [vmem:[#allocation60_spill] sm:$0xff] }
 0x39f   :  { %v7305_v15 = vsel %vm8900_vm1, %v8898_v2, 0.0  ;;  %v7311_v35 = vsel %vm8902_vm2, %v6709_v4, 0.0  ;;  %v7325_v2 = vsel %vm8908_vm4, %v6718_v53, 0.0  ;;  %v8910_v30 = vcombine.high %v6718_v53, %v6718_v53  ;;  %v8913_v4 = vld [vmem:[#allocation59_spill] sm:$0xff]  ;;  %v8919_v53 = vld [vmem:[#allocation61_spill] sm:$0xff] }
 0x3a0   :  { %8903 = vst [vmem:[#allocation30_spill] sm:$0xff] %v7311_v35  ;;  %v7319_v63 = vsel %vm8906_vm3, %v8904_v20, 0.0  ;;  %8909 = vst [vmem:[#allocation31_spill] sm:$0xff] %v7325_v2  ;;  %vm8912_vm5 = vcmp.lt.s32.totalorder %v8911_v52, %v4502_v14  ;;  %vm8914_vm6 = vcmp.lt.s32.totalorder %v8913_v4, %v4502_v14  ;;  %v8916_v61 = vcombine.high %v6722_v32, %v6722_v32  ;;  %v8923_v4 = vld [vmem:[#allocation62_spill] sm:$0xff] }
 0x3a1   :  { %v7333_v35 = vsel %vm8912_vm5, %v8910_v30, 0.0  ;;  %v7339_v20 = vsel %vm8914_vm6, %v6722_v32, 0.0  ;;  %vm8918_vm7 = vcmp.lt.s32.totalorder %v8917_v31, %v4502_v14  ;;  %vm8920_vm8 = vcmp.lt.s32.totalorder %v8919_v53, %v4502_v14  ;;  %v8925_v32 = vld [vmem:[#allocation63_spill] sm:$0xff]  ;;  %v8929_v53 = vld [vmem:[#allocation64_spill] sm:$0xff] }
 0x3a2   :  { %8915 = vst [vmem:[#allocation32_spill] sm:$0xff] %v7339_v20  ;;  %v7347_v2 = vsel %vm8918_vm7, %v8916_v61, 0.0  ;;  %v7353_v30 = vsel %vm8920_vm8, %v6729_v48, 0.0  ;;  %v8922_v52 = vcombine.high %v6729_v48, %v6729_v48  ;;  %vm8924_vm9 = vcmp.lt.s32.totalorder %v8923_v4, %v4502_v14  ;;  %v8931_v48 = vld [vmem:[#allocation65_spill] sm:$0xff] }
 0x3a3   :  { %8921 = vst [vmem:[#allocation33_spill] sm:$0xff] %v7353_v30  ;;  %vm8926_vm10 = vcmp.lt.s32.totalorder %v8925_v32, %v4502_v14  ;;  %v8928_v31 = vcombine.high %v6739_v59, %v6739_v59  ;;  %vm8930_vm11 = vcmp.lt.s32.totalorder %v8929_v53, %v4502_v14  ;;  %vm8932_vm12 = vcmp.lt.s32.totalorder %v8931_v48, %v4502_v14  ;;  %v8935_v32 = vld [vmem:[#allocation66_spill] sm:$0xff]  ;;  %v8942_v48 = vld [vmem:[#allocation68_spill] sm:$0xff] }
 0x3a4   :  { %v7361_v20 = vsel %vm8924_vm9, %v8922_v52, 0.0  ;;  %v7367_v61 = vsel %vm8926_vm10, %v6739_v59, 0.0  ;;  %v7381_v52 = vsel %vm8932_vm12, %v6746_v51, 0.0  ;;  %v8934_v4 = vcombine.high %v6746_v51, %v6746_v51  ;;  %v8938_v59 = vld [vmem:[#allocation67_spill] sm:$0xff]  ;;  %v8944_v51 = vld [vmem:[#allocation69_spill] sm:$0xff] }
 0x3a5   :  { %8927 = vst [vmem:[#allocation34_spill] sm:$0xff] %v7367_v61  ;;  %v7375_v30 = vsel %vm8930_vm11, %v8928_v31, 0.0  ;;  %8933 = vst [vmem:[#allocation35_spill] sm:$0xff] %v7381_v52  ;;  %vm8936_vm13 = vcmp.lt.s32.totalorder %v8935_v32, %v4502_v14  ;;  %vm8939_vm1 = vcmp.lt.s32.totalorder %v8938_v59, %v4502_v14  ;;  %v8941_v53 = vcombine.high %v6750_v25, %v6750_v25  ;;  %v8948_v59 = vld [vmem:[#allocation70_spill] sm:$0xff] }
 0x3a6   :  { %v7389_v61 = vsel %vm8936_vm13, %v8934_v4, 0.0  ;;  %v7395_v31 = vsel %vm8939_vm1, %v6750_v25, 0.0  ;;  %vm8943_vm2 = vcmp.lt.s32.totalorder %v8942_v48, %v4502_v14  ;;  %vm8945_vm3 = vcmp.lt.s32.totalorder %v8944_v51, %v4502_v14  ;;  %v8951_v25 = vld [vmem:[#allocation135_spill] sm:$0xff]  ;;  %v8956_v51 = vld [vmem:[#allocation72_spill] sm:$0xff] }
 0x3a7   :  { %8937 = vst [vmem:[#allocation36_spill] sm:$0xff] %v7389_v61  ;;  %8940 = vst [vmem:[#allocation37_spill] sm:$0xff] %v7395_v31  ;;  %v7403_v52 = vsel %vm8943_vm2, %v8941_v53, 0.0  ;;  %v7409_v4 = vsel %vm8945_vm3, %v6757_v12, 0.0  ;;  %v8947_v32 = vcombine.high %v6757_v12, %v6757_v12  ;;  %vm8949_vm4 = vcmp.lt.s32.totalorder %v8948_v59, %v4502_v14  ;;  %v8952_v61 = vld [vmem:[#allocation71_spill] sm:$0xff]  ;;  %v8959_v12 = vld [vmem:[#allocation73_spill] sm:$0xff] }
 0x3a8   :  { %8946 = vst [vmem:[#allocation38_spill] sm:$0xff] %v7409_v4  ;;  %vm8953_vm5 = vcmp.lt.s32.totalorder %v8952_v61, %v4502_v14  ;;  %v8955_v48 = vcombine.high %v8951_v25, %v8951_v25  ;;  %vm8957_vm6 = vcmp.lt.s32.totalorder %v8956_v51, %v4502_v14  ;;  %vm8960_vm7 = vcmp.lt.s32.totalorder %v8959_v12, %v4502_v14  ;;  %v8963_v61 = vld [vmem:[#allocation74_spill] sm:$0xff]  ;;  %v8971_v12 = vld [vmem:[#allocation76_spill] sm:$0xff] }
 0x3a9   :  { %v7417_v31 = vsel %vm8949_vm4, %v8947_v32, 0.0  ;;  %v7423_v53 = vsel %vm8953_vm5, %v8951_v25, 0.0  ;;  %v7437_v32 = vsel %vm8960_vm7, %v6770_v17, 0.0  ;;  %v8962_v59 = vcombine.high %v6770_v17, %v6770_v17  ;;  %v8966_v25 = vld [vmem:[#allocation136_spill] sm:$0xff]  ;;  %v8973_v17 = vld [vmem:[#allocation137_spill] sm:$0xff] }
 0x3aa   :  { %8950 = vst [vmem:[#allocation39_spill] sm:$0xff] %v7417_v31  ;;  %8954 = vst [vmem:[#allocation40_spill] sm:$0xff] %v7423_v53  ;;  %v7431_v4 = vsel %vm8957_vm6, %v8955_v48, 0.0  ;;  %vm8964_vm8 = vcmp.lt.s32.totalorder %v8963_v61, %v4502_v14  ;;  %v8967_v31 = vld [vmem:[#allocation75_spill] sm:$0xff]  ;;  %v8970_v51 = vcombine.high %v8966_v25, %v8966_v25  ;;  %vm8972_vm10 = vcmp.lt.s32.totalorder %v8971_v12, %v4502_v14 }
 0x3ab   :  { %8958 = vst [vmem:[#allocation41_spill] sm:$0xff] %v7431_v4  ;;  %8961 = vst [vmem:[#allocation42_spill] sm:$0xff] %v7437_v32  ;;  %v7445_v53 = vsel %vm8964_vm8, %v8962_v59, 0.0  ;;  %vm8968_vm9 = vcmp.lt.s32.totalorder %v8967_v31, %v4502_v14  ;;  %v8974_v4 = vld [vmem:[#allocation77_spill] sm:$0xff]  ;;  %v8977_v61 = vcombine.high %v8973_v17, %v8973_v17  ;;  %v8978_v31 = vld [vmem:[#allocation78_spill] sm:$0xff] }
 0x3ac   :  { %8965 = vst [vmem:[#allocation43_spill] sm:$0xff] %v7445_v53  ;;  %v7451_v48 = vsel %vm8968_vm9, %v8966_v25, 0.0  ;;  %v7459_v32 = vsel %vm8972_vm10, %v8970_v51, 0.0  ;;  %vm8975_vm11 = vcmp.lt.s32.totalorder %v8974_v4, %v4502_v14  ;;  %vm8979_vm12 = vcmp.lt.s32.totalorder %v8978_v31, %v4502_v14  ;;  %v8980_v25 = vld [vmem:[#allocation138_spill] sm:$0xff]  ;;  %v8981_v53 = vld [vmem:[#allocation79_spill] sm:$0xff]  ;;  %v8985_v4 = vld [vmem:[#allocation80_spill] sm:$0xff] }
 0x3ad   :  { %8969 = vst [vmem:[#allocation44_spill] sm:$0xff] %v7451_v48  ;;  %v7465_v59 = vsel %vm8975_vm11, %v8973_v17, 0.0  ;;  %v7473_v48 = vsel %vm8979_vm12, %v8977_v61, 0.0  ;;  %vm8982_vm13 = vcmp.lt.s32.totalorder %v8981_v53, %v4502_v14  ;;  %v8984_v12 = vcombine.high %v8980_v25, %v8980_v25  ;;  %v8987_v17 = vld [vmem:[#allocation81_spill] sm:$0xff]  ;;  %v8991_v53 = vld [vmem:[#allocation82_spill] sm:$0xff] }
 0x3ae   :  { %8976 = vst [vmem:[#allocation45_spill] sm:$0xff] %v7465_v59  ;;  %v7479_v51 = vsel %vm8982_vm13, %v8980_v25, 0.0  ;;  %vm8986_vm1 = vcmp.lt.s32.totalorder %v8985_v4, %v4502_v14  ;;  %vm8988_vm2 = vcmp.lt.s32.totalorder %v8987_v17, %v4502_v14  ;;  %v8990_v31 = vcombine.high %v6798_v24, %v6798_v24  ;;  %v8994_v25 = vld [vmem:[#allocation83_spill] sm:$0xff]  ;;  %v8998_v17 = vld [vmem:[#allocation84_spill] sm:$0xff] }
 0x3af   :  { %8983 = vst [vmem:[#allocation46_spill] sm:$0xff] %v7479_v51  ;;  %v7487_v59 = vsel %vm8986_vm1, %v8984_v12, 0.0  ;;  %v7493_v61 = vsel %vm8988_vm2, %v6798_v24, 0.0  ;;  %vm8992_vm3 = vcmp.lt.s32.totalorder %v8991_v53, %v4502_v14  ;;  %vm8995_vm4 = vcmp.lt.s32.totalorder %v8994_v25, %v4502_v14  ;;  %v9000_v24 = vld [vmem:[#allocation85_spill] sm:$0xff]  ;;  %v9004_v25 = vld [vmem:[#allocation86_spill] sm:$0xff] }
 0x3b0   :  { %8989 = vst [vmem:[#allocation47_spill] sm:$0xff] %v7493_v61  ;;  %v7501_v51 = vsel %vm8992_vm3, %v8990_v31, 0.0  ;;  %v7507_v12 = vsel %vm8995_vm4, %v6802_v58, 0.0  ;;  %v8997_v4 = vcombine.high %v6802_v58, %v6802_v58  ;;  %vm8999_vm5 = vcmp.lt.s32.totalorder %v8998_v17, %v4502_v14  ;;  %v9007_v58 = vld [vmem:[#allocation139_spill] sm:$0xff] }
 0x3b1   :  { %8993 = vst [vmem:[#allocation48_spill] sm:$0xff] %v7501_v51  ;;  %8996 = vst [vmem:[#allocation49_spill] sm:$0xff] %v7507_v12  ;;  %vm9001_vm6 = vcmp.lt.s32.totalorder %v9000_v24, %v4502_v14  ;;  %v9003_v53 = vcombine.high %v6809_v29, %v6809_v29  ;;  %vm9005_vm7 = vcmp.lt.s32.totalorder %v9004_v25, %v4502_v14  ;;  %v9008_v51 = vld [vmem:[#allocation87_spill] sm:$0xff]  ;;  %v9012_v24 = vld [vmem:[#allocation88_spill] sm:$0xff] }
 0x3b2   :  { %v7515_v61 = vsel %vm8999_vm5, %v8997_v4, 0.0  ;;  %v7521_v31 = vsel %vm9001_vm6, %v6809_v29, 0.0  ;;  %vm9009_vm8 = vcmp.lt.s32.totalorder %v9008_v51, %v4502_v14  ;;  %v9011_v17 = vcombine.high %v9007_v58, %v9007_v58  ;;  %v9015_v29 = vld [vmem:[#allocation89_spill] sm:$0xff]  ;;  %v9019_v51 = vld [vmem:[#allocation90_spill] sm:$0xff] }
 0x3b3   :  { %9002 = vst [vmem:[#allocation50_spill] sm:$0xff] %v7521_v31  ;;  %v7529_v12 = vsel %vm9005_vm7, %v9003_v53, 0.0  ;;  %v7535_v4 = vsel %vm9009_vm8, %v9007_v58, 0.0  ;;  %vm9013_vm9 = vcmp.lt.s32.totalorder %v9012_v24, %v4502_v14  ;;  %vm9016_vm10 = vcmp.lt.s32.totalorder %v9015_v29, %v4502_v14  ;;  %v9022_v58 = vld [vmem:[#allocation140_spill] sm:$0xff] }
 0x3b4   :  { %9006 = vst [vmem:[#allocation51_spill] sm:$0xff] %v7529_v12  ;;  %9010 = vst [vmem:[#allocation52_spill] sm:$0xff] %v7535_v4  ;;  %v7543_v31 = vsel %vm9013_vm9, %v9011_v17, 0.0  ;;  %v7549_v53 = vsel %vm9016_vm10, %v6822_v3, 0.0  ;;  %v9018_v25 = vcombine.high %v6822_v3, %v6822_v3  ;;  %vm9020_vm11 = vcmp.lt.s32.totalorder %v9019_v51, %v4502_v14  ;;  %v9023_v12 = vld [vmem:[#allocation91_spill] sm:$0xff]  ;;  %v9027_v29 = vld [vmem:[#allocation92_spill] sm:$0xff] }
 0x3b5   :  { %9014 = vst [vmem:[#allocation53_spill] sm:$0xff] %v7543_v31  ;;  %9017 = vst [vmem:[#allocation54_spill] sm:$0xff] %v7549_v53  ;;  %vm9024_vm12 = vcmp.lt.s32.totalorder %v9023_v12, %v4502_v14  ;;  %v9026_v24 = vcombine.high %v9022_v58, %v9022_v58  ;;  %vm9028_vm13 = vcmp.lt.s32.totalorder %v9027_v29, %v4502_v14  ;;  %v9029_v3 = vld [vmem:[#allocation141_spill] sm:$0xff]  ;;  %v9034_v12 = vld [vmem:[#allocation94_spill] sm:$0xff] }
 0x3b6   :  { %v7557_v4 = vsel %vm9020_vm11, %v9018_v25, 0.0  ;;  %v7563_v17 = vsel %vm9024_vm12, %v9022_v58, 0.0  ;;  %v9030_v31 = vld [vmem:[#allocation93_spill] sm:$0xff]  ;;  %v9033_v51 = vcombine.high %v9029_v3, %v9029_v3  ;;  %vm9035_vm2 = vcmp.lt.s32.totalorder %v9034_v12, %v4502_v14  ;;  %v9036_v58 = vld [vmem:[#allocation142_spill] sm:$0xff] }
 0x3b7   :  { %9021 = vst [vmem:[#allocation55_spill] sm:$0xff] %v7557_v4  ;;  %9025 = vst [vmem:[#allocation56_spill] sm:$0xff] %v7563_v17  ;;  %v7571_v53 = vsel %vm9028_vm13, %v9026_v24, 0.0  ;;  %vm9031_vm1 = vcmp.lt.s32.totalorder %v9030_v31, %v4502_v14  ;;  %v9037_v4 = vld [vmem:[#allocation95_spill] sm:$0xff]  ;;  %v9040_v29 = vcombine.high %v9036_v58, %v9036_v58  ;;  %v9041_v31 = vld [vmem:[#allocation96_spill] sm:$0xff]  ;;  %v9046_v12 = vcombine.high %v6850_v0, %v6850_v0 }
 0x3b8   :  { %v7577_v25 = vsel %vm9031_vm1, %v9029_v3, 0.0  ;;  %v7585_v17 = vsel %vm9035_vm2, %v9033_v51, 0.0  ;;  %vm9038_vm3 = vcmp.lt.s32.totalorder %v9037_v4, %v4502_v14  ;;  %vm9042_vm4 = vcmp.lt.s32.totalorder %v9041_v31, %v4502_v14  ;;  %v9043_v3 = vld [vmem:[#allocation97_spill] sm:$0xff]  ;;  %v9047_v4 = vld [vmem:[#allocation98_spill] sm:$0xff] }
 0x3b9   :  { %9032 = vst [vmem:[#allocation57_spill] sm:$0xff] %v7577_v25  ;;  %v7591_v24 = vsel %vm9038_vm3, %v9036_v58, 0.0  ;;  %v7599_v25 = vsel %vm9042_vm4, %v9040_v29, 0.0  ;;  %vm9044_vm5 = vcmp.lt.s32.totalorder %v9043_v3, %v4502_v14  ;;  %vm9048_vm6 = vcmp.lt.s32.totalorder %v9047_v4, %v4502_v14  ;;  %v9050_v58 = vld [vmem:[#allocation99_spill] sm:$0xff]  ;;  %v9054_v3 = vld [vmem:[#allocation100_spill] sm:$0xff] }
 0x3ba   :  { %9039 = vst [vmem:[#allocation58_spill] sm:$0xff] %v7591_v24  ;;  %v7605_v51 = vsel %vm9044_vm5, %v6850_v0, 0.0  ;;  %v7613_v24 = vsel %vm9048_vm6, %v9046_v12, 0.0  ;;  %vm9051_vm7 = vcmp.lt.s32.totalorder %v9050_v58, %v4502_v14  ;;  %v9053_v31 = vcombine.high %v6854_v13, %v6854_v13  ;;  %v9056_v0 = vld [vmem:[#allocation101_spill] sm:$0xff]  ;;  %v9060_v58 = vld [vmem:[#allocation102_spill] sm:$0xff] }
 0x3bb   :  { %9045 = vst [vmem:[#allocation59_spill] sm:$0xff] %v7605_v51  ;;  %9049 = vst [vmem:[#allocation60_spill] sm:$0xff] %v7613_v24  ;;  %v7619_v29 = vsel %vm9051_vm7, %v6854_v13, 0.0  ;;  %vm9055_vm8 = vcmp.lt.s32.totalorder %v9054_v3, %v4502_v14  ;;  %vm9057_vm9 = vcmp.lt.s32.totalorder %v9056_v0, %v4502_v14  ;;  %v9059_v4 = vcombine.high %v6861_v56, %v6861_v56  ;;  %v9063_v13 = vld [vmem:[#allocation143_spill] sm:$0xff]  ;;  %v9068_v0 = vld [vmem:[#allocation104_spill] sm:$0xff] }
 0x3bc   :  { %9052 = vst [vmem:[#allocation61_spill] sm:$0xff] %v7619_v29  ;;  %v7627_v51 = vsel %vm9055_vm8, %v9053_v31, 0.0  ;;  %v7633_v12 = vsel %vm9057_vm9, %v6861_v56, 0.0  ;;  %vm9061_vm10 = vcmp.lt.s32.totalorder %v9060_v58, %v4502_v14  ;;  %v9064_v24 = vld [vmem:[#allocation103_spill] sm:$0xff]  ;;  %v9067_v3 = vcombine.high %v9063_v13, %v9063_v13  ;;  %v9071_v56 = vld [vmem:[#allocation105_spill] sm:$0xff] }
 0x3bd   :  { %9058 = vst [vmem:[#allocation62_spill] sm:$0xff] %v7633_v12  ;;  %v7641_v29 = vsel %vm9061_vm10, %v9059_v4, 0.0  ;;  %vm9065_vm11 = vcmp.lt.s32.totalorder %v9064_v24, %v4502_v14  ;;  %vm9069_vm12 = vcmp.lt.s32.totalorder %v9068_v0, %v4502_v14  ;;  %vm9072_vm13 = vcmp.lt.s32.totalorder %v9071_v56, %v4502_v14  ;;  %v9075_v24 = vld [vmem:[#allocation106_spill] sm:$0xff]  ;;  %v9083_v56 = vld [vmem:[#allocation108_spill] sm:$0xff] }
 0x3be   :  { %9062 = vst [vmem:[#allocation63_spill] sm:$0xff] %v7641_v29  ;;  %v7647_v31 = vsel %vm9065_vm11, %v9063_v13, 0.0  ;;  %v7655_v12 = vsel %vm9069_vm12, %v9067_v3, 0.0  ;;  %v7661_v4 = vsel %vm9072_vm13, %v6874_v37, 0.0  ;;  %v9074_v58 = vcombine.high %v6874_v37, %v6874_v37  ;;  %v9078_v13 = vld [vmem:[#allocation144_spill] sm:$0xff]  ;;  %v9079_v29 = vld [vmem:[#allocation107_spill] sm:$0xff] }
 0x3bf   :  { %9066 = vst [vmem:[#allocation64_spill] sm:$0xff] %v7647_v31  ;;  %9070 = vst [vmem:[#allocation65_spill] sm:$0xff] %v7655_v12  ;;  %vm9076_vm1 = vcmp.lt.s32.totalorder %v9075_v24, %v4502_v14  ;;  %vm9080_vm2 = vcmp.lt.s32.totalorder %v9079_v29, %v4502_v14  ;;  %v9082_v0 = vcombine.high %v9078_v13, %v9078_v13  ;;  %v9085_v37 = vld [vmem:[#allocation145_spill] sm:$0xff]  ;;  %v9090_v29 = vld [vmem:[#allocation110_spill] sm:$0xff] }
 0x3c0   :  { %9073 = vst [vmem:[#allocation66_spill] sm:$0xff] %v7661_v4  ;;  %v7669_v31 = vsel %vm9076_vm1, %v9074_v58, 0.0  ;;  %v7675_v3 = vsel %vm9080_vm2, %v9078_v13, 0.0  ;;  %vm9084_vm3 = vcmp.lt.s32.totalorder %v9083_v56, %v4502_v14  ;;  %v9086_v12 = vld [vmem:[#allocation109_spill] sm:$0xff]  ;;  %v9089_v24 = vcombine.high %v9085_v37, %v9085_v37  ;;  %v9092_v13 = vld [vmem:[#allocation146_spill] sm:$0xff] }
 0x3c1   :  { %9077 = vst [vmem:[#allocation67_spill] sm:$0xff] %v7669_v31  ;;  %9081 = vst [vmem:[#allocation68_spill] sm:$0xff] %v7675_v3  ;;  %v7683_v4 = vsel %vm9084_vm3, %v9082_v0, 0.0  ;;  %vm9087_vm4 = vcmp.lt.s32.totalorder %v9086_v12, %v4502_v14  ;;  %vm9091_vm5 = vcmp.lt.s32.totalorder %v9090_v29, %v4502_v14  ;;  %v9093_v31 = vld [vmem:[#allocation111_spill] sm:$0xff]  ;;  %v9096_v56 = vcombine.high %v9092_v13, %v9092_v13  ;;  %v9097_v12 = vld [vmem:[#allocation112_spill] sm:$0xff] }
 0x3c2   :  { %v7689_v58 = vsel %vm9087_vm4, %v9085_v37, 0.0  ;;  %v7697_v3 = vsel %vm9091_vm5, %v9089_v24, 0.0  ;;  %vm9094_vm6 = vcmp.lt.s32.totalorder %v9093_v31, %v4502_v14  ;;  %vm9098_vm7 = vcmp.lt.s32.totalorder %v9097_v12, %v4502_v14  ;;  %v9099_v37 = vld [vmem:[#allocation113_spill] sm:$0xff]  ;;  %v9103_v31 = vld [vmem:[#allocation114_spill] sm:$0xff] }
 0x3c3   :  { %9088 = vst [vmem:[#allocation69_spill] sm:$0xff] %v7689_v58  ;;  %v7703_v0 = vsel %vm9094_vm6, %v9092_v13, 0.0  ;;  %v7711_v58 = vsel %vm9098_vm7, %v9096_v56, 0.0  ;;  %vm9100_vm8 = vcmp.lt.s32.totalorder %v9099_v37, %v4502_v14  ;;  %v9102_v29 = vcombine.high %v6902_v47, %v6902_v47  ;;  %v9106_v13 = vld [vmem:[#allocation115_spill] sm:$0xff]  ;;  %v9110_v37 = vld [vmem:[#allocation116_spill] sm:$0xff] }
 0x3c4   :  { %9095 = vst [vmem:[#allocation70_spill] sm:$0xff] %v7703_v0  ;;  %v7717_v24 = vsel %vm9100_vm8, %v6902_v47, 0.0  ;;  %vm9104_vm9 = vcmp.lt.s32.totalorder %v9103_v31, %v4502_v14  ;;  %vm9107_vm10 = vcmp.lt.s32.totalorder %v9106_v13, %v4502_v14  ;;  %v9109_v12 = vcombine.high %v6906_v5, %v6906_v5  ;;  %v9112_v47 = vld [vmem:[#allocation117_spill] sm:$0xff]  ;;  %v9116_v13 = vld [vmem:[#allocation118_spill] sm:$0xff] }
 0x3c5   :  { %9101 = vst [vmem:[#allocation135_spill] sm:$0xff] %v7717_v24  ;;  %v7725_v0 = vsel %vm9104_vm9, %v9102_v29, 0.0  ;;  %v7731_v56 = vsel %vm9107_vm10, %v6906_v5, 0.0  ;;  %vm9111_vm11 = vcmp.lt.s32.totalorder %v9110_v37, %v4502_v14  ;;  %vm9113_vm12 = vcmp.lt.s32.totalorder %v9112_v47, %v4502_v14  ;;  %v9119_v5 = vld [vmem:[#allocation147_spill] sm:$0xff]  ;;  %v9124_v47 = vld [vmem:[#allocation120_spill] sm:$0xff] }
 0x3c6   :  { %9105 = vst [vmem:[#allocation71_spill] sm:$0xff] %v7725_v0  ;;  %9108 = vst [vmem:[#allocation72_spill] sm:$0xff] %v7731_v56  ;;  %v7739_v24 = vsel %vm9111_vm11, %v9109_v12, 0.0  ;;  %v7745_v29 = vsel %vm9113_vm12, %v6913_v36, 0.0  ;;  %v9115_v31 = vcombine.high %v6913_v36, %v6913_v36  ;;  %vm9117_vm13 = vcmp.lt.s32.totalorder %v9116_v13, %v4502_v14  ;;  %v9120_v0 = vld [vmem:[#allocation119_spill] sm:$0xff]  ;;  %v9127_v36 = vld [vmem:[#allocation121_spill] sm:$0xff] }
 0x3c7   :  { %9114 = vst [vmem:[#allocation73_spill] sm:$0xff] %v7745_v29  ;;  %vm9121_vm1 = vcmp.lt.s32.totalorder %v9120_v0, %v4502_v14  ;;  %v9123_v37 = vcombine.high %v9119_v5, %v9119_v5  ;;  %vm9125_vm2 = vcmp.lt.s32.totalorder %v9124_v47, %v4502_v14  ;;  %vm9128_vm3 = vcmp.lt.s32.totalorder %v9127_v36, %v4502_v14  ;;  %v9131_v0 = vld [vmem:[#allocation122_spill] sm:$0xff]  ;;  %v9138_v36 = vld [vmem:[#allocation124_spill] sm:$0xff] }
 0x3c8   :  { %v7753_v56 = vsel %vm9117_vm13, %v9115_v31, 0.0  ;;  %v7759_v12 = vsel %vm9121_vm1, %v9119_v5, 0.0  ;;  %v7773_v31 = vsel %vm9128_vm3, %v6926_v18, 0.0  ;;  %v9130_v13 = vcombine.high %v6926_v18, %v6926_v18  ;;  %v9133_v5 = vld [vmem:[#allocation148_spill] sm:$0xff]  ;;  %v9140_v18 = vld [vmem:[#allocation149_spill] sm:$0xff] }
 0x3c9   :  { %9118 = vst [vmem:[#allocation74_spill] sm:$0xff] %v7753_v56  ;;  %9122 = vst [vmem:[#allocation136_spill] sm:$0xff] %v7759_v12  ;;  %v7767_v29 = vsel %vm9125_vm2, %v9123_v37, 0.0  ;;  %vm9132_vm4 = vcmp.lt.s32.totalorder %v9131_v0, %v4502_v14  ;;  %v9134_v56 = vld [vmem:[#allocation123_spill] sm:$0xff]  ;;  %v9137_v47 = vcombine.high %v9133_v5, %v9133_v5  ;;  %vm9139_vm6 = vcmp.lt.s32.totalorder %v9138_v36, %v4502_v14 }
 0x3ca   :  { %9126 = vst [vmem:[#allocation75_spill] sm:$0xff] %v7767_v29  ;;  %9129 = vst [vmem:[#allocation76_spill] sm:$0xff] %v7773_v31  ;;  %v7781_v12 = vsel %vm9132_vm4, %v9130_v13, 0.0  ;;  %vm9135_vm5 = vcmp.lt.s32.totalorder %v9134_v56, %v4502_v14  ;;  %v9141_v29 = vld [vmem:[#allocation125_spill] sm:$0xff]  ;;  %v9144_v0 = vcombine.high %v9140_v18, %v9140_v18  ;;  %v9145_v56 = vld [vmem:[#allocation126_spill] sm:$0xff]  ;;  %v9150_v36 = vcombine.high %v6947_v19, %v6947_v19 }
 0x3cb   :  { %v7787_v37 = vsel %vm9135_vm5, %v9133_v5, 0.0  ;;  %v7795_v31 = vsel %vm9139_vm6, %v9137_v47, 0.0  ;;  %vm9142_vm7 = vcmp.lt.s32.totalorder %v9141_v29, %v4502_v14  ;;  %vm9146_vm8 = vcmp.lt.s32.totalorder %v9145_v56, %v4502_v14  ;;  %v9147_v5 = vld [vmem:[#allocation127_spill] sm:$0xff]  ;;  %v9151_v29 = vld [vmem:[#allocation128_spill] sm:$0xff] }
 0x3cc   :  { %9136 = vst [vmem:[#allocation137_spill] sm:$0xff] %v7787_v37  ;;  %v7801_v13 = vsel %vm9142_vm7, %v9140_v18, 0.0  ;;  %v7809_v37 = vsel %vm9146_vm8, %v9144_v0, 0.0  ;;  %vm9148_vm9 = vcmp.lt.s32.totalorder %v9147_v5, %v4502_v14  ;;  %vm9152_vm10 = vcmp.lt.s32.totalorder %v9151_v29, %v4502_v14  ;;  %v9153_v18 = vld [vmem:[#allocation129_spill] sm:$0xff]  ;;  %v9157_v5 = vld [vmem:[#allocation130_spill] sm:$0xff] }
 0x3cd   :  { %9143 = vst [vmem:[#allocation77_spill] sm:$0xff] %v7801_v13  ;;  %v7815_v47 = vsel %vm9148_vm9, %v6947_v19, 0.0  ;;  %v7823_v13 = vsel %vm9152_vm10, %v9150_v36, 0.0  ;;  %vm9154_vm11 = vcmp.lt.s32.totalorder %v9153_v18, %v4502_v14  ;;  %v9156_v56 = vcombine.high %v6954_v62, %v6954_v62  ;;  %v9162_v18 = vld [vmem:[#allocation132_spill] sm:$0xff]  ;;  %v9170_v19 = vld [vmem:[#allocation11_spill] sm:$0xff] }
 0x3ce   :  { %9149 = vst [vmem:[#allocation78_spill] sm:$0xff] %v7815_v47  ;;  %v7829_v0 = vsel %vm9154_vm11, %v6954_v62, 0.0  ;;  %vm9158_vm12 = vcmp.lt.s32.totalorder %v9157_v5, %v4502_v14  ;;  %v7843_v36 = vsel %vm330_vm0, %v6958_v10, 0.0  ;;  %v9161_v29 = vcombine.high %v6958_v10, %v6958_v10 }
 0x3cf   :  { %9155 = vst [vmem:[#allocation138_spill] sm:$0xff] %v7829_v0  ;;  %v7837_v47 = vsel %vm9158_vm12, %v9156_v56, 0.0  ;;  %9160 = vst [vmem:[#allocation79_spill] sm:$0xff] %v7843_v36  ;;  %vm9163_vm13 = vcmp.lt.s32.totalorder %v9162_v18, %v4502_v14  ;;  %v7857_v56 = vsel %vm332_vm14, %v6969_v26, 0.0  ;;  %v9166_v5 = vcombine.high %v6969_v26, %v6969_v26 }
 0x3d0   :  { %v7851_v0 = vsel %vm9163_vm13, %v9161_v29, 0.0  ;;  %v3688_v10 = vcombine.low %v6964_v38, %v6977_v54  ;;  %v9168_v29 = vld [vmem:[#allocation12_spill] sm:$0xff]  ;;  %v3706_v62 = vcombine.low %v7017_v6, %v7025_v41  ;;  %v3722_v26 = vcombine.low %v7031_v7, %v7039_v34  ;;  %v9169_v38 = vld [vmem:[#allocation13_spill] sm:$0xff] }
 0x3d1   :  { %9164 = vst [vmem:[#allocation80_spill] sm:$0xff] %v7851_v0  ;;  %v7865_v36 = vsel %vm333_vm15, %v9166_v5, 0.0  ;;  %v3689_v18 = vcombine.low %v9168_v29, %v6995_v49  ;;  %v3705_v0 = vcombine.low %v7001_v16, %v7011_v42  ;;  %v3723_v14 = vcombine.low %v7045_v33, %v7053_v39 }
 0x3d2   :  { %v3739_v5 = vcombine.low %v7059_v28, %v7067_v27  ;;  %v3740_v54 = vcombine.low %v9169_v38, %v7081_v60  ;;  %v3696_v49 = vrot.slane %v3688_v10, %v9170_v19  ;;  %v3720_v42 = vrot.slane %v3706_v62, %v9170_v19  ;;  %v9171_v60 = vld [vmem:[#allocation14_spill] sm:$0xff]  ;;  %v9172_v27 = vld [vmem:[#allocation15_spill] sm:$0xff]  ;;  %v9173_v62 = vld [vmem:[#allocation16_spill] sm:$0xff] }
 0x3d3   :  { %v3703_v29 = vrot.slane %v3689_v18, %v9170_v19  ;;  %v3713_v16 = vrot.slane %v3705_v0, %v9170_v19  ;;  %v3730_v6 = vrot.slane %v3722_v26, %v9170_v19  ;;  %v3737_v41 = vrot.slane %v3723_v14, %v9170_v19  ;;  %v9174_v26 = vld [vmem:[#allocation17_spill] sm:$0xff] }
 0x3d4   :  { %v3747_v7 = vrot.slane %v3739_v5, %v9170_v19  ;;  %v3754_v34 = vrot.slane %v3740_v54, %v9170_v19  ;;  %v3756_v28 = vcombine.low %v9171_v60, %v7095_v57  ;;  %v3757_v10 = vcombine.low %v9172_v27, %v7109_v46  ;;  %v9176_v57 = vld [vmem:[#allocation19_spill] sm:$0xff] }
 0x3d5   :  { %v3704_v33 = vcombine.low %v3696_v49, %v3703_v29  ;;  %v3721_v39 = vcombine.low %v3713_v16, %v3720_v42  ;;  %v3738_v18 = vcombine.low %v3730_v6, %v3737_v41  ;;  %v3773_v38 = vcombine.low %v9173_v62, %v7123_v1  ;;  %v9175_v49 = vld [vmem:[#allocation18_spill] sm:$0xff]  ;;  %v9177_v1 = vld [vmem:[#allocation20_spill] sm:$0xff]  ;;  %v9182_v62 = vld [vmem:[#allocation25_spill] sm:$0xff] }
 0x3d6   :  { %v3755_v0 = vcombine.low %v3747_v7, %v3754_v34  ;;  %v3774_v14 = vcombine.low %v9174_v26, %v7137_v50  ;;  %v3764_v5 = vrot.slane %v3756_v28, %v9170_v19  ;;  %v3771_v54 = vrot.slane %v3757_v10, %v9170_v19  ;;  %v9178_v50 = vld [vmem:[#allocation21_spill] sm:$0xff] }
 0x3d7   :  { %v3790_v29 = vcombine.low %v9175_v49, %v7151_v55  ;;  %v3791_v16 = vcombine.low %v9176_v57, %v7165_v22  ;;  %4264 = vst [vmem:[#allocation7] sm:$0xff] %v3704_v33  ;;  %4265 = vst [vmem:[#allocation7 + $0x8] sm:$0xff] %v3721_v39  ;;  %v3781_v46 = vrot.slane %v3773_v38, %v9170_v19  ;;  %v9179_v22 = vld [vmem:[#allocation22_spill] sm:$0xff] }
 0x3d8   :  { %v3788_v42 = vrot.slane %v3774_v14, %v9170_v19  ;;  %v3807_v6 = vcombine.low %v9177_v1, %v7179_v43  ;;  %v3808_v41 = vcombine.low %v9178_v50, %v7193_v45  ;;  %4266 = vst [vmem:[#allocation7 + $0x10] sm:$0xff] %v3738_v18  ;;  %4267 = vst [vmem:[#allocation7 + $0x18] sm:$0xff] %v3755_v0  ;;  %v9180_v43 = vld [vmem:[#allocation23_spill] sm:$0xff]  ;;  %v9181_v18 = vld [vmem:[#allocation24_spill] sm:$0xff] }
 0x3d9   :  { %v3772_v7 = vcombine.low %v3764_v5, %v3771_v54  ;;  %v3798_v55 = vrot.slane %v3790_v29, %v9170_v19  ;;  %v3805_v34 = vrot.slane %v3791_v16, %v9170_v19  ;;  %v3824_v33 = vcombine.low %v9179_v22, %v7207_v8  ;;  %v9183_v14 = vld [vmem:[#allocation26_spill] sm:$0xff]  ;;  %v9184_v54 = vld [vmem:[#allocation27_spill] sm:$0xff] }
 0x3da   :  { %v3789_v39 = vcombine.low %v3781_v46, %v3788_v42  ;;  %v3815_v60 = vrot.slane %v3807_v6, %v9170_v19  ;;  %v3822_v28 = vrot.slane %v3808_v41, %v9170_v19  ;;  %v3825_v27 = vcombine.low %v9180_v43, %v7221_v21  ;;  %v9187_v1 = vld [vmem:[#allocation30_spill] sm:$0xff] }
 0x3db   :  { %v3806_v10 = vcombine.low %v3798_v55, %v3805_v34  ;;  %v3832_v45 = vrot.slane %v3824_v33, %v9170_v19  ;;  %v3841_v0 = vcombine.low %v9181_v18, %v7235_v44  ;;  %v3842_v38 = vcombine.low %v9182_v62, %v7249_v40  ;;  %4268 = vst [vmem:[#allocation7 + $0x20] sm:$0xff] %v3772_v7  ;;  %v9185_v44 = vld [vmem:[#allocation28_spill] sm:$0xff]  ;;  %v9186_v40 = vld [vmem:[#allocation29_spill] sm:$0xff]  ;;  %v9195_v62 = vld [vmem:[#allocation39_spill] sm:$0xff] }
 0x3dc   :  { %v3823_v26 = vcombine.low %v3815_v60, %v3822_v28  ;;  %v3839_v8 = vrot.slane %v3825_v27, %v9170_v19  ;;  %v3858_v5 = vcombine.low %v9183_v14, %v7263_v11  ;;  %v3859_v49 = vcombine.low %v9184_v54, %v7277_v23  ;;  %4269 = vst [vmem:[#allocation7 + $0x28] sm:$0xff] %v3789_v39  ;;  %v9189_v34 = vld [vmem:[#allocation32_spill] sm:$0xff]  ;;  %v9190_v33 = vld [vmem:[#allocation33_spill] sm:$0xff]  ;;  %v9191_v28 = vld [vmem:[#allocation34_spill] sm:$0xff] }
 0x3dd   :  { %v3849_v21 = vrot.slane %v3841_v0, %v9170_v19  ;;  %v3856_v29 = vrot.slane %v3842_v38, %v9170_v19  ;;  %v3875_v57 = vcombine.low %v9185_v44, %v7291_v9  ;;  %v3876_v16 = vcombine.low %v9186_v40, %v7305_v15  ;;  %4270 = vst [vmem:[#allocation7 + $0x30] sm:$0xff] %v3806_v10  ;;  %v9188_v9 = vld [vmem:[#allocation31_spill] sm:$0xff]  ;;  %v9192_v27 = vld [vmem:[#allocation36_spill] sm:$0xff]  ;;  %v9197_v14 = vld [vmem:[#allocation41_spill] sm:$0xff] }
 0x3de   :  { %v3840_v46 = vcombine.low %v3832_v45, %v3839_v8  ;;  %v3866_v42 = vrot.slane %v3858_v5, %v9170_v19  ;;  %v3873_v11 = vrot.slane %v3859_v49, %v9170_v19  ;;  %v3892_v23 = vcombine.low %v9187_v1, %v7319_v63  ;;  %4271 = vst [vmem:[#allocation7 + $0x38] sm:$0xff] %v3823_v26  ;;  %v9193_v10 = vld [vmem:[#allocation35_spill] sm:$0xff]  ;;  %v9198_v5 = vld [vmem:[#allocation40_spill] sm:$0xff] }
 0x3df   :  { %v3857_v6 = vcombine.low %v3849_v21, %v3856_v29  ;;  %v3883_v50 = vrot.slane %v3875_v57, %v9170_v19  ;;  %v3890_v41 = vrot.slane %v3876_v16, %v9170_v19  ;;  %v3893_v7 = vcombine.low %v9188_v9, %v7333_v35  ;;  %v9199_v44 = vld [vmem:[#allocation43_spill] sm:$0xff]  ;;  %v9204_v9 = vld [vmem:[#allocation48_spill] sm:$0xff] }
 0x3e0   :  { %v3874_v55 = vcombine.low %v3866_v42, %v3873_v11  ;;  %v3900_v15 = vrot.slane %v3892_v23, %v9170_v19  ;;  %v3909_v22 = vcombine.low %v9189_v34, %v7347_v2  ;;  %v3910_v39 = vcombine.low %v9190_v33, %v7361_v20  ;;  %4272 = vst [vmem:[#allocation7 + $0x40] sm:$0xff] %v3840_v46  ;;  %v9194_v2 = vld [vmem:[#allocation37_spill] sm:$0xff]  ;;  %v9196_v20 = vld [vmem:[#allocation38_spill] sm:$0xff]  ;;  %v9201_v46 = vld [vmem:[#allocation44_spill] sm:$0xff] }
 0x3e1   :  { %v3891_v63 = vcombine.low %v3883_v50, %v3890_v41  ;;  %v3907_v60 = vrot.slane %v3893_v7, %v9170_v19  ;;  %v3926_v43 = vcombine.low %v9191_v28, %v7375_v30  ;;  %v3927_v45 = vcombine.low %v9193_v10, %v9192_v27  ;;  %4273 = vst [vmem:[#allocation7 + $0x48] sm:$0xff] %v3857_v6  ;;  %v9202_v11 = vld [vmem:[#allocation45_spill] sm:$0xff]  ;;  %v9203_v50 = vld [vmem:[#allocation46_spill] sm:$0xff]  ;;  %v9205_v7 = vld [vmem:[#allocation47_spill] sm:$0xff] }
 0x3e2   :  { %v3917_v35 = vrot.slane %v3909_v22, %v9170_v19  ;;  %v3924_v18 = vrot.slane %v3910_v39, %v9170_v19  ;;  %v3943_v0 = vcombine.low %v9194_v2, %v7403_v52  ;;  %v3944_v38 = vcombine.low %v9196_v20, %v9195_v62  ;;  %4274 = vst [vmem:[#allocation7 + $0x50] sm:$0xff] %v3874_v55  ;;  %v9200_v52 = vld [vmem:[#allocation42_spill] sm:$0xff]  ;;  %v9207_v33 = vld [vmem:[#allocation51_spill] sm:$0xff]  ;;  %v9209_v28 = vld [vmem:[#allocation53_spill] sm:$0xff] }
 0x3e3   :  { %v3908_v26 = vcombine.low %v3900_v15, %v3907_v60  ;;  %v3934_v8 = vrot.slane %v3926_v43, %v9170_v19  ;;  %v3941_v30 = vrot.slane %v3927_v45, %v9170_v19  ;;  %v3960_v54 = vcombine.low %v9198_v5, %v9197_v14  ;;  %4275 = vst [vmem:[#allocation7 + $0x58] sm:$0xff] %v3891_v63  ;;  %v9210_v43 = vld [vmem:[#allocation52_spill] sm:$0xff]  ;;  %v9215_v5 = vld [vmem:[#allocation58_spill] sm:$0xff] }
 0x3e4   :  { %v3925_v49 = vcombine.low %v3917_v35, %v3924_v18  ;;  %v3951_v21 = vrot.slane %v3943_v0, %v9170_v19  ;;  %v3958_v29 = vrot.slane %v3944_v38, %v9170_v19  ;;  %v3961_v57 = vcombine.low %v9200_v52, %v9199_v44  ;;  %v9211_v18 = vld [vmem:[#allocation55_spill] sm:$0xff]  ;;  %v9213_v20 = vld [vmem:[#allocation56_spill] sm:$0xff] }
 0x3e5   :  { %v3942_v40 = vcombine.low %v3934_v8, %v3941_v30  ;;  %v3968_v16 = vrot.slane %v3960_v54, %v9170_v19  ;;  %v3977_v42 = vcombine.low %v9201_v46, %v7459_v32  ;;  %v3978_v1 = vcombine.low %v9202_v11, %v7473_v48  ;;  %4276 = vst [vmem:[#allocation7 + $0x60] sm:$0xff] %v3908_v26  ;;  %v9206_v32 = vld [vmem:[#allocation49_spill] sm:$0xff]  ;;  %v9208_v48 = vld [vmem:[#allocation50_spill] sm:$0xff] }
 0x3e6   :  { %v3959_v23 = vcombine.low %v3951_v21, %v3958_v29  ;;  %v3975_v6 = vrot.slane %v3961_v57, %v9170_v19  ;;  %v3994_v41 = vcombine.low %v9203_v50, %v7487_v59  ;;  %v3995_v55 = vcombine.low %v9205_v7, %v9204_v9  ;;  %4277 = vst [vmem:[#allocation7 + $0x68] sm:$0xff] %v3925_v49  ;;  %v9214_v26 = vld [vmem:[#allocation57_spill] sm:$0xff]  ;;  %v9216_v49 = vld [vmem:[#allocation60_spill] sm:$0xff]  ;;  %v9217_v21 = vld [vmem:[#allocation59_spill] sm:$0xff] }
 0x3e7   :  { %v3985_v15 = vrot.slane %v3977_v42, %v9170_v19  ;;  %v3992_v34 = vrot.slane %v3978_v1, %v9170_v19  ;;  %v4011_v22 = vcombine.low %v9206_v32, %v7515_v61  ;;  %v4012_v39 = vcombine.low %v9208_v48, %v9207_v33  ;;  %4278 = vst [vmem:[#allocation7 + $0x70] sm:$0xff] %v3942_v40  ;;  %v9212_v61 = vld [vmem:[#allocation54_spill] sm:$0xff]  ;;  %v9219_v40 = vld [vmem:[#allocation63_spill] sm:$0xff]  ;;  %v9221_v11 = vld [vmem:[#allocation65_spill] sm:$0xff] }
 0x3e8   :  { %v3976_v63 = vcombine.low %v3968_v16, %v3975_v6  ;;  %v4002_v60 = vrot.slane %v3994_v41, %v9170_v19  ;;  %v4009_v59 = vrot.slane %v3995_v55, %v9170_v19  ;;  %v4028_v27 = vcombine.low %v9210_v43, %v9209_v28  ;;  %4279 = vst [vmem:[#allocation7 + $0x78] sm:$0xff] %v3959_v23  ;;  %v9222_v1 = vld [vmem:[#allocation64_spill] sm:$0xff]  ;;  %v9223_v9 = vld [vmem:[#allocation67_spill] sm:$0xff] }
 0x3e9   :  { %v3993_v10 = vcombine.low %v3985_v15, %v3992_v34  ;;  %v4019_v45 = vrot.slane %v4011_v22, %v9170_v19  ;;  %v4026_v35 = vrot.slane %v4012_v39, %v9170_v19  ;;  %v4029_v2 = vcombine.low %v9212_v61, %v9211_v18  ;;  %v9225_v34 = vld [vmem:[#allocation68_spill] sm:$0xff]  ;;  %v9226_v22 = vld [vmem:[#allocation69_spill] sm:$0xff]  ;;  %v9229_v28 = vld [vmem:[#allocation135_spill] sm:$0xff] }
 0x3ea   :  { %v4010_v0 = vcombine.low %v4002_v60, %v4009_v59  ;;  %v4036_v62 = vrot.slane %v4028_v27, %v9170_v19  ;;  %v4045_v38 = vcombine.low %v9213_v20, %v7571_v53  ;;  %v4046_v8 = vcombine.low %v9214_v26, %v7585_v17  ;;  %4280 = vst [vmem:[#allocation7 + $0x80] sm:$0xff] %v3976_v63  ;;  %v9218_v53 = vld [vmem:[#allocation61_spill] sm:$0xff]  ;;  %v9220_v17 = vld [vmem:[#allocation62_spill] sm:$0xff]  ;;  %v9228_v59 = vld [vmem:[#allocation71_spill] sm:$0xff] }
 0x3eb   :  { %v4027_v30 = vcombine.low %v4019_v45, %v4026_v35  ;;  %v4043_v14 = vrot.slane %v4029_v2, %v9170_v19  ;;  %v4062_v54 = vcombine.low %v9215_v5, %v7599_v25  ;;  %v4063_v29 = vcombine.low %v9217_v21, %v9216_v49  ;;  %4281 = vst [vmem:[#allocation7 + $0x88] sm:$0xff] %v3993_v10  ;;  %v9227_v63 = vld [vmem:[#allocation70_spill] sm:$0xff]  ;;  %v9237_v21 = vld [vmem:[#allocation77_spill] sm:$0xff] }
 0x3ec   :  { %v4053_v44 = vrot.slane %v4045_v38, %v9170_v19  ;;  %v4060_v52 = vrot.slane %v4046_v8, %v9170_v19  ;;  %v4079_v57 = vcombine.low %v9218_v53, %v7627_v51  ;;  %v4080_v16 = vcombine.low %v9220_v17, %v9219_v40  ;;  %4282 = vst [vmem:[#allocation7 + $0x90] sm:$0xff] %v4010_v0  ;;  %v9224_v51 = vld [vmem:[#allocation66_spill] sm:$0xff]  ;;  %v9233_v0 = vld [vmem:[#allocation75_spill] sm:$0xff] }
 0x3ed   :  { %v4044_v46 = vcombine.low %v4036_v62, %v4043_v14  ;;  %v4070_v42 = vrot.slane %v4062_v54, %v9170_v19  ;;  %v4077_v25 = vrot.slane %v4063_v29, %v9170_v19  ;;  %v4096_v23 = vcombine.low %v9222_v1, %v9221_v11  ;;  %4283 = vst [vmem:[#allocation7 + $0x98] sm:$0xff] %v4027_v30  ;;  %v9231_v35 = vld [vmem:[#allocation74_spill] sm:$0xff]  ;;  %v9234_v62 = vld [vmem:[#allocation136_spill] sm:$0xff]  ;;  %v9236_v54 = vld [vmem:[#allocation137_spill] sm:$0xff] }
 0x3ee   :  { %v4061_v6 = vcombine.low %v4053_v44, %v4060_v52  ;;  %v4087_v50 = vrot.slane %v4079_v57, %v9170_v19  ;;  %v4094_v41 = vrot.slane %v4080_v16, %v9170_v19  ;;  %v4097_v7 = vcombine.low %v9224_v51, %v9223_v9  ;;  %v9238_v53 = vld [vmem:[#allocation78_spill] sm:$0xff] }
 0x3ef   :  { %v4078_v55 = vcombine.low %v4070_v42, %v4077_v25  ;;  %v4104_v15 = vrot.slane %v4096_v23, %v9170_v19  ;;  %v4113_v32 = vcombine.low %v9225_v34, %v7683_v4  ;;  %v4114_v33 = vcombine.low %v9226_v22, %v7697_v3  ;;  %4284 = vst [vmem:[#allocation7 + $0xa0] sm:$0xff] %v4044_v46  ;;  %v9230_v4 = vld [vmem:[#allocation72_spill] sm:$0xff]  ;;  %v9232_v3 = vld [vmem:[#allocation73_spill] sm:$0xff]  ;;  %v9239_v40 = vld [vmem:[#allocation138_spill] sm:$0xff] }
 0x3f0   :  { %v4095_v48 = vcombine.low %v4087_v50, %v4094_v41  ;;  %v4111_v39 = vrot.slane %v4097_v7, %v9170_v19  ;;  %v4130_v60 = vcombine.low %v9227_v63, %v7711_v58  ;;  %v4131_v43 = vcombine.low %v9229_v28, %v9228_v59  ;;  %4285 = vst [vmem:[#allocation7 + $0xa8] sm:$0xff] %v4061_v6  ;;  %v9240_v46 = vld [vmem:[#allocation80_spill] sm:$0xff] }
 0x3f1   :  { %v4121_v27 = vrot.slane %v4113_v32, %v9170_v19  ;;  %v4128_v10 = vrot.slane %v4114_v33, %v9170_v19  ;;  %v4147_v45 = vcombine.low %v9230_v4, %v7739_v24  ;;  %v4148_v18 = vcombine.low %v9232_v3, %v9231_v35  ;;  %4286 = vst [vmem:[#allocation7 + $0xb0] sm:$0xff] %v4078_v55  ;;  %v9235_v24 = vld [vmem:[#allocation76_spill] sm:$0xff] }
 0x3f2   :  { %v4112_v61 = vcombine.low %v4104_v15, %v4111_v39  ;;  %v4138_v2 = vrot.slane %v4130_v60, %v9170_v19  ;;  %v4145_v58 = vrot.slane %v4131_v43, %v9170_v19  ;;  %v4164_v20 = vcombine.low %v9234_v62, %v9233_v0  ;;  %4287 = vst [vmem:[#allocation7 + $0xb8] sm:$0xff] %v4095_v48 }
 0x3f3   :  { %v4129_v38 = vcombine.low %v4121_v27, %v4128_v10  ;;  %v4155_v26 = vrot.slane %v4147_v45, %v9170_v19  ;;  %v4162_v8 = vrot.slane %v4148_v18, %v9170_v19  ;;  %v4165_v30 = vcombine.low %v9235_v24, %v7781_v12 }
 0x3f4   :  { %v4146_v14 = vcombine.low %v4138_v2, %v4145_v58  ;;  %v4172_v5 = vrot.slane %v4164_v20, %v9170_v19  ;;  %v4181_v49 = vcombine.low %v9236_v54, %v7795_v31  ;;  %v4182_v29 = vcombine.low %v9237_v21, %v7809_v37  ;;  %4288 = vst [vmem:[#allocation7 + $0xc0] sm:$0xff] %v4112_v61  ;;  %v9241_v31 = vld [vmem:[#allocation79_spill] sm:$0xff] }
 0x3f5   :  { %v4163_v44 = vcombine.low %v4155_v26, %v4162_v8  ;;  %v4179_v52 = vrot.slane %v4165_v30, %v9170_v19  ;;  %v4198_v57 = vcombine.low %v9238_v53, %v7823_v13  ;;  %v4199_v17 = vcombine.low %v9239_v40, %v7837_v47  ;;  %4289 = vst [vmem:[#allocation7 + $0xc8] sm:$0xff] %v4129_v38 }
 0x3f6   :  { %v4189_v12 = vrot.slane %v4181_v49, %v9170_v19  ;;  %v4196_v16 = vrot.slane %v4182_v29, %v9170_v19  ;;  %v4215_v42 = vcombine.low %v9241_v31, %v9240_v46  ;;  %v4216_v37 = vcombine.low %v7857_v56, %v7865_v36  ;;  %4290 = vst [vmem:[#allocation7 + $0xd0] sm:$0xff] %v4146_v14 }
 0x3f7   :  { %v4180_v25 = vcombine.low %v4172_v5, %v4179_v52  ;;  %v4206_v11 = vrot.slane %v4198_v57, %v9170_v19  ;;  %v4213_v13 = vrot.slane %v4199_v17, %v9170_v19  ;;  %4291 = vst [vmem:[#allocation7 + $0xd8] sm:$0xff] %v4163_v44 }
 0x3f8   :  { %v4197_v47 = vcombine.low %v4189_v12, %v4196_v16  ;;  %v4223_v1 = vrot.slane %v4215_v42, %v9170_v19  ;;  %v4230_v23 = vrot.slane %v4216_v37, %v9170_v19 }
 0x3f9   :  { %v4214_v6 = vcombine.low %v4206_v11, %v4213_v13  ;;  %4292 = vst [vmem:[#allocation7 + $0xe0] sm:$0xff] %v4180_v25 }
 0x3fa   :  { %v4231_v50 = vcombine.low %v4223_v1, %v4230_v23  ;;  %4293 = vst [vmem:[#allocation7 + $0xe8] sm:$0xff] %v4197_v47 }
 0x3fb   :  { %4294 = vst [vmem:[#allocation7 + $0xf0] sm:$0xff] %v4214_v6 }
 0x3fc   :  { %4295 = vst [vmem:[#allocation7 + $0xf8] sm:$0xff] %v4231_v50 }
 0x3fd   :  { %4428 = shalt.err (!%p4425_p1)
}
 0x3fe   :  { %s4429_s8 = scalar_lea.hbm %s8073_s2, 4096 }
 0x3ff   :  { %p4430_p2 = scmp.ne.s32.totalorder %s8073_s2, %s4429_s8  ;;  %p4433_p3 = scmp.lt.u32.totalorder %s4429_s8, %s8073_s2 }
 0x401   :  { %p4435_p4 = pnand %p4433_p3, %p4430_p2 }
 0x403   :  { %4438 = shalt.err (!%p4435_p4)
}
 0x404   :  { %4305 = dma.vmem_to_hbm [thread:$0]  %s4303_s4, 4096, %s8073_s2, [#allocation6]  }
 0x405   :  { %4443 = dma.done.wait [#allocation6], 4096  }
 0x406   :  { %4444 = vsyncadd [#allocation6], 4294963200 }
 0x407   :  { %4309 = vsyncpa [#allocation5], 1 }
 0x408   :  { %4310 = vsyncpa [#allocation6], 1 }

</bundles_post_ra>
